<compile_context>
chip_gen: v6e
topology: v6e:2x2x1
jax: 0.10.0
libtpu: 0.0.40
codegen_flags: <defaults>
</compile_context>

<pallas_src>
import functools

import jax
import jax.numpy as jnp
from jax import lax
from jax.experimental import pallas as pl
from jax.experimental.pallas import tpu as pltpu

LANES = 128   # TPU lane width; all matmul N dims are padded to this.
GROUP = 32    # lane stride between the 4 pool-shift groups packed along N.


# ----------------------------------------------------------------------------
# Pallas kernels
# ----------------------------------------------------------------------------
def _conv_relu_pool_kernel(x_ref, w_ref, b_ref, o_ref):
    """x:(tm,K) patches, w:(K,128) shift-packed weights, b:(1,128).

    The 4 conv outputs of one 2x2 pool window live in lanes [32*s, 32*s+cout)
    after a single MXU pass.  Two lane-rolls (XLU) + max (VPU) fold them into
    the pooled maximum (valid in lanes [0, cout) — the only lanes consumers
    read); bias + ReLU are applied on the f32 accumulator.  This equals
    2x2-maxpool(relu(conv(x)+b)) because +bias and relu are monotonic.
    """
    acc = jnp.dot(x_ref[...], w_ref[...], preferred_element_type=jnp.float32)
    acc = jnp.maximum(acc, pltpu.roll(acc, shift=64, axis=1))
    acc = jnp.maximum(acc, pltpu.roll(acc, shift=32, axis=1))
    o_ref[...] = jnp.maximum(acc + b_ref[...], 0.0).astype(o_ref.dtype)


def _fc_stack_kernel(x_ref, w1_ref, b1_ref, w2_ref, b2_ref, w3_ref, b3_ref,
                     o_ref):
    """Fused fc1(relu) -> fc2(relu) -> fc3 on one row-block of the batch."""
    dt = x_ref.dtype
    h = jnp.dot(x_ref[...], w1_ref[...], preferred_element_type=jnp.float32)
    h = jnp.maximum(h + b1_ref[...], 0.0).astype(dt)
    h = jnp.dot(h, w2_ref[...], preferred_element_type=jnp.float32)
    h = jnp.maximum(h + b2_ref[...], 0.0).astype(dt)
    o = jnp.dot(h, w3_ref[...], preferred_element_type=jnp.float32) + b3_ref[...]
    o_ref[...] = o.astype(o_ref.dtype)


# ----------------------------------------------------------------------------
# Pallas wrappers
# ----------------------------------------------------------------------------
def _block_rows(m, tm, min_blocks=2):
    """Row-block size + grid length.

    Splits into >= min_blocks blocks whenever legal (block rows multiple of 8)
    so both of v7x's TensorCores get work under ("parallel",) semantics.
    """
    if m > tm:
        return tm, pl.cdiv(m, tm)
    if min_blocks > 1 and m >= 8 * min_blocks:
        bm = ((m + min_blocks - 1) // min_blocks + 7) // 8 * 8
        return bm, pl.cdiv(m, bm)
    return m, 1


def pallas_conv_relu_pool(patches, w, b, out_dtype, tm=1024):
    """Fused conv + bias + ReLU + 2x2 maxpool as one lane-dense matmul kernel."""
    m, kp = patches.shape
    bm, nblk = _block_rows(m, tm)
    return pl.pallas_call(
        _conv_relu_pool_kernel,
        out_shape=jax.ShapeDtypeStruct((m, LANES), out_dtype),
        grid=(nblk,),
        in_specs=[
            pl.BlockSpec((bm, kp), lambda i: (i, 0)),       # K = full dim (108/216)
            pl.BlockSpec((kp, LANES), lambda i: (0, 0)),
            pl.BlockSpec((1, LANES), lambda i: (0, 0)),
        ],
        out_specs=pl.BlockSpec((bm, LANES), lambda i: (i, 0)),
        compiler_params=pltpu.CompilerParams(
            dimension_semantics=("parallel",)),
    )(patches, w, b)


def pallas_fc_stack(x, w1, b1, w2, b2, w3, b3, out_dtype, tb=256):
    """fc1+fc2+fc3 fused in one pallas_call; all weights stay resident in VMEM."""
    m, k = x.shape
    bm, nblk = _block_rows(m, tb)
    return pl.pallas_call(
        _fc_stack_kernel,
        out_shape=jax.ShapeDtypeStruct((m, LANES), out_dtype),
        grid=(nblk,),
        in_specs=[
            pl.BlockSpec((bm, k), lambda i: (i, 0)),
            pl.BlockSpec((k, LANES), lambda i: (0, 0)),
            pl.BlockSpec((1, LANES), lambda i: (0, 0)),
            pl.BlockSpec((LANES, LANES), lambda i: (0, 0)),
            pl.BlockSpec((1, LANES), lambda i: (0, 0)),
            pl.BlockSpec((LANES, LANES), lambda i: (0, 0)),
            pl.BlockSpec((1, LANES), lambda i: (0, 0)),
        ],
        out_specs=pl.BlockSpec((bm, LANES), lambda i: (i, 0)),
        compiler_params=pltpu.CompilerParams(
            dimension_semantics=("parallel",)),
    )(x, w1, b1, w2, b2, w3, b3)


# ----------------------------------------------------------------------------
# Parameter re-packing (PyTorch layout -> lane/MXU-friendly tensors).
# Call ONCE per weight set, OUTSIDE the jitted forward, and reuse the result.
# ----------------------------------------------------------------------------
def prepare_params(params, dtype=jnp.bfloat16):
    def conv_prep(w, b):
        cout, cin, k, _ = w.shape
        kk = k + 1                      # 6x6 frame = receptive field of a 2x2 pool window
        kp = cin * kk * kk              # 108 (conv1) / 216 (conv2), left unpadded
        packed = jnp.zeros((kp, LANES), jnp.float32)
        for s, (dy, dx) in enumerate(((0, 0), (0, 1), (1, 0), (1, 1))):
            wf = jnp.zeros((cout, cin, kk, kk), jnp.float32)
            wf = wf.at[:, :, dy:dy + k, dx:dx + k].set(w)
            # feature order (c, kh, kw) matches conv_general_dilated_patches
            packed = packed.at[:, GROUP * s:GROUP * s + cout].set(
                wf.reshape(cout, kp).T)
        b2 = jnp.zeros((1, LANES), jnp.float32).at[0, :cout].set(b)
        return packed.astype(dtype), b2

    p = {}
    p["conv1_w"], p["conv1_b"] = conv_prep(params["conv1_w"], params["conv1_b"])
    p["conv2_w"], p["conv2_b"] = conv_prep(params["conv2_w"], params["conv2_b"])

    # fc1: PyTorch flattens NCHW as (c, h, w); conv2-output rows are r = h*5+w
    # with channels in lanes, so permute the weight to (r, c, out).
    w1 = jnp.transpose(params["fc1_w"].reshape(120, 16, 25), (2, 1, 0))  # (r,c,out)
    w1 = jnp.pad(w1, ((0, 0), (0, 0), (0, LANES - 120)))                 # (25,16,128)
    # Slim variant: consumes the 16 real channels (K = 400).
    p["fc1_w_slim"] = w1.reshape(25 * 16, LANES).astype(dtype)
    # Full variant: consumes the padded 128-lane conv2 output directly
    # (K = 3200); rows for pad lanes are zero, so whatever garbage those lanes
    # carry after the in-kernel shift-max is ignored.
    w1f = jnp.pad(w1, ((0, 0), (0, LANES - 16), (0, 0)))                 # (25,128,128)
    p["fc1_w_full"] = w1f.reshape(25 * LANES, LANES).astype(dtype)
    p["fc1_b"] = jnp.pad(params["fc1_b"],
                         (0, LANES - 120)).reshape(1, LANES).astype(jnp.float32)

    p["fc2_w"] = jnp.pad(params["fc2_w"].T,
                         ((0, LANES - 120), (0, LANES - 84))).astype(dtype)
    p["fc2_b"] = jnp.pad(params["fc2_b"],
                         (0, LANES - 84)).reshape(1, LANES).astype(jnp.float32)
    p["fc3_w"] = jnp.pad(params["fc3_w"].T,
                         ((0, LANES - 84), (0, LANES - 10))).astype(dtype)
    p["fc3_b"] = jnp.pad(params["fc3_b"],
                         (0, LANES - 10)).reshape(1, LANES).astype(jnp.float32)
    return p


# ----------------------------------------------------------------------------
# Forward pass (jit this; `prep` comes from prepare_params, hoisted out).
# ----------------------------------------------------------------------------
def cifar_cnn_forward(prep, x, *, compute_dtype=jnp.bfloat16):
    n = x.shape[0]
    x = x.astype(compute_dtype)
    # Patch extraction is pure data movement; only force an f32 internal path
    # on the f32 compute path (HIGHEST on bf16 would double extraction bytes).
    prec = (lax.Precision.HIGHEST if compute_dtype == jnp.float32
            else lax.Precision.DEFAULT)

    # ---- conv1 + ReLU + 2x2 maxpool (one fused Pallas matmul kernel) ----
    # 6x6 / stride-2 patches = receptive field of one whole pooling window.
    p1 = lax.conv_general_dilated_patches(
        x, (6, 6), (2, 2), "VALID",
        dimension_numbers=("NCHW", "OIHW", "NHWC"),
        precision=prec)                                      # (n, 14, 14, 108)
    p1 = p1.reshape(n * 14 * 14, 3 * 36)                     # K = 108, unpadded
    y1 = pallas_conv_relu_pool(p1, prep["conv1_w"], prep["conv1_b"],
                               compute_dtype)                # (n*196, 128)
    y1 = y1.reshape(n, 14, 14, LANES)[..., :6]               # channels-last

    # ---- conv2 + ReLU + 2x2 maxpool ----
    p2 = lax.conv_general_dilated_patches(
        y1, (6, 6), (2, 2), "VALID",
        dimension_numbers=("NHWC", "HWIO", "NHWC"),
        precision=prec)                                      # (n, 5, 5, 216)
    p2 = p2.reshape(n * 25, 6 * 36)                          # K = 216, unpadded
    y2 = pallas_conv_relu_pool(p2, prep["conv2_w"], prep["conv2_b"],
                               compute_dtype)                # (n*25, 128)

    # ---- fc1 + fc2 + fc3 fused in one Pallas call ----
    if n < 32:
        # Tiny batch: skip the extra slice op; zero fc1 weight rows eat the
        # 128-lane padded activations directly (K = 25*128 = 3200).
        xf = y2.reshape(n, 25 * LANES)
        w1 = prep["fc1_w_full"]
    else:
        # Larger batch: slice to the 16 real channels -> fc1 K drops 3200->400.
        xf = y2.reshape(n, 25, LANES)[:, :, :16].reshape(n, 25 * 16)
        w1 = prep["fc1_w_slim"]
    out = pallas_fc_stack(xf, w1, prep["fc1_b"], prep["fc2_w"], prep["fc2_b"],
                          prep["fc3_w"], prep["fc3_b"], compute_dtype)
    return out[:, :10].astype(jnp.float32)


# ----------------------------------------------------------------------------
# Parameters (PyTorch layouts) + pure-JAX reference
# ----------------------------------------------------------------------------
def init_params(key):
    def uniform(k, shape, fan_in):
        bound = 1.0 / jnp.sqrt(jnp.float32(fan_in))
        return jax.random.uniform(k, shape, jnp.float32, -bound, bound)

    ks = jax.random.split(key, 10)
    return {
        "conv1_w": uniform(ks[0], (6, 3, 5, 5), 75),
        "conv1_b": uniform(ks[1], (6,), 75),
        "conv2_w": uniform(ks[2], (16, 6, 5, 5), 150),
        "conv2_b": uniform(ks[3], (16,), 150),
        "fc1_w": uniform(ks[4], (120, 400), 400),
        "fc1_b": uniform(ks[5], (120,), 400),
        "fc2_w": uniform(ks[6], (84, 120), 120),
        "fc2_b": uniform(ks[7], (84,), 120),
        "fc3_w": uniform(ks[8], (10, 84), 84),
        "fc3_b": uniform(ks[9], (10,), 84),
    }


def reference_forward(params, x):
    dn = ("NCHW", "OIHW", "NCHW")

    def conv(x, w, b):
        y = lax.conv_general_dilated(x, w, (1, 1), "VALID",
                                     dimension_numbers=dn,
                                     precision=lax.Precision.HIGHEST)
        return jax.nn.relu(y + b.reshape(1, -1, 1, 1))

    def pool(x):
        return lax.reduce_window(x, -jnp.inf, lax.max,
                                 (1, 1, 2, 2), (1, 1, 2, 2), "VALID")

    x = pool(conv(x, params["conv1_w"], params["conv1_b"]))
    x = pool(conv(x, params["conv2_w"], params["conv2_b"]))
    x = x.reshape(x.shape[0], -1)                            # NCHW flatten
    hi = lax.Precision.HIGHEST
    x = jax.nn.relu(jnp.dot(x, params["fc1_w"].T, precision=hi) + params["fc1_b"])
    x = jax.nn.relu(jnp.dot(x, params["fc2_w"].T, precision=hi) + params["fc2_b"])
    return jnp.dot(x, params["fc3_w"].T, precision=hi) + params["fc3_b"]


if __name__ == "__main__":
    key = jax.random.PRNGKey(0)
    kp, kx1, kx2 = jax.random.split(key, 3)
    params = init_params(kp)
    # Spatial size is fixed at 32x32 by fc1 (16*5*5).
    x_small = jax.random.normal(kx1, (2, 3, 32, 32), jnp.float32)    # K=3200 fc path
    x_large = jax.random.normal(kx2, (64, 3, 32, 32), jnp.float32)   # K=400 fc path

    ref_fn = jax.jit(reference_forward)

    # f32 compute path (tight tolerance).  prepare_params is hoisted: run once.
    prep_f32 = prepare_params(params, jnp.float32)
    fwd_f32 = jax.jit(functools.partial(cifar_cnn_forward,
                                        compute_dtype=jnp.float32))
    for xb in (x_small, x_large):
        out = jax.block_until_ready(fwd_f32(prep_f32, xb))
        ref = jax.block_until_ready(ref_fn(params, xb))
        assert out.shape == (xb.shape[0], 10), out.shape
        assert jnp.allclose(out, ref, rtol=1e-3, atol=1e-3), (
            float(jnp.max(jnp.abs(out - ref))))

    # bf16 compute path (default; recommended on v6e/v7x).  Accumulation,
    # bias, max and ReLU stay f32 in-kernel.
    prep_bf16 = prepare_params(params, jnp.bfloat16)
    fwd_bf16 = jax.jit(cifar_cnn_forward)
    for xb in (x_small, x_large):
        out = jax.block_until_ready(fwd_bf16(prep_bf16, xb))
        ref = jax.block_until_ready(ref_fn(params, xb))
        assert jnp.allclose(out, ref, rtol=0.1, atol=0.15), (
            float(jnp.max(jnp.abs(out - ref))))

    print("KERNEL_OK")
</pallas_src>

<mosaic_0001>
module attributes {stable_mosaic.version = 11 : i64} {
  func.func @_conv_relu_pool_kernel(%arg0: i32, %arg1: memref<200x108xf32, #tpu.memory_space<vmem>>, %arg2: memref<108x128xf32, #tpu.memory_space<vmem>>, %arg3: memref<1x128xf32, #tpu.memory_space<vmem>>, %arg4: memref<200x128xf32, #tpu.memory_space<vmem>>) attributes {dimension_semantics = [#tpu.dimension_semantics<parallel>], iteration_bounds = array<i64: 2>, scalar_prefetch = 0 : i64, scratch_operands = 0 : i64, tpu.core_type = #tpu.core_type<tc>, window_params = [{transform_indices = @transform_0, window_bounds = array<i64: 200, 108>}, {pipeline_mode = #tpu.pipeline_mode<synchronous>, transform_indices = @transform_1, window_bounds = array<i64: 108, 128>}, {pipeline_mode = #tpu.pipeline_mode<synchronous>, transform_indices = @transform_2, window_bounds = array<i64: 1, 128>}, {transform_indices = @transform_3, window_bounds = array<i64: 200, 128>}]} {
    %c0 = arith.constant 0 : index
    %c0_0 = arith.constant 0 : index
    %0 = vector.load %arg1[%c0, %c0_0] : memref<200x108xf32, #tpu.memory_space<vmem>>, vector<200x108xf32>
    %c0_1 = arith.constant 0 : index
    %c0_2 = arith.constant 0 : index
    %1 = vector.load %arg2[%c0_1, %c0_2] : memref<108x128xf32, #tpu.memory_space<vmem>>, vector<108x128xf32>
    %cst = arith.constant dense<0.000000e+00> : vector<200x128xf32>
    %2 = tpu.matmul %0, %1, %cst {dimension_numbers = #tpu.dot_dimension_numbers<[1], [0], [0], [1], [0, 0, 1, 1], [], []>} : vector<200x108xf32>, vector<108x128xf32>, vector<200x128xf32> -> vector<200x128xf32>
    %c64_i32 = arith.constant 64 : i32
    %3 = tpu.dynamic_rotate %2 by %c64_i32 dim 1 : vector<200x128xf32>, i32 -> vector<200x128xf32>
    %4 = arith.maximumf %2, %3 : vector<200x128xf32>
    %c32_i32 = arith.constant 32 : i32
    %5 = tpu.dynamic_rotate %4 by %c32_i32 dim 1 : vector<200x128xf32>, i32 -> vector<200x128xf32>
    %6 = arith.maximumf %4, %5 : vector<200x128xf32>
    %c0_3 = arith.constant 0 : index
    %c0_4 = arith.constant 0 : index
    %7 = vector.load %arg3[%c0_3, %c0_4] : memref<1x128xf32, #tpu.memory_space<vmem>>, vector<1x128xf32>
    %8 = vector.broadcast %7 : vector<1x128xf32> to vector<200x128xf32>
    %9 = arith.addf %6, %8 : vector<200x128xf32>
    %cst_5 = arith.constant 0.000000e+00 : f32
    %10 = vector.broadcast %cst_5 : f32 to vector<200x128xf32>
    %11 = arith.maximumf %9, %10 : vector<200x128xf32>
    %c0_6 = arith.constant 0 : index
    %c0_7 = arith.constant 0 : index
    %12 = vector.load %arg4[%c0_6, %c0_7] : memref<200x128xf32, #tpu.memory_space<vmem>>, vector<200x128xf32>
    tpu.vector_store %arg4[%c0_6, %c0_7], %11 {strides = array<i32>} : memref<200x128xf32, #tpu.memory_space<vmem>>, vector<200x128xf32>,
    return
  }
  func.func @transform_0(%arg0: i32) -> (i32, i32) {
    %c0_i32 = arith.constant 0 : i32
    %c0_i32_0 = arith.constant 0 : i32
    return %arg0, %c0_i32 : i32, i32
  }
  func.func @transform_1(%arg0: i32) -> (i32, i32) {
    %c0_i32 = arith.constant 0 : i32
    %c0_i32_0 = arith.constant 0 : i32
    %c0_i32_1 = arith.constant 0 : i32
    return %c0_i32, %c0_i32_0 : i32, i32
  }
  func.func @transform_2(%arg0: i32) -> (i32, i32) {
    %c0_i32 = arith.constant 0 : i32
    %c0_i32_0 = arith.constant 0 : i32
    %c0_i32_1 = arith.constant 0 : i32
    return %c0_i32, %c0_i32_0 : i32, i32
  }
  func.func @transform_3(%arg0: i32) -> (i32, i32) {
    %c0_i32 = arith.constant 0 : i32
    %c0_i32_0 = arith.constant 0 : i32
    return %arg0, %c0_i32 : i32, i32
  }
}

module attributes {stable_mosaic.version = 11 : i64} {
  func.func @_conv_relu_pool_kernel(%arg0: i32, %arg1: memref<32x216xf32, #tpu.memory_space<vmem>>, %arg2: memref<216x128xf32, #tpu.memory_space<vmem>>, %arg3: memref<1x128xf32, #tpu.memory_space<vmem>>, %arg4: memref<32x128xf32, #tpu.memory_space<vmem>>) attributes {dimension_semantics = [#tpu.dimension_semantics<parallel>], iteration_bounds = array<i64: 2>, scalar_prefetch = 0 : i64, scratch_operands = 0 : i64, tpu.core_type = #tpu.core_type<tc>, window_params = [{transform_indices = @transform_0, window_bounds = array<i64: 32, 216>}, {pipeline_mode = #tpu.pipeline_mode<synchronous>, transform_indices = @transform_1, window_bounds = array<i64: 216, 128>}, {pipeline_mode = #tpu.pipeline_mode<synchronous>, transform_indices = @transform_2, window_bounds = array<i64: 1, 128>}, {transform_indices = @transform_3, window_bounds = array<i64: 32, 128>}]} {
    %c0 = arith.constant 0 : index
    %c0_0 = arith.constant 0 : index
    %0 = vector.load %arg1[%c0, %c0_0] : memref<32x216xf32, #tpu.memory_space<vmem>>, vector<32x216xf32>
    %c0_1 = arith.constant 0 : index
    %c0_2 = arith.constant 0 : index
    %1 = vector.load %arg2[%c0_1, %c0_2] : memref<216x128xf32, #tpu.memory_space<vmem>>, vector<216x128xf32>
    %cst = arith.constant dense<0.000000e+00> : vector<32x128xf32>
    %2 = tpu.matmul %0, %1, %cst {dimension_numbers = #tpu.dot_dimension_numbers<[1], [0], [0], [1], [0, 0, 1, 1], [], []>} : vector<32x216xf32>, vector<216x128xf32>, vector<32x128xf32> -> vector<32x128xf32>
    %c64_i32 = arith.constant 64 : i32
    %3 = tpu.dynamic_rotate %2 by %c64_i32 dim 1 : vector<32x128xf32>, i32 -> vector<32x128xf32>
    %4 = arith.maximumf %2, %3 : vector<32x128xf32>
    %c32_i32 = arith.constant 32 : i32
    %5 = tpu.dynamic_rotate %4 by %c32_i32 dim 1 : vector<32x128xf32>, i32 -> vector<32x128xf32>
    %6 = arith.maximumf %4, %5 : vector<32x128xf32>
    %c0_3 = arith.constant 0 : index
    %c0_4 = arith.constant 0 : index
    %7 = vector.load %arg3[%c0_3, %c0_4] : memref<1x128xf32, #tpu.memory_space<vmem>>, vector<1x128xf32>
    %8 = vector.broadcast %7 : vector<1x128xf32> to vector<32x128xf32>
    %9 = arith.addf %6, %8 : vector<32x128xf32>
    %cst_5 = arith.constant 0.000000e+00 : f32
    %10 = vector.broadcast %cst_5 : f32 to vector<32x128xf32>
    %11 = arith.maximumf %9, %10 : vector<32x128xf32>
    %c0_6 = arith.constant 0 : index
    %c0_7 = arith.constant 0 : index
    %12 = vector.load %arg4[%c0_6, %c0_7] : memref<32x128xf32, #tpu.memory_space<vmem>>, vector<32x128xf32>
    tpu.vector_store %arg4[%c0_6, %c0_7], %11 {strides = array<i32>} : memref<32x128xf32, #tpu.memory_space<vmem>>, vector<32x128xf32>,
    return
  }
  func.func @transform_0(%arg0: i32) -> (i32, i32) {
    %c0_i32 = arith.constant 0 : i32
    %c0_i32_0 = arith.constant 0 : i32
    return %arg0, %c0_i32 : i32, i32
  }
  func.func @transform_1(%arg0: i32) -> (i32, i32) {
    %c0_i32 = arith.constant 0 : i32
    %c0_i32_0 = arith.constant 0 : i32
    %c0_i32_1 = arith.constant 0 : i32
    return %c0_i32, %c0_i32_0 : i32, i32
  }
  func.func @transform_2(%arg0: i32) -> (i32, i32) {
    %c0_i32 = arith.constant 0 : i32
    %c0_i32_0 = arith.constant 0 : i32
    %c0_i32_1 = arith.constant 0 : i32
    return %c0_i32, %c0_i32_0 : i32, i32
  }
  func.func @transform_3(%arg0: i32) -> (i32, i32) {
    %c0_i32 = arith.constant 0 : i32
    %c0_i32_0 = arith.constant 0 : i32
    return %arg0, %c0_i32 : i32, i32
  }
}

module attributes {stable_mosaic.version = 11 : i64} {
  func.func @_fc_stack_kernel(%arg0: i32, %arg1: memref<2x3200xf32, #tpu.memory_space<vmem>>, %arg2: memref<3200x128xf32, #tpu.memory_space<vmem>>, %arg3: memref<1x128xf32, #tpu.memory_space<vmem>>, %arg4: memref<128x128xf32, #tpu.memory_space<vmem>>, %arg5: memref<1x128xf32, #tpu.memory_space<vmem>>, %arg6: memref<128x128xf32, #tpu.memory_space<vmem>>, %arg7: memref<1x128xf32, #tpu.memory_space<vmem>>, %arg8: memref<2x128xf32, #tpu.memory_space<vmem>>) attributes {dimension_semantics = [#tpu.dimension_semantics<parallel>], iteration_bounds = array<i64: 1>, scalar_prefetch = 0 : i64, scratch_operands = 0 : i64, tpu.core_type = #tpu.core_type<tc>, window_params = [{transform_indices = @transform_0, window_bounds = array<i64: 2, 3200>}, {pipeline_mode = #tpu.pipeline_mode<synchronous>, transform_indices = @transform_1, window_bounds = array<i64: 3200, 128>}, {pipeline_mode = #tpu.pipeline_mode<synchronous>, transform_indices = @transform_2, window_bounds = array<i64: 1, 128>}, {pipeline_mode = #tpu.pipeline_mode<synchronous>, transform_indices = @transform_3, window_bounds = array<i64: 128, 128>}, {pipeline_mode = #tpu.pipeline_mode<synchronous>, transform_indices = @transform_4, window_bounds = array<i64: 1, 128>}, {pipeline_mode = #tpu.pipeline_mode<synchronous>, transform_indices = @transform_5, window_bounds = array<i64: 128, 128>}, {pipeline_mode = #tpu.pipeline_mode<synchronous>, transform_indices = @transform_6, window_bounds = array<i64: 1, 128>}, {transform_indices = @transform_7, window_bounds = array<i64: 2, 128>}]} {
    %c0 = arith.constant 0 : index
    %c0_0 = arith.constant 0 : index
    %0 = vector.load %arg1[%c0, %c0_0] : memref<2x3200xf32, #tpu.memory_space<vmem>>, vector<2x3200xf32>
    %c0_1 = arith.constant 0 : index
    %c0_2 = arith.constant 0 : index
    %1 = vector.load %arg2[%c0_1, %c0_2] : memref<3200x128xf32, #tpu.memory_space<vmem>>, vector<3200x128xf32>
    %cst = arith.constant dense<0.000000e+00> : vector<2x128xf32>
    %2 = tpu.matmul %0, %1, %cst {dimension_numbers = #tpu.dot_dimension_numbers<[1], [0], [0], [1], [0, 0, 1, 1], [], []>} : vector<2x3200xf32>, vector<3200x128xf32>, vector<2x128xf32> -> vector<2x128xf32>
    %c0_3 = arith.constant 0 : index
    %c0_4 = arith.constant 0 : index
    %3 = vector.load %arg3[%c0_3, %c0_4] : memref<1x128xf32, #tpu.memory_space<vmem>>, vector<1x128xf32>
    %4 = vector.broadcast %3 : vector<1x128xf32> to vector<2x128xf32>
    %5 = arith.addf %2, %4 : vector<2x128xf32>
    %cst_5 = arith.constant 0.000000e+00 : f32
    %6 = vector.broadcast %cst_5 : f32 to vector<2x128xf32>
    %7 = arith.maximumf %5, %6 : vector<2x128xf32>
    %c0_6 = arith.constant 0 : index
    %c0_7 = arith.constant 0 : index
    %8 = vector.load %arg4[%c0_6, %c0_7] : memref<128x128xf32, #tpu.memory_space<vmem>>, vector<128x128xf32>
    %cst_8 = arith.constant dense<0.000000e+00> : vector<2x128xf32>
    %9 = tpu.matmul %7, %8, %cst_8 {dimension_numbers = #tpu.dot_dimension_numbers<[1], [0], [0], [1], [0, 0, 1, 1], [], []>} : vector<2x128xf32>, vector<128x128xf32>, vector<2x128xf32> -> vector<2x128xf32>
    %c0_9 = arith.constant 0 : index
    %c0_10 = arith.constant 0 : index
    %10 = vector.load %arg5[%c0_9, %c0_10] : memref<1x128xf32, #tpu.memory_space<vmem>>, vector<1x128xf32>
    %11 = vector.broadcast %10 : vector<1x128xf32> to vector<2x128xf32>
    %12 = arith.addf %9, %11 : vector<2x128xf32>
    %cst_11 = arith.constant 0.000000e+00 : f32
    %13 = vector.broadcast %cst_11 : f32 to vector<2x128xf32>
    %14 = arith.maximumf %12, %13 : vector<2x128xf32>
    %c0_12 = arith.constant 0 : index
    %c0_13 = arith.constant 0 : index
    %15 = vector.load %arg6[%c0_12, %c0_13] : memref<128x128xf32, #tpu.memory_space<vmem>>, vector<128x128xf32>
    %cst_14 = arith.constant dense<0.000000e+00> : vector<2x128xf32>
    %16 = tpu.matmul %14, %15, %cst_14 {dimension_numbers = #tpu.dot_dimension_numbers<[1], [0], [0], [1], [0, 0, 1, 1], [], []>} : vector<2x128xf32>, vector<128x128xf32>, vector<2x128xf32> -> vector<2x128xf32>
    %c0_15 = arith.constant 0 : index
    %c0_16 = arith.constant 0 : index
    %17 = vector.load %arg7[%c0_15, %c0_16] : memref<1x128xf32, #tpu.memory_space<vmem>>, vector<1x128xf32>
    %18 = vector.broadcast %17 : vector<1x128xf32> to vector<2x128xf32>
    %19 = arith.addf %16, %18 : vector<2x128xf32>
    %c0_17 = arith.constant 0 : index
    %c0_18 = arith.constant 0 : index
    %20 = vector.load %arg8[%c0_17, %c0_18] : memref<2x128xf32, #tpu.memory_space<vmem>>, vector<2x128xf32>
    tpu.vector_store %arg8[%c0_17, %c0_18], %19 {strides = array<i32>} : memref<2x128xf32, #tpu.memory_space<vmem>>, vector<2x128xf32>,
    return
  }
  func.func @transform_0(%arg0: i32) -> (i32, i32) {
    %c0_i32 = arith.constant 0 : i32
    %c0_i32_0 = arith.constant 0 : i32
    return %arg0, %c0_i32 : i32, i32
  }
  func.func @transform_1(%arg0: i32) -> (i32, i32) {
    %c0_i32 = arith.constant 0 : i32
    %c0_i32_0 = arith.constant 0 : i32
    %c0_i32_1 = arith.constant 0 : i32
    return %c0_i32, %c0_i32_0 : i32, i32
  }
  func.func @transform_2(%arg0: i32) -> (i32, i32) {
    %c0_i32 = arith.constant 0 : i32
    %c0_i32_0 = arith.constant 0 : i32
    %c0_i32_1 = arith.constant 0 : i32
    return %c0_i32, %c0_i32_0 : i32, i32
  }
  func.func @transform_3(%arg0: i32) -> (i32, i32) {
    %c0_i32 = arith.constant 0 : i32
    %c0_i32_0 = arith.constant 0 : i32
    %c0_i32_1 = arith.constant 0 : i32
    return %c0_i32, %c0_i32_0 : i32, i32
  }
  func.func @transform_4(%arg0: i32) -> (i32, i32) {
    %c0_i32 = arith.constant 0 : i32
    %c0_i32_0 = arith.constant 0 : i32
    %c0_i32_1 = arith.constant 0 : i32
    return %c0_i32, %c0_i32_0 : i32, i32
  }
  func.func @transform_5(%arg0: i32) -> (i32, i32) {
    %c0_i32 = arith.constant 0 : i32
    %c0_i32_0 = arith.constant 0 : i32
    %c0_i32_1 = arith.constant 0 : i32
    return %c0_i32, %c0_i32_0 : i32, i32
  }
  func.func @transform_6(%arg0: i32) -> (i32, i32) {
    %c0_i32 = arith.constant 0 : i32
    %c0_i32_0 = arith.constant 0 : i32
    %c0_i32_1 = arith.constant 0 : i32
    return %c0_i32, %c0_i32_0 : i32, i32
  }
  func.func @transform_7(%arg0: i32) -> (i32, i32) {
    %c0_i32 = arith.constant 0 : i32
    %c0_i32_0 = arith.constant 0 : i32
    return %arg0, %c0_i32 : i32, i32
  }
}

</mosaic_0001>

<bundles_post_ra>
// kernel: cifar_cnn_forward.3
= control target key start
LH: loop header
LB: loop body
LE: loop exit
PB: predicated region body
PF: predicated region fallthrough
CT: control target
= control target key end

     0   :  { %s1472_s12 = smov 0   ;;  %s1474_s13 = smov 0   ;;  %s2106_s0 = inlined_call_operand.vmem [shape: f32[392,108], index: 0, kind: input, shape index: {}]   ;;  %s2107_s1 = inlined_call_operand.vmem [shape: f32[108,128], index: 1, kind: input, shape index: {}]   ;;  %s2108_s2 = inlined_call_operand.vmem [shape: f32[1,128], index: 2, kind: input, shape index: {}]   ;;  %s2109_s3 = inlined_call_operand.vmem [shape: f32[392,128], index: 3, kind: output, shape index: {}]  }
   0x1   :  { %s1476_s14 = smov 0  }
   0x2 LB: > { %s1485_s15 = sadd.s32 4294967295, %s1414_s14   ;;  %s1487_s16 = sadd.s32 1, %s1414_s14   ;;  %s1414_s14 = sphi %s1476_s14, %s2118_s14   ;;  %s1410_s13 = sphi %s1474_s13, %s2117_s13   ;;  %s1406_s12 = sphi %s1472_s12, %s2116_s12  }
   0x3   : > { %s85_s17 = ssub.s32 %s1414_s14, %s1487_s16  ;;  %s88_s18 = sadd.s32 1, %s1410_s13 }
   0x4   : > { %p86_p0 = scmp.eq.s32.totalorder %s85_s17, 0  ;;  %p98_p1 = scmp.ne.s32.totalorder %s1410_s13, %s1406_s12 }
   0x5   : > { %p99_p2 = scmp.eq.s32.totalorder %s1485_s15, 1  ;;  %p1050_p3 = scmp.ge.s32.totalorder %s1414_s14, 1 }
   0x6   : > { %s1495_s19 = scalar_select %p86_p0, %s1410_s13, %s88_s18  }
   0x7   : > { %p1497_p4 = por %p99_p2, %p98_p1  ;;  %p146_p5 = scmp.lt.s32.totalorder %s1414_s14, 3 }
   0x9   : > { %p147_p6 = pnand %p1050_p3, %p146_p5 }
   0xa   : > { %s1530_s6 = smul.u32 (!%p147_p6), 25, %s1485_s15  ;;  %s1450_s8 = smov (!%p147_p6), 64  }
   0xb   : > { %150 = sbr.rel (%p147_p6) target bundleno = 589 (0x24d), region = 32  ;;  %s1451_s9 = smov (!%p147_p6), 32  }
   0xc   : > { %p178_p7 = scmp.lt.s32.totalorder (!%p147_p6), %s1530_s6, 48  ;;  %s170_s10 = sand.u32 (!%p147_p6), 1, %s1406_s12  }
   0xd   : > { %s1262_s17 = smul.u32 (!%p147_p6), 200, %s170_s10 }
   0xf   : > { %s1917_s12 = scalar_lea.vmem (!%p147_p6), [#allocation2], %s1262_s17  }
  0x10   : > { %v230_v0 = vld [vmem:[%s2107_s1 + $0x68] sm:$0xf]  ;;  %vm307_vm0 = vcmask 1043456   ;;  %v1448_v1 = vmov 0.0   ;;  %v229_v2 = vld [vmem:[%s2107_s1 + $0x60] sm:$0xff]  ;;  %v228_v3 = vld [vmem:[%s2107_s1 + $0x58] sm:$0xff] }
  0x11   : > { %1131 = vmatprep.subr.mxu0 %v1448_v1  ;;  %1234 = vmatprep.subr.mxu1 %v1448_v1  ;;  %v227_v4 = vld [vmem:[%s2107_s1 + $0x50] sm:$0xff]  ;;  %v226_v5 = vld [vmem:[%s2107_s1 + $0x48] sm:$0xff]  ;;  %v225_v6 = vld [vmem:[%s2107_s1 + $0x40] sm:$0xff]  ;;  %s179_s21 = scalar_select %p178_p7, %s1530_s6, 48  ;;  %vm231_vm1 = vcmask 883712   ;;  %vm1449_vm2 = vmmov 0  }
  0x12   : > { %1132 = vmatpush3.msk.msra.mxu0 %vm307_vm0, %v230_v0  ;;  %1248 = vmatpush3.msk.msra.mxu1 %vm307_vm0, %v230_v0  ;;  %v224_v7 = vld [vmem:[%s2107_s1 + $0x38] sm:$0xff]  ;;  %v223_v8 = vld [vmem:[%s2107_s1 + $0x30] sm:$0xff]  ;;  %v222_v9 = vld [vmem:[%s2107_s1 + $0x28] sm:$0xff]  ;;  %s741_s18 = ssub.s32 (%p1497_p4), 49, %s1530_s6 }
  0x13   : > { %1133 = vmatprep.subr.mxu0 %v1448_v1  ;;  %1235 = vmatprep.subr.mxu1 %v1448_v1  ;;  %v221_v10 = vld [vmem:[%s2107_s1 + $0x20] sm:$0xff]  ;;  %v220_v11 = vld [vmem:[%s2107_s1 + $0x18] sm:$0xff]  ;;  %v219_v12 = vld [vmem:[%s2107_s1 + $0x10] sm:$0xff]  ;;  %s1051_s26 = sshll.u32 %s179_s21, 3  ;;  %s1091_s21 = smul.u32 (%p1497_p4), 200, %s1485_s15 }
  0x14   : > { %1134 = vmatpush3.msra.mxu0 %v229_v2  ;;  %1249 = vmatpush3.msra.mxu1 %v229_v2  ;;  %v218_v13 = vld [vmem:[%s2107_s1 + $0x8] sm:$0xff]  ;;  %s1572_s4 = scalar_lea.vmem %s2106_s0, %s1051_s26  ;;  %v217_v14 = vld [vmem:[%s2107_s1] sm:$0xff]  ;;  %p742_p8 = scmp.lt.s32.totalorder (%p1497_p4), %s741_s18, 25 }
  0x15   : > { %1135 = vmatprep.subr.mxu0 %v1448_v1  ;;  %1236 = vmatprep.subr.mxu1 %v1448_v1  ;;  %v192_v15 = vld [vmem:[%s1572_s4] sm:$0xff]  ;;  %v205_v16 = vld [vmem:[%s1572_s4 + $0x68] sm:$0xff]  ;;  %v206_v18 = vld [vmem:[%s1572_s4 + $0x70] sm:$0xff]  ;;  %s1996_s24 = scalar_lea.vmem (%p1497_p4), %s2109_s3, %s1091_s21  }
  0x16   : > { %1136 = vmatpush3.msra.mxu0 %v228_v3  ;;  %1250 = vmatpush3.msra.mxu1 %v228_v3  ;;  %v193_v17 = vld [vmem:[%s1572_s4 + $0x8] sm:$0xff]  ;;  %v194_v19 = vld [vmem:[%s1572_s4 + $0x10] sm:$0xff]  ;;  %v207_v20 = vld [vmem:[%s1572_s4 + $0x78] sm:$0xff] }
  0x17   : > { %1137 = vmatprep.subr.mxu0 %v1448_v1  ;;  %1237 = vmatprep.subr.mxu1 %v1448_v1  ;;  %v195_v21 = vld [vmem:[%s1572_s4 + $0x18] sm:$0xff]  ;;  %v208_v22 = vld [vmem:[%s1572_s4 + $0x80] sm:$0xff]  ;;  %v209_v24 = vld [vmem:[%s1572_s4 + $0x88] sm:$0xff] }
  0x18   : > { %1138 = vmatpush3.msra.mxu0 %v227_v4  ;;  %1251 = vmatpush3.msra.mxu1 %v227_v4  ;;  %v196_v23 = vld [vmem:[%s1572_s4 + $0x20] sm:$0xff]  ;;  %v197_v25 = vld [vmem:[%s1572_s4 + $0x28] sm:$0xff]  ;;  %v210_v26 = vld [vmem:[%s1572_s4 + $0x90] sm:$0xff] }
  0x19   : > { %1139 = vmatprep.subr.mxu0 %v1448_v1  ;;  %1238 = vmatprep.subr.mxu1 %v1448_v1  ;;  %v198_v27 = vld [vmem:[%s1572_s4 + $0x30] sm:$0xff]  ;;  %v211_v28 = vld [vmem:[%s1572_s4 + $0x98] sm:$0xff]  ;;  %v212_v30 = vld [vmem:[%s1572_s4 + $0xa0] sm:$0xff] }
  0x1a   : > { %1140 = vmatpush3.msra.mxu0 %v226_v5  ;;  %1252 = vmatpush3.msra.mxu1 %v226_v5  ;;  %v199_v29 = vld [vmem:[%s1572_s4 + $0x38] sm:$0xff]  ;;  %v200_v31 = vld [vmem:[%s1572_s4 + $0x40] sm:$0xff]  ;;  %v213_v32 = vld [vmem:[%s1572_s4 + $0xa8] sm:$0xff] }
  0x1b   : > { %1141 = vmatprep.subr.mxu0 %v1448_v1  ;;  %1239 = vmatprep.subr.mxu1 %v1448_v1  ;;  %v201_v33 = vld [vmem:[%s1572_s4 + $0x48] sm:$0xff]  ;;  %v214_v34 = vld [vmem:[%s1572_s4 + $0xb0] sm:$0xff]  ;;  %v215_v36 = vld [vmem:[%s1572_s4 + $0xb8] sm:$0xff] }
  0x1c   : > { %1142 = vmatpush3.msra.mxu0 %v225_v6  ;;  %1253 = vmatpush3.msra.mxu1 %v225_v6  ;;  %v202_v35 = vld [vmem:[%s1572_s4 + $0x50] sm:$0xff]  ;;  %v203_v37 = vld [vmem:[%s1572_s4 + $0x58] sm:$0xff]  ;;  %v216_v38 = vld [vmem:[%s1572_s4 + $0xc0] sm:$0xff] }
  0x1d   : > { %1143 = vmatprep.subr.mxu0 %v1448_v1  ;;  %1240 = vmatprep.subr.mxu1 %v1448_v1  ;;  %v204_v39 = vld [vmem:[%s1572_s4 + $0x60] sm:$0xff] }
  0x1e   : > { %1144 = vmatpush3.msra.mxu0 %v224_v7  ;;  %1254 = vmatpush3.msra.mxu1 %v224_v7 }
  0x1f   : > { %1145 = vmatprep.subr.mxu0 %v1448_v1  ;;  %1241 = vmatprep.subr.mxu1 %v1448_v1 }
  0x20   : > { %1146 = vmatpush3.msra.mxu0 %v223_v8  ;;  %1255 = vmatpush3.msra.mxu1 %v223_v8 }
  0x21   : > { %1147 = vmatprep.subr.mxu0 %v1448_v1  ;;  %1242 = vmatprep.subr.mxu1 %v1448_v1 }
  0x22   : > { %1148 = vmatpush3.msra.mxu0 %v222_v9  ;;  %1256 = vmatpush3.msra.mxu1 %v222_v9 }
  0x23   : > { %1149 = vmatprep.subr.mxu0 %v1448_v1  ;;  %1243 = vmatprep.subr.mxu1 %v1448_v1 }
  0x24   : > { %1150 = vmatpush3.msra.mxu0 %v221_v10  ;;  %1257 = vmatpush3.msra.mxu1 %v221_v10 }
  0x25   : > { %1151 = vmatprep.subr.mxu0 %v1448_v1  ;;  %1244 = vmatprep.subr.mxu1 %v1448_v1 }
  0x26   : > { %1152 = vmatpush3.msra.mxu0 %v220_v11  ;;  %1258 = vmatpush3.msra.mxu1 %v220_v11 }
  0x27   : > { %1153 = vmatprep.subr.mxu0 %v1448_v1  ;;  %1245 = vmatprep.subr.mxu1 %v1448_v1 }
  0x28   : > { %1154 = vmatpush3.msra.mxu0 %v219_v12  ;;  %1259 = vmatpush3.msra.mxu1 %v219_v12 }
  0x29   : > { %1155 = vmatprep.subr.mxu0 %v1448_v1  ;;  %1246 = vmatprep.subr.mxu1 %v1448_v1 }
  0x2a   : > { %1156 = vmatpush3.msra.mxu0 %v218_v13  ;;  %1260 = vmatpush3.msra.mxu1 %v218_v13 }
  0x2b   : > { %1157 = vmatprep.subr.mxu0 %v1448_v1  ;;  %1247 = vmatprep.subr.mxu1 %v1448_v1 }
  0x2c   : > { %1158 = vmatpush3.msra.mxu0 %v217_v14  ;;  %1261 = vmatpush3.msra.mxu1 %v217_v14 }
  0x2d   : > { %1159 = vmatprep.mubr.msk.f32.mxu0 %vm1449_vm2, %v1448_v1  ;;  %1198 = vmatprep.mubr.msk.f32.mxu1 %vm1449_vm2, %v1448_v1 }
  0x2e   : > { %1160 = vmatmul.mubr.msk.f32.vlgmr.msra.gmra.mxu0 %vm231_vm1, %v192_v15  ;;  %1199 = vmatmul.mubr.msk.f32.vlgmr.msra.gmra.mxu1 %vm231_vm1, %v205_v16 }
  0x2f   : > { %1162 = vmatprep.mubr.msk.f32.mxu0 %vm1449_vm2, %v1448_v1  ;;  %1201 = vmatprep.mubr.msk.f32.mxu1 %vm1449_vm2, %v1448_v1 }
  0x32   : > { %1163 = vmatmul.mubr.msk.f32.gmra.mxu0 %vm231_vm1, %v193_v17  ;;  %1202 = vmatmul.mubr.msk.f32.gmra.mxu1 %vm231_vm1, %v206_v18 }
  0x33   : > { %1165 = vmatprep.mubr.msk.f32.mxu0 %vm1449_vm2, %v1448_v1  ;;  %1204 = vmatprep.mubr.msk.f32.mxu1 %vm1449_vm2, %v1448_v1 }
  0x36   : > { %1166 = vmatmul.mubr.msk.f32.gmra.mxu0 %vm231_vm1, %v194_v19  ;;  %1205 = vmatmul.mubr.msk.f32.gmra.mxu1 %vm231_vm1, %v207_v20 }
  0x37   : > { %1168 = vmatprep.mubr.msk.f32.mxu0 %vm1449_vm2, %v1448_v1  ;;  %1207 = vmatprep.mubr.msk.f32.mxu1 %vm1449_vm2, %v1448_v1 }
  0x3a   : > { %1169 = vmatmul.mubr.msk.f32.gmra.mxu0 %vm231_vm1, %v195_v21  ;;  %1208 = vmatmul.mubr.msk.f32.gmra.mxu1 %vm231_vm1, %v208_v22 }
  0x3b   : > { %1171 = vmatprep.mubr.msk.f32.mxu0 %vm1449_vm2, %v1448_v1  ;;  %1210 = vmatprep.mubr.msk.f32.mxu1 %vm1449_vm2, %v1448_v1 }
  0x3e   : > { %1172 = vmatmul.mubr.msk.f32.gmra.mxu0 %vm231_vm1, %v196_v23  ;;  %1211 = vmatmul.mubr.msk.f32.gmra.mxu1 %vm231_vm1, %v209_v24 }
  0x3f   : > { %1174 = vmatprep.mubr.msk.f32.mxu0 %vm1449_vm2, %v1448_v1  ;;  %1213 = vmatprep.mubr.msk.f32.mxu1 %vm1449_vm2, %v1448_v1 }
  0x42   : > { %1175 = vmatmul.mubr.msk.f32.gmra.mxu0 %vm231_vm1, %v197_v25  ;;  %1214 = vmatmul.mubr.msk.f32.gmra.mxu1 %vm231_vm1, %v210_v26 }
  0x43   : > { %1177 = vmatprep.mubr.msk.f32.mxu0 %vm1449_vm2, %v1448_v1  ;;  %1216 = vmatprep.mubr.msk.f32.mxu1 %vm1449_vm2, %v1448_v1 }
  0x46   : > { %1178 = vmatmul.mubr.msk.f32.gmra.mxu0 %vm231_vm1, %v198_v27  ;;  %1217 = vmatmul.mubr.msk.f32.gmra.mxu1 %vm231_vm1, %v211_v28 }
  0x47   : > { %1180 = vmatprep.mubr.msk.f32.mxu0 %vm1449_vm2, %v1448_v1  ;;  %1219 = vmatprep.mubr.msk.f32.mxu1 %vm1449_vm2, %v1448_v1 }
  0x4a   : > { %1181 = vmatmul.mubr.msk.f32.gmra.mxu0 %vm231_vm1, %v199_v29  ;;  %1220 = vmatmul.mubr.msk.f32.gmra.mxu1 %vm231_vm1, %v212_v30 }
  0x4b   : > { %1183 = vmatprep.mubr.msk.f32.mxu0 %vm1449_vm2, %v1448_v1  ;;  %1222 = vmatprep.mubr.msk.f32.mxu1 %vm1449_vm2, %v1448_v1 }
  0x4e   : > { %1184 = vmatmul.mubr.msk.f32.gmra.mxu0 %vm231_vm1, %v200_v31  ;;  %1223 = vmatmul.mubr.msk.f32.gmra.mxu1 %vm231_vm1, %v213_v32 }
  0x4f   : > { %1186 = vmatprep.mubr.msk.f32.mxu0 %vm1449_vm2, %v1448_v1  ;;  %1225 = vmatprep.mubr.msk.f32.mxu1 %vm1449_vm2, %v1448_v1 }
  0x52   : > { %1187 = vmatmul.mubr.msk.f32.gmra.mxu0 %vm231_vm1, %v201_v33  ;;  %1226 = vmatmul.mubr.msk.f32.gmra.mxu1 %vm231_vm1, %v214_v34 }
  0x53   : > { %1189 = vmatprep.mubr.msk.f32.mxu0 %vm1449_vm2, %v1448_v1  ;;  %1228 = vmatprep.mubr.msk.f32.mxu1 %vm1449_vm2, %v1448_v1 }
  0x56   : > { %1190 = vmatmul.mubr.msk.f32.gmra.mxu0 %vm231_vm1, %v202_v35  ;;  %1229 = vmatmul.mubr.msk.f32.gmra.mxu1 %vm231_vm1, %v215_v36 }
  0x57   : > { %1192 = vmatprep.mubr.msk.f32.mxu0 %vm1449_vm2, %v1448_v1  ;;  %1231 = vmatprep.mubr.msk.f32.mxu1 %vm1449_vm2, %v1448_v1 }
  0x5a   : > { %1193 = vmatmul.mubr.msk.f32.gmra.mxu0 %vm231_vm1, %v203_v37  ;;  %1232 = vmatmul.mubr.msk.f32.gmra.mxu1 %vm231_vm1, %v216_v38 }
  0x5b   : > { %1195 = vmatprep.mubr.msk.f32.mxu0 %vm1449_vm2, %v1448_v1 }
  0x5e   : > { %1196 = vmatmul.mubr.msk.f32.gmra.mxu0 %vm231_vm1, %v204_v39 }
  0xee   : > { %v1681_v40 = vpop.f32.mrf.mxu0  ;;  %v1683_v41 = vpop.f32.mrf.mxu1 }
  0xef   : > { %527 = vrot.lane.b32.xlu1 %v1683_v41, %s1450_s8  ;;  %501 = vrot.lane.b32.xlu0 %v1681_v40, %s1450_s8 }
  0xf0   : > { %v1161_v42 = vpop.f32.mrf.mxu0  ;;  %v1200_v43 = vpop.f32.mrf.mxu1 }
  0xf2   : > { %v1689_v44 = vpop.f32.mrf.mxu0  ;;  %v1691_v45 = vpop.f32.mrf.mxu1 }
  0xf3   : > { %503 = vrot.lane.b32.xlu0 %v1689_v44, %s1450_s8 }
  0xf4   : > { %v1164_v46 = vpop.f32.mrf.mxu0  ;;  %v1203_v47 = vpop.f32.mrf.mxu1 }
  0xf6   : > { %v1695_v48 = vpop.f32.mrf.mxu0  ;;  %v1697_v49 = vpop.f32.mrf.mxu1 }
  0xf7   : > { %529 = vrot.lane.b32.xlu0 %v1691_v45, %s1450_s8  ;;  %505 = vrot.lane.b32.xlu1 %v1695_v48, %s1450_s8 }
  0xf8   : > { %v1167_v50 = vpop.f32.mrf.mxu0  ;;  %v1206_v51 = vpop.f32.mrf.mxu1 }
  0xfa   : > { %v1703_v52 = vpop.f32.mrf.mxu0  ;;  %v1705_v53 = vpop.f32.mrf.mxu1 }
  0xfb   : > { %533 = vrot.lane.b32.xlu0 %v1705_v53, %s1450_s8  ;;  %531 = vrot.lane.b32.xlu1 %v1697_v49, %s1450_s8 }
  0xfc   : > { %v1170_v54 = vpop.f32.mrf.mxu0  ;;  %v1209_v55 = vpop.f32.mrf.mxu1 }
  0xfe   : > { %v1711_v56 = vpop.f32.mrf.mxu0  ;;  %v1713_v57 = vpop.f32.mrf.mxu1 }
  0xff   : > { %507 = vrot.lane.b32.xlu1 %v1703_v52, %s1450_s8  ;;  %509 = vrot.lane.b32.xlu0 %v1711_v56, %s1450_s8 }
 0x100   : > { %v1173_v58 = vpop.f32.mrf.mxu0  ;;  %v1212_v59 = vpop.f32.mrf.mxu1 }
 0x102   : > { %v1719_v60 = vpop.f32.mrf.mxu0  ;;  %v1721_v61 = vpop.f32.mrf.mxu1 }
 0x103   : > { %535 = vrot.lane.b32.xlu1 %v1713_v57, %s1450_s8  ;;  %537 = vrot.lane.b32.xlu0 %v1721_v61, %s1450_s8 }
 0x104   : > { %v1176_v62 = vpop.f32.mrf.mxu0  ;;  %v1215_v63 = vpop.f32.mrf.mxu1 }
 0x106   : > { %v1727_v0 = vpop.f32.mrf.mxu0  ;;  %v1729_v1 = vpop.f32.mrf.mxu1 }
 0x107   : > { %511 = vrot.lane.b32.xlu1 %v1719_v60, %s1450_s8  ;;  %513 = vrot.lane.b32.xlu0 %v1727_v0, %s1450_s8 }
 0x108   : > { %v1179_v2 = vpop.f32.mrf.mxu0  ;;  %v1218_v3 = vpop.f32.mrf.mxu1 }
 0x10a   : > { %v1735_v4 = vpop.f32.mrf.mxu0  ;;  %v1737_v5 = vpop.f32.mrf.mxu1 }
 0x10b   : > { %539 = vrot.lane.b32.xlu1 %v1729_v1, %s1450_s8  ;;  %541 = vrot.lane.b32.xlu0 %v1737_v5, %s1450_s8 }
 0x10c   : > { %v1182_v6 = vpop.f32.mrf.mxu0  ;;  %v1221_v7 = vpop.f32.mrf.mxu1 }
 0x10e   : > { %v1743_v8 = vpop.f32.mrf.mxu0  ;;  %v1745_v9 = vpop.f32.mrf.mxu1 }
 0x10f   : > { %515 = vrot.lane.b32.xlu1 %v1735_v4, %s1450_s8  ;;  %517 = vrot.lane.b32.xlu0 %v1743_v8, %s1450_s8 }
 0x110   : > { %v1185_v10 = vpop.f32.mrf.mxu0  ;;  %v1224_v11 = vpop.f32.mrf.mxu1 }
 0x112   : > { %v1751_v12 = vpop.f32.mrf.mxu0  ;;  %v1753_v13 = vpop.f32.mrf.mxu1 }
 0x113   : > { %543 = vrot.lane.b32.xlu1 %v1745_v9, %s1450_s8  ;;  %545 = vrot.lane.b32.xlu0 %v1753_v13, %s1450_s8 }
 0x114   : > { %v1188_v14 = vpop.f32.mrf.mxu0  ;;  %v1227_v15 = vpop.f32.mrf.mxu1 }
 0x116   : > { %v1759_v16 = vpop.f32.mrf.mxu0  ;;  %v1761_v17 = vpop.f32.mrf.mxu1 }
 0x117   : > { %519 = vrot.lane.b32.xlu1 %v1751_v12, %s1450_s8  ;;  %521 = vrot.lane.b32.xlu0 %v1759_v16, %s1450_s8 }
 0x118   : > { %v1191_v18 = vpop.f32.mrf.mxu0  ;;  %v1230_v19 = vpop.f32.mrf.mxu1 }
 0x11a   : > { %v1767_v20 = vpop.f32.mrf.mxu0  ;;  %v1769_v21 = vpop.f32.mrf.mxu1 }
 0x11b   : > { %523 = vrot.lane.b32.xlu1 %v1767_v20, %s1450_s8 }
 0x11c   : > { %v1194_v22 = vpop.f32.mrf.mxu0  ;;  %v1233_v23 = vpop.f32.mrf.mxu1 }
 0x11e   : > { %v1773_v24 = vpop.f32.mrf.mxu0 }
 0x11f   : > { %547 = vrot.lane.b32.xlu1 %v1761_v17, %s1450_s8  ;;  %525 = vrot.lane.b32.xlu0 %v1773_v24, %s1450_s8 }
 0x120   : > { %v1197_v25 = vpop.f32.mrf.mxu0 }
 0x123   : > { %549 = vrot.lane.b32.xlu0 %v1769_v21, %s1450_s8 }
 0x161   : > { %v528_v26 = vpop.permute.xlu1 %527  ;;  %v502_v27 = vpop.permute.xlu0 %501 }
 0x162   : > { %v1782_v28 = vmax.f32 %v1683_v41, %v528_v26  ;;  %v1785_v29 = vmax.f32 %v1681_v40, %v502_v27 }
 0x164   : > { %576 = vrot.lane.b32.xlu1 %v1785_v29, %s1451_s9  ;;  %602 = vrot.lane.b32.xlu0 %v1782_v28, %s1451_s9 }
 0x165   : > { %v504_v30 = vpop.permute.xlu0 %503 }
 0x166   : > { %v1792_v31 = vmax.f32 %v1689_v44, %v504_v30 }
 0x168   : > { %578 = vrot.lane.b32.xlu0 %v1792_v31, %s1451_s9 }
 0x169   : > { %v530_v32 = vpop.permute.xlu0 %529  ;;  %v506_v33 = vpop.permute.xlu1 %505 }
 0x16a   : > { %v1797_v34 = vmax.f32 %v1691_v45, %v530_v32  ;;  %v1802_v37 = vmax.f32 %v1695_v48, %v506_v33 }
 0x16c   : > { %604 = vrot.lane.b32.xlu1 %v1797_v34, %s1451_s9 }
 0x16d   : > { %v534_v35 = vpop.permute.xlu0 %533  ;;  %v532_v36 = vpop.permute.xlu1 %531 }
 0x16e   : > { %v1805_v38 = vmax.f32 %v1697_v49, %v532_v36  ;;  %v1812_v41 = vmax.f32 %v1705_v53, %v534_v35 }
 0x170   : > { %580 = vrot.lane.b32.xlu1 %v1802_v37, %s1451_s9  ;;  %606 = vrot.lane.b32.xlu0 %v1805_v38, %s1451_s9 }
 0x171   : > { %v508_v39 = vpop.permute.xlu1 %507  ;;  %v510_v40 = vpop.permute.xlu0 %509 }
 0x172   : > { %v1815_v42 = vmax.f32 %v1703_v52, %v508_v39  ;;  %v1822_v45 = vmax.f32 %v1711_v56, %v510_v40 }
 0x174   : > { %608 = vrot.lane.b32.xlu1 %v1812_v41, %s1451_s9  ;;  %582 = vrot.lane.b32.xlu0 %v1815_v42, %s1451_s9 }
 0x175   : > { %v536_v43 = vpop.permute.xlu1 %535  ;;  %v538_v44 = vpop.permute.xlu0 %537 }
 0x176   : > { %v1825_v46 = vmax.f32 %v1713_v57, %v536_v43  ;;  %v1832_v49 = vmax.f32 %v1721_v61, %v538_v44 }
 0x178   : > { %584 = vrot.lane.b32.xlu1 %v1822_v45, %s1451_s9  ;;  %610 = vrot.lane.b32.xlu0 %v1825_v46, %s1451_s9 }
 0x179   : > { %v512_v47 = vpop.permute.xlu1 %511  ;;  %v514_v48 = vpop.permute.xlu0 %513 }
 0x17a   : > { %v1835_v50 = vmax.f32 %v1719_v60, %v512_v47  ;;  %v1842_v53 = vmax.f32 %v1727_v0, %v514_v48 }
 0x17c   : > { %612 = vrot.lane.b32.xlu1 %v1832_v49, %s1451_s9  ;;  %586 = vrot.lane.b32.xlu0 %v1835_v50, %s1451_s9 }
 0x17d   : > { %v540_v51 = vpop.permute.xlu1 %539  ;;  %v542_v52 = vpop.permute.xlu0 %541 }
 0x17e   : > { %v1845_v54 = vmax.f32 %v1729_v1, %v540_v51  ;;  %v1852_v57 = vmax.f32 %v1737_v5, %v542_v52 }
 0x180   : > { %588 = vrot.lane.b32.xlu1 %v1842_v53, %s1451_s9  ;;  %614 = vrot.lane.b32.xlu0 %v1845_v54, %s1451_s9 }
 0x181   : > { %v516_v55 = vpop.permute.xlu1 %515  ;;  %v518_v56 = vpop.permute.xlu0 %517 }
 0x182   : > { %v1855_v58 = vmax.f32 %v1735_v4, %v516_v55  ;;  %v1862_v61 = vmax.f32 %v1743_v8, %v518_v56 }
 0x184   : > { %616 = vrot.lane.b32.xlu1 %v1852_v57, %s1451_s9  ;;  %590 = vrot.lane.b32.xlu0 %v1855_v58, %s1451_s9 }
 0x185   : > { %v544_v59 = vpop.permute.xlu1 %543  ;;  %v546_v60 = vpop.permute.xlu0 %545 }
 0x186   : > { %v1865_v62 = vmax.f32 %v1745_v9, %v544_v59  ;;  %v1872_v0 = vmax.f32 %v1753_v13, %v546_v60 }
 0x188   : > { %592 = vrot.lane.b32.xlu1 %v1862_v61, %s1451_s9  ;;  %618 = vrot.lane.b32.xlu0 %v1865_v62, %s1451_s9 }
 0x189   : > { %v520_v63 = vpop.permute.xlu1 %519  ;;  %v522_v2 = vpop.permute.xlu0 %521 }
 0x18a   : > { %v1875_v1 = vmax.f32 %v1751_v12, %v520_v63  ;;  %v1882_v4 = vmax.f32 %v1759_v16, %v522_v2  ;;  %v1910_v12 = vld [vmem:[%s2108_s2] ss:$0 sm:$0xff] }
 0x18c   : > { %620 = vrot.lane.b32.xlu1 %v1872_v0, %s1451_s9  ;;  %594 = vrot.lane.b32.xlu0 %v1875_v1, %s1451_s9 }
 0x18d   : > { %v524_v3 = vpop.permute.xlu1 %523 }
 0x18e   : > { %v1885_v5 = vmax.f32 %v1767_v20, %v524_v3 }
 0x190   : > { %596 = vrot.lane.b32.xlu1 %v1882_v4, %s1451_s9  ;;  %598 = vrot.lane.b32.xlu0 %v1885_v5, %s1451_s9 }
 0x191   : > { %v548_v6 = vpop.permute.xlu1 %547  ;;  %v526_v7 = vpop.permute.xlu0 %525 }
 0x192   : > { %v1892_v8 = vmax.f32 %v1761_v17, %v548_v6  ;;  %v1895_v9 = vmax.f32 %v1773_v24, %v526_v7 }
 0x194   : > { %622 = vrot.lane.b32.xlu0 %v1892_v8, %s1451_s9  ;;  %600 = vrot.lane.b32.xlu1 %v1895_v9, %s1451_s9 }
 0x195   : > { %v550_v10 = vpop.permute.xlu0 %549 }
 0x196   : > { %v1902_v11 = vmax.f32 %v1769_v21, %v550_v10 }
 0x198   : > { %624 = vrot.lane.b32.xlu1 %v1902_v11, %s1451_s9 }
 0x1d6   : > { %v577_v13 = vpop.permute.xlu1 %576  ;;  %v603_v14 = vpop.permute.xlu0 %602 }
 0x1d7   : > { %v626_v15 = vmax.f32 %v1785_v29, %v577_v13  ;;  %v639_v16 = vmax.f32 %v1782_v28, %v603_v14 }
 0x1d9   : > { %v658_v17 = vadd.f32 %v1910_v12, %v626_v15  ;;  %v671_v18 = vadd.f32 %v1910_v12, %v639_v16 }
 0x1da   : > { %v579_v19 = vpop.permute.xlu0 %578 }
 0x1db   : > { %v683_v20 = vmax.f32 %v658_v17, 0.0  ;;  %v696_v21 = vmax.f32 %v671_v18, 0.0  ;;  %v627_v22 = vmax.f32 %v1792_v31, %v579_v19 }
 0x1dd   : > { %708 = vst [vmem:[%s1917_s12] sm:$0xff] %v683_v20  ;;  %721 = vst [vmem:[%s1917_s12 + $0x68] sm:$0xff] %v696_v21  ;;  %v659_v23 = vadd.f32 %v1910_v12, %v627_v22 }
 0x1de   : > { %v605_v24 = vpop.permute.xlu1 %604 }
 0x1df   : > { %v684_v25 = vmax.f32 %v659_v23, 0.0  ;;  %v640_v26 = vmax.f32 %v1797_v34, %v605_v24 }
 0x1e1   : > { %709 = vst [vmem:[%s1917_s12 + $0x8] sm:$0xff] %v684_v25  ;;  %v672_v27 = vadd.f32 %v1910_v12, %v640_v26 }
 0x1e2   : > { %v581_v28 = vpop.permute.xlu1 %580  ;;  %v607_v29 = vpop.permute.xlu0 %606 }
 0x1e3   : > { %v697_v30 = vmax.f32 %v672_v27, 0.0  ;;  %v628_v31 = vmax.f32 %v1802_v37, %v581_v28  ;;  %v641_v32 = vmax.f32 %v1805_v38, %v607_v29 }
 0x1e5   : > { %722 = vst [vmem:[%s1917_s12 + $0x70] sm:$0xff] %v697_v30  ;;  %v660_v33 = vadd.f32 %v1910_v12, %v628_v31  ;;  %v673_v35 = vadd.f32 %v1910_v12, %v641_v32 }
 0x1e6   : > { %v609_v36 = vpop.permute.xlu1 %608  ;;  %v583_v34 = vpop.permute.xlu0 %582 }
 0x1e7   : > { %v685_v39 = vmax.f32 %v660_v33, 0.0  ;;  %v698_v40 = vmax.f32 %v673_v35, 0.0  ;;  %v642_v43 = vmax.f32 %v1812_v41, %v609_v36  ;;  %v629_v44 = vmax.f32 %v1815_v42, %v583_v34 }
 0x1e9   : > { %710 = vst [vmem:[%s1917_s12 + $0x10] sm:$0xff] %v685_v39  ;;  %723 = vst [vmem:[%s1917_s12 + $0x78] sm:$0xff] %v698_v40  ;;  %v674_v37 = vadd.f32 %v1910_v12, %v642_v43  ;;  %v661_v38 = vadd.f32 %v1910_v12, %v629_v44 }
 0x1ea   : > { %v585_v47 = vpop.permute.xlu1 %584  ;;  %v611_v48 = vpop.permute.xlu0 %610 }
 0x1eb   : > { %v699_v51 = vmax.f32 %v674_v37, 0.0  ;;  %v686_v52 = vmax.f32 %v661_v38, 0.0  ;;  %v630_v55 = vmax.f32 %v1822_v45, %v585_v47  ;;  %v643_v56 = vmax.f32 %v1825_v46, %v611_v48 }
 0x1ed   : > { %724 = vst [vmem:[%s1917_s12 + $0x80] sm:$0xff] %v699_v51  ;;  %711 = vst [vmem:[%s1917_s12 + $0x18] sm:$0xff] %v686_v52  ;;  %v662_v41 = vadd.f32 %v1910_v12, %v630_v55  ;;  %v675_v42 = vadd.f32 %v1910_v12, %v643_v56 }
 0x1ee   : > { %v613_v59 = vpop.permute.xlu1 %612  ;;  %v587_v60 = vpop.permute.xlu0 %586 }
 0x1ef   : > { %v687_v63 = vmax.f32 %v662_v41, 0.0  ;;  %v700_v2 = vmax.f32 %v675_v42, 0.0  ;;  %v644_v3 = vmax.f32 %v1832_v49, %v613_v59  ;;  %v631_v6 = vmax.f32 %v1835_v50, %v587_v60 }
 0x1f1   : > { %712 = vst [vmem:[%s1917_s12 + $0x20] sm:$0xff] %v687_v63  ;;  %725 = vst [vmem:[%s1917_s12 + $0x88] sm:$0xff] %v700_v2  ;;  %v676_v45 = vadd.f32 %v1910_v12, %v644_v3  ;;  %v663_v46 = vadd.f32 %v1910_v12, %v631_v6 }
 0x1f2   : > { %v589_v7 = vpop.permute.xlu1 %588  ;;  %v615_v10 = vpop.permute.xlu0 %614 }
 0x1f3   : > { %v701_v13 = vmax.f32 %v676_v45, 0.0  ;;  %v688_v14 = vmax.f32 %v663_v46, 0.0  ;;  %v632_v15 = vmax.f32 %v1842_v53, %v589_v7  ;;  %v645_v16 = vmax.f32 %v1845_v54, %v615_v10 }
 0x1f5   : > { %726 = vst [vmem:[%s1917_s12 + $0x90] sm:$0xff] %v701_v13  ;;  %713 = vst [vmem:[%s1917_s12 + $0x28] sm:$0xff] %v688_v14  ;;  %v664_v49 = vadd.f32 %v1910_v12, %v632_v15  ;;  %v677_v50 = vadd.f32 %v1910_v12, %v645_v16 }
 0x1f6   : > { %v617_v17 = vpop.permute.xlu1 %616  ;;  %v591_v18 = vpop.permute.xlu0 %590 }
 0x1f7   : > { %v689_v19 = vmax.f32 %v664_v49, 0.0  ;;  %v702_v20 = vmax.f32 %v677_v50, 0.0  ;;  %v646_v21 = vmax.f32 %v1852_v57, %v617_v17  ;;  %v633_v22 = vmax.f32 %v1855_v58, %v591_v18 }
 0x1f9   : > { %714 = vst [vmem:[%s1917_s12 + $0x30] sm:$0xff] %v689_v19  ;;  %727 = vst [vmem:[%s1917_s12 + $0x98] sm:$0xff] %v702_v20  ;;  %v678_v53 = vadd.f32 %v1910_v12, %v646_v21  ;;  %v665_v54 = vadd.f32 %v1910_v12, %v633_v22 }
 0x1fa   : > { %v593_v23 = vpop.permute.xlu1 %592  ;;  %v619_v24 = vpop.permute.xlu0 %618 }
 0x1fb   : > { %v703_v25 = vmax.f32 %v678_v53, 0.0  ;;  %v690_v26 = vmax.f32 %v665_v54, 0.0  ;;  %v634_v27 = vmax.f32 %v1862_v61, %v593_v23  ;;  %v647_v28 = vmax.f32 %v1865_v62, %v619_v24 }
 0x1fd   : > { %728 = vst [vmem:[%s1917_s12 + $0xa0] sm:$0xff] %v703_v25  ;;  %715 = vst [vmem:[%s1917_s12 + $0x38] sm:$0xff] %v690_v26  ;;  %v666_v57 = vadd.f32 %v1910_v12, %v634_v27  ;;  %v679_v58 = vadd.f32 %v1910_v12, %v647_v28 }
 0x1fe   : > { %v621_v29 = vpop.permute.xlu1 %620  ;;  %v595_v30 = vpop.permute.xlu0 %594 }
 0x1ff   : > { %v691_v31 = vmax.f32 %v666_v57, 0.0  ;;  %v704_v32 = vmax.f32 %v679_v58, 0.0  ;;  %v648_v33 = vmax.f32 %v1872_v0, %v621_v29  ;;  %v635_v35 = vmax.f32 %v1875_v1, %v595_v30 }
 0x201   : > { %716 = vst [vmem:[%s1917_s12 + $0x40] sm:$0xff] %v691_v31  ;;  %729 = vst [vmem:[%s1917_s12 + $0xa8] sm:$0xff] %v704_v32  ;;  %v680_v61 = vadd.f32 %v1910_v12, %v648_v33  ;;  %v667_v62 = vadd.f32 %v1910_v12, %v635_v35 }
 0x202   : > { %v597_v36 = vpop.permute.xlu1 %596  ;;  %v599_v34 = vpop.permute.xlu0 %598 }
 0x203   : > { %v705_v39 = vmax.f32 %v680_v61, 0.0  ;;  %v692_v40 = vmax.f32 %v667_v62, 0.0  ;;  %v636_v43 = vmax.f32 %v1882_v4, %v597_v36  ;;  %v637_v44 = vmax.f32 %v1885_v5, %v599_v34 }
 0x205   : > { %730 = vst [vmem:[%s1917_s12 + $0xb0] sm:$0xff] %v705_v39  ;;  %717 = vst [vmem:[%s1917_s12 + $0x48] sm:$0xff] %v692_v40  ;;  %v668_v0 = vadd.f32 %v1910_v12, %v636_v43  ;;  %v669_v1 = vadd.f32 %v1910_v12, %v637_v44 }
 0x206   : > { %v601_v37 = vpop.permute.xlu1 %600  ;;  %v623_v38 = vpop.permute.xlu0 %622 }
 0x207   : > { %v693_v47 = vmax.f32 %v668_v0, 0.0  ;;  %v694_v48 = vmax.f32 %v669_v1, 0.0  ;;  %v638_v51 = vmax.f32 %v1895_v9, %v601_v37  ;;  %v649_v52 = vmax.f32 %v1892_v8, %v623_v38 }
 0x209   : > { %718 = vst [vmem:[%s1917_s12 + $0x50] sm:$0xff] %v693_v47  ;;  %719 = vst [vmem:[%s1917_s12 + $0x58] sm:$0xff] %v694_v48  ;;  %v670_v4 = vadd.f32 %v1910_v12, %v638_v51  ;;  %v681_v5 = vadd.f32 %v1910_v12, %v649_v52 }
 0x20a   : > { %v625_v55 = vpop.permute.xlu1 %624 }
 0x20b   : > { %v695_v56 = vmax.f32 %v670_v4, 0.0  ;;  %v706_v41 = vmax.f32 %v681_v5, 0.0  ;;  %v650_v42 = vmax.f32 %v1902_v11, %v625_v55 }
 0x20d   : > { %720 = vst [vmem:[%s1917_s12 + $0x60] sm:$0xff] %v695_v56  ;;  %731 = vst [vmem:[%s1917_s12 + $0xb8] sm:$0xff] %v706_v41  ;;  %v682_v59 = vadd.f32 %v1910_v12, %v650_v42  ;;  %739 = sbr.rel (!%p1497_p4) target bundleno = 589 (0x24d), region = 36 }
 0x20f   : > { %v707_v60 = vmax.f32 %v682_v59, 0.0 }
 0x211   : > { %732 = vst [vmem:[%s1917_s12 + $0xc0] sm:$0xff] %v707_v60 }
 0x212   : > { %s2120_s18 = smov (!%p742_p8, %s741_s18), 25 }
 0x213   : > { %s1079_s25 = sshll.u32 %s2120_s18, 7 }
 0x214   : > { %p1082_p9 = scmp.eq.s32.totalorder %s1079_s25, 0 }
 0x215   : > { %1356 = sdivrem.u32 (!%p1082_p9), %s2120_s18, 25 }
 0x216   : > { %750 = sbr.rel (%p1082_p9) target bundleno = 589 (0x24d), region = 40 }
 0x21e   : > { %s2002_s20 = spop.drf %1356 }
 0x21f   : > { %p1083_p10 = scmp.le.s32.totalorder %s2002_s20, 0 }
 0x220   : > { %s2111_s15 = smov (!%p1083_p10), %s1996_s24  ;;  %s2112_s6 = smov (!%p1083_p10), %s1917_s12 }
 0x221   : > { %1003 = sbr.rel (%p1083_p10) target bundleno = 564 (0x234), region = 116  ;;  %s2011_s26 = smov (!%p1083_p10), 0  }
 0x222   : > { %s2013_s27 = smov (!%p1083_p10), 0  }
 0x226 LB: >> { %v863_v8 = vld [vmem:[%s1422_s6] sm:$0xff]  ;;  %v865_v9 = vld [vmem:[%s1422_s6 + $0x8] sm:$0xff]  ;;  %v867_v11 = vld [vmem:[%s1422_s6 + $0x10] sm:$0xff]  ;;  %s913_s28 = sadd.s32 1, %s1426_s26  ;;  %s857_s27 = sadd.s32 1, %s1430_s27   ;;  %s1430_s27 = sphi %s2013_s27, %s857_s27   ;;  %s1426_s26 = sphi %s2011_s26, %s2115_s26   ;;  %s1422_s6 = sphi %s2112_s6, %s2114_s6   ;;  %s1418_s15 = sphi %s2111_s15, %s2113_s15  }
 0x227   : >> { %864 = vst [vmem:[%s1418_s15] sm:$0xff] %v863_v8  ;;  %866 = vst [vmem:[%s1418_s15 + $0x8] sm:$0xff] %v865_v9  ;;  %v869_v12 = vld [vmem:[%s1422_s6 + $0x18] sm:$0xff]  ;;  %v871_v63 = vld [vmem:[%s1422_s6 + $0x20] sm:$0xff]  ;;  %p914_p11 = scmp.ge.s32.totalorder %s913_s28, %s2002_s20  ;;  %p856_p12 = scmp.ge.s32.totalorder %s857_s27, %s2002_s20 }
 0x228   : >> { %868 = vst [vmem:[%s1418_s15 + $0x10] sm:$0xff] %v867_v11  ;;  %v873_v2 = vld [vmem:[%s1422_s6 + $0x28] sm:$0xff]  ;;  %870 = vst [vmem:[%s1418_s15 + $0x18] sm:$0xff] %v869_v12  ;;  %v875_v3 = vld [vmem:[%s1422_s6 + $0x30] sm:$0xff] }
 0x229   : >> { %872 = vst [vmem:[%s1418_s15 + $0x20] sm:$0xff] %v871_v63  ;;  %874 = vst [vmem:[%s1418_s15 + $0x28] sm:$0xff] %v873_v2  ;;  %v877_v6 = vld [vmem:[%s1422_s6 + $0x38] sm:$0xff]  ;;  %v879_v45 = vld [vmem:[%s1422_s6 + $0x40] sm:$0xff]  ;;  %s2122_s28 = smov (%p914_p11, %s913_s28), 0 }
 0x22a   : >> { %876 = vst [vmem:[%s1418_s15 + $0x30] sm:$0xff] %v875_v3  ;;  %878 = vst [vmem:[%s1418_s15 + $0x38] sm:$0xff] %v877_v6  ;;  %v881_v46 = vld [vmem:[%s1422_s6 + $0x48] sm:$0xff]  ;;  %v883_v7 = vld [vmem:[%s1422_s6 + $0x50] sm:$0xff]  ;;  %s916_s29 = smul.u32 200, %s2122_s28  ;;  %s2115_s26 = smov %s2122_s28 }
 0x22b   : >> { %880 = vst [vmem:[%s1418_s15 + $0x40] sm:$0xff] %v879_v45  ;;  %v885_v10 = vld [vmem:[%s1422_s6 + $0x58] sm:$0xff]  ;;  %882 = vst [vmem:[%s1418_s15 + $0x48] sm:$0xff] %v881_v46  ;;  %v887_v13 = vld [vmem:[%s1422_s6 + $0x60] sm:$0xff] }
 0x22c   : >> { %884 = vst [vmem:[%s1418_s15 + $0x50] sm:$0xff] %v883_v7  ;;  %886 = vst [vmem:[%s1418_s15 + $0x58] sm:$0xff] %v885_v10  ;;  %v889_v14 = vld [vmem:[%s1422_s6 + $0x68] sm:$0xff]  ;;  %v891_v15 = vld [vmem:[%s1422_s6 + $0x70] sm:$0xff]  ;;  %s918_s30 = scalar_lea.vmem %s1917_s12, %s916_s29 [#allocation2]   ;;  %s919_s4 = scalar_lea.vmem %s1996_s24, %s916_s29  }
 0x22d   : >> { %888 = vst [vmem:[%s1418_s15 + $0x60] sm:$0xff] %v887_v13  ;;  %890 = vst [vmem:[%s1418_s15 + $0x68] sm:$0xff] %v889_v14  ;;  %v893_v16 = vld [vmem:[%s1422_s6 + $0x78] sm:$0xff]  ;;  %v895_v49 = vld [vmem:[%s1422_s6 + $0x80] sm:$0xff] }
 0x22e   : >> { %892 = vst [vmem:[%s1418_s15 + $0x70] sm:$0xff] %v891_v15  ;;  %v897_v50 = vld [vmem:[%s1422_s6 + $0x88] sm:$0xff]  ;;  %894 = vst [vmem:[%s1418_s15 + $0x78] sm:$0xff] %v893_v16  ;;  %v899_v17 = vld [vmem:[%s1422_s6 + $0x90] sm:$0xff] }
 0x22f   : >> { %896 = vst [vmem:[%s1418_s15 + $0x80] sm:$0xff] %v895_v49  ;;  %898 = vst [vmem:[%s1418_s15 + $0x88] sm:$0xff] %v897_v50  ;;  %v901_v18 = vld [vmem:[%s1422_s6 + $0x98] sm:$0xff]  ;;  %v903_v19 = vld [vmem:[%s1422_s6 + $0xa0] sm:$0xff]  ;;  %859 = sbr.rel (!%p856_p12) target bundleno = 550 (0x226), region = 122 }
 0x230   : >> { %900 = vst [vmem:[%s1418_s15 + $0x90] sm:$0xff] %v899_v17  ;;  %902 = vst [vmem:[%s1418_s15 + $0x98] sm:$0xff] %v901_v18  ;;  %v905_v20 = vld [vmem:[%s1422_s6 + $0xa8] sm:$0xff]  ;;  %v907_v21 = vld [vmem:[%s1422_s6 + $0xb0] sm:$0xff] }
 0x231   : >> { %904 = vst [vmem:[%s1418_s15 + $0xa0] sm:$0xff] %v903_v19  ;;  %v909_v22 = vld [vmem:[%s1422_s6 + $0xb8] sm:$0xff]  ;;  %906 = vst [vmem:[%s1418_s15 + $0xa8] sm:$0xff] %v905_v20  ;;  %v911_v53 = vld [vmem:[%s1422_s6 + $0xc0] sm:$0xff]  ;;  %s2114_s6 = smov %s918_s30 }
 0x232   : >> { %908 = vst [vmem:[%s1418_s15 + $0xb0] sm:$0xff] %v907_v21  ;;  %910 = vst [vmem:[%s1418_s15 + $0xb8] sm:$0xff] %v909_v22 }
 0x233   : >> { %912 = vst [vmem:[%s1418_s15 + $0xc0] sm:$0xff] %v911_v53  ;;  %s2113_s15 = smov %s919_s4 }
 0x234 PF: > { %1358 = sdivrem.u32 %s2120_s18, 25 }
 0x235   : > { %s1084_s5 = smul.u32 200, %s2002_s20 }
 0x237   : > { %s924_s7 = scalar_lea.vmem %s1917_s12, %s1084_s5 [#allocation2]   ;;  %s926_s8 = scalar_lea.vmem %s1996_s24, %s1084_s5  }
 0x23d   : > { %s1359_s9 = spop.drf %1358 }
 0x23e   : > { %p1086_p13 = scmp.le.s32.totalorder %s1359_s9, 0 }
 0x23f   : > { %s1432_s10 = smov (!%p1086_p13), %s926_s8   ;;  %s1436_s11 = smov (!%p1086_p13), %s924_s7  }
 0x240   : > { %1017 = sbr.rel (%p1086_p13) target bundleno = 589 (0x24d), region = 127  ;;  %s1440_s14 = smov (!%p1086_p13), 0  }
 0x241   : > { %s1444_s17 = smov (!%p1086_p13), 0  }
 0x245 LB: >> { %v936_v54 = vld [vmem:[%s1438_s11] sm:$0xff]  ;;  %s938_s21 = sadd.s32 1, %s1442_s14  ;;  %s930_s17 = sadd.s32 1, %s1446_s17   ;;  %s1446_s17 = sphi %s1444_s17, %s930_s17   ;;  %s1442_s14 = sphi %s1440_s14, %s1441_s14   ;;  %s1438_s11 = sphi %s1436_s11, %s943_s11   ;;  %s1434_s10 = sphi %s1432_s10, %s944_s10  }
 0x246   : >> { %937 = vst [vmem:[%s1434_s10] sm:$0xff] %v936_v54  ;;  %p939_p0 = scmp.ge.s32.totalorder %s938_s21, %s1359_s9  ;;  %p929_p1 = scmp.ge.s32.totalorder %s930_s17, %s1359_s9 }
 0x248   : >> { %s2124_s21 = smov (%p939_p0, %s938_s21), 0  ;;  %932 = sbr.rel (!%p929_p1) target bundleno = 581 (0x245), region = 133 }
 0x249   : >> { %s1087_s12 = sshll.u32 %s2124_s21, 3  ;;  %s1441_s14 = smov %s2124_s21  }
 0x24a   : >> { %s943_s11 = scalar_lea.vmem %s924_s7, %s1087_s12 [#allocation2]   ;;  %s944_s10 = scalar_lea.vmem %s926_s8, %s1087_s12  }
 0x24d PF: > { %p10_p2 = scmp.ge.s32.totalorder %s1487_s16, 4   ;;  %s2116_s12 = smov %s1410_s13 }
 0x24e   : > { %s2117_s13 = smov %s1495_s19  ;;  %s2118_s14 = smov %s1487_s16 }
 0x24f   :  { %12 = sbr.rel (!%p10_p2) target bundleno = 2 (0x2), region = 144 }

// kernel: cifar_cnn_forward.4
= control target key start
LH: loop header
LB: loop body
LE: loop exit
PB: predicated region body
PF: predicated region fallthrough
CT: control target
= control target key end

     0   :  { %s894_s12 = smov 0   ;;  %s896_s13 = smov 0   ;;  %s1132_s0 = inlined_call_operand.vmem [shape: f32[50,216], index: 0, kind: input, shape index: {}]   ;;  %s1133_s1 = inlined_call_operand.vmem [shape: f32[216,128], index: 1, kind: input, shape index: {}]   ;;  %s1134_s2 = inlined_call_operand.vmem [shape: f32[1,128], index: 2, kind: input, shape index: {}]   ;;  %s1135_s3 = inlined_call_operand.vmem [shape: f32[50,128], index: 3, kind: output, shape index: {}]  }
   0x1   :  { %s898_s14 = smov 0  }
   0x2 LB: > { %s907_s15 = sadd.s32 4294967295, %s837_s14   ;;  %s909_s16 = sadd.s32 1, %s837_s14   ;;  %s837_s14 = sphi %s898_s14, %s1142_s14   ;;  %s833_s13 = sphi %s896_s13, %s1141_s13   ;;  %s829_s12 = sphi %s894_s12, %s1140_s12  }
   0x3   : > { %s85_s17 = ssub.s32 %s837_s14, %s909_s16  ;;  %s88_s18 = sadd.s32 1, %s833_s13 }
   0x4   : > { %p86_p0 = scmp.eq.s32.totalorder %s85_s17, 0  ;;  %p98_p1 = scmp.ne.s32.totalorder %s833_s13, %s829_s12 }
   0x5   : > { %p99_p2 = scmp.eq.s32.totalorder %s907_s15, 1  ;;  %p607_p3 = scmp.ge.s32.totalorder %s837_s14, 1 }
   0x6   : > { %s917_s19 = scalar_select %p86_p0, %s833_s13, %s88_s18  }
   0x7   : > { %p919_p4 = por %p99_p2, %p98_p1  ;;  %p149_p5 = scmp.lt.s32.totalorder %s837_s14, 3 }
   0x9   : > { %p150_p6 = pnand %p607_p3, %p149_p5 }
   0xa   : > { %s1017_s11 = sshll.u32 (!%p150_p6), %s907_s15, 2  ;;  %s872_s17 = smov (!%p150_p6), 64  }
   0xb   : > { %153 = sbr.rel (%p150_p6) target bundleno = 551 (0x227), region = 32  ;;  %p184_p7 = scmp.lt.s32.totalorder (!%p150_p6), %s1017_s11, 6 }
   0xc   : > { %s873_s18 = smov (!%p150_p6), 32   ;;  %s175_s21 = sand.u32 (!%p150_p6), 1, %s829_s12  }
  0x10   : > { %v223_v0 = vld [vmem:[%s1133_s1 + $0x78] sm:$0xff]  ;;  %v871_v1 = vmov 0.0   ;;  %v222_v2 = vld [vmem:[%s1133_s1 + $0x70] sm:$0xff]  ;;  %v221_v3 = vld [vmem:[%s1133_s1 + $0x68] sm:$0xff]  ;;  %s185_s24 = scalar_select %p184_p7, %s1017_s11, 6  ;;  %vm235_vm0 = vcmask 719872  }
  0x11   : > { %248 = vmatprep.subr.mxu0 %v871_v1  ;;  %638 = vmatprep.subr.mxu1 %v871_v1  ;;  %v220_v4 = vld [vmem:[%s1133_s1 + $0x60] sm:$0xff]  ;;  %v219_v5 = vld [vmem:[%s1133_s1 + $0x58] sm:$0xff]  ;;  %v218_v6 = vld [vmem:[%s1133_s1 + $0x50] sm:$0xff]  ;;  %s384_s12 = ssub.s32 (%p919_p4), 7, %s1017_s11  ;;  %s635_s26 = sshll.u32 (%p919_p4), %s907_s15, 5 }
  0x12   : > { %249 = vmatpush1.msra.mxu0 %v223_v0  ;;  %665 = vmatpush1.msra.mxu1 %v223_v0  ;;  %v217_v7 = vld [vmem:[%s1133_s1 + $0x48] sm:$0xff]  ;;  %v216_v8 = vld [vmem:[%s1133_s1 + $0x40] sm:$0xff]  ;;  %v215_v9 = vld [vmem:[%s1133_s1 + $0x38] sm:$0xff]  ;;  %s634_s29 = sshll.u32 %s185_s24, 4  ;;  %s608_s24 = sshll.u32 %s175_s21, 5 }
  0x13   : > { %250 = vmatprep.subr.mxu0 %v871_v1  ;;  %639 = vmatprep.subr.mxu1 %v871_v1  ;;  %v214_v10 = vld [vmem:[%s1133_s1 + $0x30] sm:$0xff]  ;;  %v213_v11 = vld [vmem:[%s1133_s1 + $0x28] sm:$0xff]  ;;  %v212_v12 = vld [vmem:[%s1133_s1 + $0x20] sm:$0xff]  ;;  %s188_s9 = scalar_lea.vmem %s1132_s0, %s634_s29  ;;  %s1070_s25 = scalar_lea.vmem [#allocation2], %s608_s24  }
  0x14   : > { %251 = vmatpush1.msra.mxu0 %v222_v2  ;;  %666 = vmatpush1.msra.mxu1 %v222_v2  ;;  %v211_v13 = vld [vmem:[%s1133_s1 + $0x18] sm:$0xff]  ;;  %v210_v14 = vld [vmem:[%s1133_s1 + $0x10] sm:$0xff]  ;;  %v209_v15 = vld [vmem:[%s1133_s1 + $0x8] sm:$0xff]  ;;  %p385_p8 = scmp.lt.s32.totalorder (%p919_p4), %s384_s12, 4  ;;  %s1083_s29 = scalar_lea.vmem (%p919_p4), %s1135_s3, %s635_s26  }
  0x15   : > { %252 = vmatprep.subr.mxu0 %v871_v1  ;;  %640 = vmatprep.subr.mxu1 %v871_v1  ;;  %v208_v16 = vld [vmem:[%s1133_s1] sm:$0xff]  ;;  %v234_v17 = vld [vmem:[%s1133_s1 + $0xd0] sm:$0xff]  ;;  %v233_v18 = vld [vmem:[%s1133_s1 + $0xc8] sm:$0xff] }
  0x16   : > { %253 = vmatpush1.msra.mxu0 %v221_v3  ;;  %667 = vmatpush1.msra.mxu1 %v221_v3  ;;  %v232_v19 = vld [vmem:[%s1133_s1 + $0xc0] sm:$0xff]  ;;  %v231_v20 = vld [vmem:[%s1133_s1 + $0xb8] sm:$0xff]  ;;  %v230_v21 = vld [vmem:[%s1133_s1 + $0xb0] sm:$0xff] }
  0x17   : > { %254 = vmatprep.subr.mxu0 %v871_v1  ;;  %641 = vmatprep.subr.mxu1 %v871_v1  ;;  %v229_v22 = vld [vmem:[%s1133_s1 + $0xa8] sm:$0xff]  ;;  %v228_v23 = vld [vmem:[%s1133_s1 + $0xa0] sm:$0xff]  ;;  %v227_v24 = vld [vmem:[%s1133_s1 + $0x98] sm:$0xff] }
  0x18   : > { %255 = vmatpush1.msra.mxu0 %v220_v4  ;;  %668 = vmatpush1.msra.mxu1 %v220_v4  ;;  %v226_v25 = vld [vmem:[%s1133_s1 + $0x90] sm:$0xff]  ;;  %v225_v26 = vld [vmem:[%s1133_s1 + $0x88] sm:$0xff]  ;;  %v224_v27 = vld [vmem:[%s1133_s1 + $0x80] sm:$0xff] }
  0x19   : > { %256 = vmatprep.subr.mxu0 %v871_v1  ;;  %642 = vmatprep.subr.mxu1 %v871_v1  ;;  %v201_v28 = vld [vmem:[%s188_s9 + $0x8] sm:$0xff]  ;;  %v200_v30 = vld [vmem:[%s188_s9] sm:$0xff]  ;;  %v203_v32 = vld [vmem:[%s188_s9 + $0x18] sm:$0xff] }
  0x1a   : > { %257 = vmatpush1.msra.mxu0 %v219_v5  ;;  %669 = vmatpush1.msra.mxu1 %v219_v5  ;;  %v205_v29 = vld [vmem:[%s188_s9 + $0x28] sm:$0xff]  ;;  %v204_v31 = vld [vmem:[%s188_s9 + $0x20] sm:$0xff]  ;;  %v207_v33 = vld [vmem:[%s188_s9 + $0x38] sm:$0xff] }
  0x1b   : > { %258 = vmatprep.subr.mxu0 %v871_v1  ;;  %643 = vmatprep.subr.mxu1 %v871_v1  ;;  %v202_v34 = vld [vmem:[%s188_s9 + $0x10] sm:$0xff]  ;;  %v616_v52 = vld [vmem:[%s1134_s2] ss:$0 sm:$0xff] }
  0x1c   : > { %259 = vmatpush1.msra.mxu0 %v218_v6  ;;  %670 = vmatpush1.msra.mxu1 %v218_v6  ;;  %v206_v35 = vld [vmem:[%s188_s9 + $0x30] sm:$0xff] }
  0x1d   : > { %260 = vmatprep.subr.mxu0 %v871_v1  ;;  %644 = vmatprep.subr.mxu1 %v871_v1 }
  0x1e   : > { %261 = vmatpush1.msra.mxu0 %v217_v7  ;;  %671 = vmatpush1.msra.mxu1 %v217_v7 }
  0x1f   : > { %262 = vmatprep.subr.mxu0 %v871_v1  ;;  %645 = vmatprep.subr.mxu1 %v871_v1 }
  0x20   : > { %263 = vmatpush1.msra.mxu0 %v216_v8  ;;  %672 = vmatpush1.msra.mxu1 %v216_v8 }
  0x21   : > { %264 = vmatprep.subr.mxu0 %v871_v1  ;;  %646 = vmatprep.subr.mxu1 %v871_v1 }
  0x22   : > { %265 = vmatpush1.msra.mxu0 %v215_v9  ;;  %673 = vmatpush1.msra.mxu1 %v215_v9 }
  0x23   : > { %266 = vmatprep.subr.mxu0 %v871_v1  ;;  %647 = vmatprep.subr.mxu1 %v871_v1 }
  0x24   : > { %267 = vmatpush1.msra.mxu0 %v214_v10  ;;  %674 = vmatpush1.msra.mxu1 %v214_v10 }
  0x25   : > { %268 = vmatprep.subr.mxu0 %v871_v1  ;;  %648 = vmatprep.subr.mxu1 %v871_v1 }
  0x26   : > { %269 = vmatpush1.msra.mxu0 %v213_v11  ;;  %675 = vmatpush1.msra.mxu1 %v213_v11 }
  0x27   : > { %270 = vmatprep.subr.mxu0 %v871_v1  ;;  %649 = vmatprep.subr.mxu1 %v871_v1 }
  0x28   : > { %271 = vmatpush1.msra.mxu0 %v212_v12  ;;  %676 = vmatpush1.msra.mxu1 %v212_v12 }
  0x29   : > { %272 = vmatprep.subr.mxu0 %v871_v1  ;;  %650 = vmatprep.subr.mxu1 %v871_v1 }
  0x2a   : > { %273 = vmatpush1.msra.mxu0 %v211_v13  ;;  %677 = vmatpush1.msra.mxu1 %v211_v13 }
  0x2b   : > { %274 = vmatprep.subr.mxu0 %v871_v1  ;;  %651 = vmatprep.subr.mxu1 %v871_v1 }
  0x2c   : > { %275 = vmatpush1.msra.mxu0 %v210_v14  ;;  %678 = vmatpush1.msra.mxu1 %v210_v14 }
  0x2d   : > { %276 = vmatprep.subr.mxu0 %v871_v1  ;;  %652 = vmatprep.subr.mxu1 %v871_v1 }
  0x2e   : > { %277 = vmatpush1.msra.mxu0 %v209_v15  ;;  %679 = vmatpush1.msra.mxu1 %v209_v15 }
  0x2f   : > { %278 = vmatprep.subr.mxu0 %v871_v1  ;;  %653 = vmatprep.subr.mxu1 %v871_v1 }
  0x30   : > { %279 = vmatpush1.msra.mxu0 %v208_v16  ;;  %680 = vmatpush1.msra.mxu1 %v208_v16 }
  0x31   : > { %290 = vmatprep.subr.mxu0 %v871_v1  ;;  %654 = vmatprep.subr.mxu1 %v871_v1 }
  0x32   : > { %291 = vmatpush2.msra.mxu0 %v234_v17  ;;  %681 = vmatpush2.msra.mxu1 %v234_v17 }
  0x33   : > { %292 = vmatprep.subr.mxu0 %v871_v1  ;;  %655 = vmatprep.subr.mxu1 %v871_v1 }
  0x34   : > { %293 = vmatpush2.msra.mxu0 %v233_v18  ;;  %682 = vmatpush2.msra.mxu1 %v233_v18 }
  0x35   : > { %294 = vmatprep.subr.mxu0 %v871_v1  ;;  %656 = vmatprep.subr.mxu1 %v871_v1 }
  0x36   : > { %295 = vmatpush2.msra.mxu0 %v232_v19  ;;  %683 = vmatpush2.msra.mxu1 %v232_v19 }
  0x37   : > { %296 = vmatprep.subr.mxu0 %v871_v1  ;;  %657 = vmatprep.subr.mxu1 %v871_v1 }
  0x38   : > { %297 = vmatpush2.msra.mxu0 %v231_v20  ;;  %684 = vmatpush2.msra.mxu1 %v231_v20 }
  0x39   : > { %298 = vmatprep.subr.mxu0 %v871_v1  ;;  %658 = vmatprep.subr.mxu1 %v871_v1 }
  0x3a   : > { %299 = vmatpush2.msra.mxu0 %v230_v21  ;;  %685 = vmatpush2.msra.mxu1 %v230_v21 }
  0x3b   : > { %300 = vmatprep.subr.mxu0 %v871_v1  ;;  %659 = vmatprep.subr.mxu1 %v871_v1 }
  0x3c   : > { %301 = vmatpush2.msra.mxu0 %v229_v22  ;;  %686 = vmatpush2.msra.mxu1 %v229_v22 }
  0x3d   : > { %302 = vmatprep.subr.mxu0 %v871_v1  ;;  %660 = vmatprep.subr.mxu1 %v871_v1 }
  0x3e   : > { %303 = vmatpush2.msra.mxu0 %v228_v23  ;;  %687 = vmatpush2.msra.mxu1 %v228_v23 }
  0x3f   : > { %304 = vmatprep.subr.mxu0 %v871_v1  ;;  %661 = vmatprep.subr.mxu1 %v871_v1 }
  0x40   : > { %305 = vmatpush2.msra.mxu0 %v227_v24  ;;  %688 = vmatpush2.msra.mxu1 %v227_v24 }
  0x41   : > { %306 = vmatprep.subr.mxu0 %v871_v1  ;;  %662 = vmatprep.subr.mxu1 %v871_v1 }
  0x42   : > { %307 = vmatpush2.msra.mxu0 %v226_v25  ;;  %689 = vmatpush2.msra.mxu1 %v226_v25 }
  0x43   : > { %308 = vmatprep.subr.mxu0 %v871_v1  ;;  %663 = vmatprep.subr.mxu1 %v871_v1 }
  0x44   : > { %309 = vmatpush2.msra.mxu0 %v225_v26  ;;  %690 = vmatpush2.msra.mxu1 %v225_v26 }
  0x45   : > { %310 = vmatprep.subr.mxu0 %v871_v1  ;;  %664 = vmatprep.subr.mxu1 %v871_v1 }
  0x46   : > { %311 = vmatpush2.msra.mxu0 %v224_v27  ;;  %691 = vmatpush2.msra.mxu1 %v224_v27 }
  0x47   : > { %612 = vmatprep.mubr.msk.f32.mxu0 %vm235_vm0, %v201_v28  ;;  %614 = vmatprep.mubr.msk.f32.mxu1 %vm235_vm0, %v205_v29 }
  0x48   : > { %313 = vmatmul.mubr.f32.vlgmr.msra.gmra.mxu0 %v200_v30  ;;  %323 = vmatmul.mubr.f32.vlgmr.msra.gmra.mxu1 %v204_v31 }
  0x49   : > { %613 = vmatprep.mubr.msk.f32.mxu0 %vm235_vm0, %v203_v32  ;;  %615 = vmatprep.mubr.msk.f32.mxu1 %vm235_vm0, %v207_v33 }
  0x4c   : > { %318 = vmatmul.mubr.f32.gmra.mxu0 %v202_v34  ;;  %328 = vmatmul.mubr.f32.gmra.mxu1 %v206_v35 }
 0x108   : > { %v314_v36 = vpop.f32.mrf.mxu0  ;;  %v324_v37 = vpop.f32.mrf.mxu1 }
 0x109   : > { %337 = vrot.lane.b32.xlu1 %v324_v37, %s872_s17  ;;  %333 = vrot.lane.b32.xlu0 %v314_v36, %s872_s17 }
 0x10a   : > { %v316_v38 = vpop.f32.mrf.mxu0  ;;  %v326_v39 = vpop.f32.mrf.mxu1 }
 0x10c   : > { %v319_v40 = vpop.f32.mrf.mxu0  ;;  %v329_v41 = vpop.f32.mrf.mxu1 }
 0x10d   : > { %339 = vrot.lane.b32.xlu1 %v329_v41, %s872_s17  ;;  %335 = vrot.lane.b32.xlu0 %v319_v40, %s872_s17 }
 0x10e   : > { %v321_v42 = vpop.f32.mrf.mxu0  ;;  %v331_v43 = vpop.f32.mrf.mxu1 }
 0x17b   : > { %v338_v44 = vpop.permute.xlu1 %337  ;;  %v334_v45 = vpop.permute.xlu0 %333 }
 0x17c   : > { %v341_v46 = vmax.f32 %v314_v36, %v334_v45  ;;  %v343_v48 = vmax.f32 %v324_v37, %v338_v44 }
 0x17e   : > { %345 = vrot.lane.b32.xlu0 %v341_v46, %s873_s18 }
 0x17f   : > { %v336_v47 = vpop.permute.xlu0 %335  ;;  %v340_v50 = vpop.permute.xlu1 %339 }
 0x180   : > { %v342_v49 = vmax.f32 %v319_v40, %v336_v47  ;;  %v344_v51 = vmax.f32 %v329_v41, %v340_v50 }
 0x182   : > { %349 = vrot.lane.b32.xlu0 %v343_v48, %s873_s18  ;;  %347 = vrot.lane.b32.xlu1 %v342_v49, %s873_s18 }
 0x186   : > { %351 = vrot.lane.b32.xlu1 %v344_v51, %s873_s18 }
 0x1f0   : > { %v346_v53 = vpop.permute.xlu0 %345 }
 0x1f1   : > { %v353_v54 = vmax.f32 %v341_v46, %v346_v53 }
 0x1f3   : > { %v364_v55 = vadd.f32 %v616_v52, %v353_v54 }
 0x1f4   : > { %v348_v56 = vpop.permute.xlu1 %347  ;;  %v350_v57 = vpop.permute.xlu0 %349 }
 0x1f5   : > { %v368_v58 = vmax.f32 %v364_v55, 0.0  ;;  %v354_v59 = vmax.f32 %v342_v49, %v348_v56  ;;  %v355_v60 = vmax.f32 %v343_v48, %v350_v57 }
 0x1f7   : > { %372 = vst [vmem:[%s1070_s25] sm:$0xff] %v368_v58  ;;  %v365_v61 = vadd.f32 %v616_v52, %v354_v59  ;;  %v366_v62 = vadd.f32 %v616_v52, %v355_v60 }
 0x1f8   : > { %v352_v63 = vpop.permute.xlu1 %351 }
 0x1f9   : > { %v369_v0 = vmax.f32 %v365_v61, 0.0  ;;  %v370_v1 = vmax.f32 %v366_v62, 0.0  ;;  %v356_v2 = vmax.f32 %v344_v51, %v352_v63 }
 0x1fb   : > { %373 = vst [vmem:[%s1070_s25 + $0x8] sm:$0xff] %v369_v0  ;;  %374 = vst [vmem:[%s1070_s25 + $0x10] sm:$0xff] %v370_v1  ;;  %v367_v3 = vadd.f32 %v616_v52, %v356_v2  ;;  %382 = sbr.rel (!%p919_p4) target bundleno = 551 (0x227), region = 36 }
 0x1fd   : > { %v371_v4 = vmax.f32 %v367_v3, 0.0 }
 0x1ff   : > { %375 = vst [vmem:[%s1070_s25 + $0x18] sm:$0xff] %v371_v4 }
 0x200   : > { %s1144_s12 = smov (!%p385_p8, %s384_s12), 4 }
 0x201   : > { %s619_s30 = sshll.u32 %s1144_s12, 7 }
 0x202   : > { %p622_p9 = scmp.eq.s32.totalorder %s619_s30, 0 }
 0x203   : > { %s1089_s4 = sshrl.u32 (!%p622_p9), %s1144_s12, 2 }
 0x204   : > { %393 = sbr.rel (%p622_p9) target bundleno = 551 (0x227), region = 40  ;;  %p623_p10 = scmp.le.s32.totalorder (!%p622_p9), %s1089_s4, 0 }
 0x209   : > { %560 = sbr.rel (%p623_p10) target bundleno = 534 (0x216), region = 116  ;;  %s1137_s15 = smov (!%p623_p10), %s1083_s29 }
 0x20a   : > { %s1138_s20 = smov (!%p623_p10), %s1070_s25  ;;  %s1098_s11 = smov (!%p623_p10), 0  }
 0x20b   : > { %s851_s5 = smov (!%p623_p10), 0  }
 0x20e LB: >> { %v462_v5 = vld [vmem:[%s845_s20] sm:$0xff]  ;;  %v464_v6 = vld [vmem:[%s845_s20 + $0x8] sm:$0xff]  ;;  %v466_v7 = vld [vmem:[%s845_s20 + $0x10] sm:$0xff]  ;;  %s470_s6 = sadd.s32 1, %s849_s11  ;;  %s456_s5 = sadd.s32 1, %s853_s5   ;;  %s853_s5 = sphi %s851_s5, %s456_s5   ;;  %s849_s11 = sphi %s1098_s11, %s1139_s11   ;;  %s845_s20 = sphi %s1138_s20, %s475_s20   ;;  %s841_s15 = sphi %s1137_s15, %s476_s15  }
 0x20f   : >> { %463 = vst [vmem:[%s841_s15] sm:$0xff] %v462_v5  ;;  %465 = vst [vmem:[%s841_s15 + $0x8] sm:$0xff] %v464_v6  ;;  %v468_v8 = vld [vmem:[%s845_s20 + $0x18] sm:$0xff]  ;;  %p471_p11 = scmp.ge.s32.totalorder %s470_s6, %s1089_s4  ;;  %p455_p12 = scmp.ge.s32.totalorder %s456_s5, %s1089_s4 }
 0x210   : >> { %467 = vst [vmem:[%s841_s15 + $0x10] sm:$0xff] %v466_v7  ;;  %469 = vst [vmem:[%s841_s15 + $0x18] sm:$0xff] %v468_v8 }
 0x211   : >> { %s1146_s6 = smov (%p471_p11, %s470_s6), 0  ;;  %458 = sbr.rel (!%p455_p12) target bundleno = 526 (0x20e), region = 122 }
 0x212   : >> { %s624_s7 = sshll.u32 %s1146_s6, 5  ;;  %s1139_s11 = smov %s1146_s6 }
 0x213   : >> { %s475_s20 = scalar_lea.vmem %s1070_s25, %s624_s7 [#allocation2]   ;;  %s476_s15 = scalar_lea.vmem %s1083_s29, %s624_s7  }
 0x216 PF: > { %s1114_s8 = sand.u32 3, %s1144_s12   ;;  %s636_s9 = sshll.u32 %s1089_s4, 5 }
 0x217   : > { %s481_s10 = scalar_lea.vmem %s1070_s25, %s636_s9 [#allocation2]   ;;  %s483_s14 = scalar_lea.vmem %s1083_s29, %s636_s9  }
 0x218   : > { %p629_p13 = scmp.le.s32.totalorder %s1114_s8, 0 }
 0x219   : > { %s855_s17 = smov (!%p629_p13), %s483_s14   ;;  %s859_s18 = smov (!%p629_p13), %s481_s10  }
 0x21a   : > { %574 = sbr.rel (%p629_p13) target bundleno = 551 (0x227), region = 127  ;;  %s863_s21 = smov (!%p629_p13), 0  }
 0x21b   : > { %s867_s22 = smov (!%p629_p13), 0  }
 0x21f LB: >> { %v493_v9 = vld [vmem:[%s861_s18] sm:$0xff]  ;;  %s495_s23 = sadd.s32 1, %s865_s21  ;;  %s487_s22 = sadd.s32 1, %s869_s22   ;;  %s869_s22 = sphi %s867_s22, %s487_s22   ;;  %s865_s21 = sphi %s863_s21, %s864_s21   ;;  %s861_s18 = sphi %s859_s18, %s500_s18   ;;  %s857_s17 = sphi %s855_s17, %s501_s17  }
 0x220   : >> { %494 = vst [vmem:[%s857_s17] sm:$0xff] %v493_v9  ;;  %p496_p0 = scmp.ge.s32.totalorder %s495_s23, %s1114_s8  ;;  %p486_p1 = scmp.ge.s32.totalorder %s487_s22, %s1114_s8 }
 0x222   : >> { %s1148_s23 = smov (%p496_p0, %s495_s23), 0  ;;  %489 = sbr.rel (!%p486_p1) target bundleno = 543 (0x21f), region = 133 }
 0x223   : >> { %s630_s24 = sshll.u32 %s1148_s23, 3  ;;  %s864_s21 = smov %s1148_s23  }
 0x224   : >> { %s500_s18 = scalar_lea.vmem %s481_s10, %s630_s24 [#allocation2]   ;;  %s501_s17 = scalar_lea.vmem %s483_s14, %s630_s24  }
 0x227 PF: > { %p10_p2 = scmp.ge.s32.totalorder %s909_s16, 4   ;;  %s1140_s12 = smov %s833_s13 }
 0x228   : > { %s1141_s13 = smov %s917_s19  ;;  %s1142_s14 = smov %s909_s16 }
 0x229   :  { %12 = sbr.rel (!%p10_p2) target bundleno = 2 (0x2), region = 144 }

// kernel: cifar_cnn_forward.5
= control target key start
LH: loop header
LB: loop body
LE: loop exit
PB: predicated region body
PF: predicated region fallthrough
CT: control target
= control target key end

     0   :  { %v2307_v27 = vmov 1983009808   ;;  %v452_v29 = vlaneseq  ;;  %s3748_s0 = inlined_call_operand.vmem [shape: f32[2,3200], index: 0, kind: input, shape index: {}]   ;;  %s3749_s1 = inlined_call_operand.vmem [shape: f32[3200,128], index: 1, kind: input, shape index: {}]   ;;  %s3750_s2 = inlined_call_operand.vmem [shape: f32[1,128], index: 2, kind: input, shape index: {}]   ;;  %s3751_s3 = inlined_call_operand.vmem [shape: f32[128,128], index: 3, kind: input, shape index: {}]   ;;  %s3752_s4 = inlined_call_operand.vmem [shape: f32[1,128], index: 4, kind: input, shape index: {}]   ;;  %s3753_s5 = inlined_call_operand.vmem [shape: f32[128,128], index: 5, kind: input, shape index: {}]   ;;  %s3754_s6 = inlined_call_operand.vmem [shape: f32[1,128], index: 6, kind: input, shape index: {}]   ;;  %s3755_s7 = inlined_call_operand.hbm [shape: f32[2,128], index: 7, kind: output, shape index: {}]  }
   0x1   :  { %v65_v0 = vld [vmem:[%s3749_s1 + $0xf8] sm:$0xff]  ;;  %v64_v2 = vld [vmem:[%s3749_s1 + $0xf0] sm:$0xff]  ;;  %v63_v6 = vld [vmem:[%s3749_s1 + $0xe8] sm:$0xff]  ;;  %v450_v28 = vunpack.c.l.s4 %v2307_v27 }
   0x2   :  { %v49_v1 = vld [vmem:[%s3749_s1 + $0x78] sm:$0xff]  ;;  %1699 = vmatprep.subr.mxu0 %v65_v0  ;;  %v48_v4 = vld [vmem:[%s3749_s1 + $0x70] sm:$0xff]  ;;  %v47_v8 = vld [vmem:[%s3749_s1 + $0x68] sm:$0xff]  ;;  %v453_v39 = vshrl.u32 %v452_v29, 7 }
   0x3   :  { %v97_v3 = vld [vmem:[%s3749_s1 + $0x1f8] sm:$0xff]  ;;  %1700 = vmatpush3.msra.mxu0 %v49_v1  ;;  %v96_v7 = vld [vmem:[%s3749_s1 + $0x1f0] sm:$0xff]  ;;  %v95_v10 = vld [vmem:[%s3749_s1 + $0x1e8] sm:$0xff]  ;;  %v451_v38 = vunpack.c.0.s8 %v450_v28 }
   0x4   :  { %v81_v5 = vld [vmem:[%s3749_s1 + $0x178] sm:$0xff]  ;;  %1734 = vmatprep.subr.mxu1 %v97_v3  ;;  %1701 = vmatprep.subr.mxu0 %v64_v2  ;;  %v80_v9 = vld [vmem:[%s3749_s1 + $0x170] sm:$0xff]  ;;  %v62_v11 = vld [vmem:[%s3749_s1 + $0xe0] sm:$0xff] }
   0x5   :  { %1735 = vmatpush3.msra.mxu1 %v81_v5  ;;  %1702 = vmatpush3.msra.mxu0 %v48_v4  ;;  %v79_v12 = vld [vmem:[%s3749_s1 + $0x168] sm:$0xff]  ;;  %v46_v13 = vld [vmem:[%s3749_s1 + $0x60] sm:$0xff]  ;;  %v61_v15 = vld [vmem:[%s3749_s1 + $0xd8] sm:$0xff]  ;;  %v2480_v48 = vsub.s32 %v451_v38, %v453_v39 }
   0x6   :  { %1736 = vmatprep.subr.mxu1 %v96_v7  ;;  %1703 = vmatprep.subr.mxu0 %v63_v6  ;;  %v94_v14 = vld [vmem:[%s3749_s1 + $0x1e0] sm:$0xff]  ;;  %v45_v17 = vld [vmem:[%s3749_s1 + $0x58] sm:$0xff]  ;;  %v60_v19 = vld [vmem:[%s3749_s1 + $0xd0] sm:$0xff] }
   0x7   :  { %1737 = vmatpush3.msra.mxu1 %v80_v9  ;;  %1704 = vmatpush3.msra.mxu0 %v47_v8  ;;  %v78_v16 = vld [vmem:[%s3749_s1 + $0x160] sm:$0xff]  ;;  %v93_v18 = vld [vmem:[%s3749_s1 + $0x1d8] sm:$0xff]  ;;  %v44_v21 = vld [vmem:[%s3749_s1 + $0x50] sm:$0xff] }
   0x8   :  { %1738 = vmatprep.subr.mxu1 %v95_v10  ;;  %1705 = vmatprep.subr.mxu0 %v62_v11  ;;  %v77_v20 = vld [vmem:[%s3749_s1 + $0x158] sm:$0xff]  ;;  %v92_v22 = vld [vmem:[%s3749_s1 + $0x1d0] sm:$0xff]  ;;  %v59_v23 = vld [vmem:[%s3749_s1 + $0xc8] sm:$0xff] }
   0x9   :  { %1739 = vmatpush3.msra.mxu1 %v79_v12  ;;  %1706 = vmatpush3.msra.mxu0 %v46_v13  ;;  %v76_v24 = vld [vmem:[%s3749_s1 + $0x150] sm:$0xff]  ;;  %v43_v25 = vld [vmem:[%s3749_s1 + $0x48] sm:$0xff]  ;;  %v58_v30 = vld [vmem:[%s3749_s1 + $0xc0] sm:$0xff] }
   0xa   :  { %1740 = vmatprep.subr.mxu1 %v94_v14  ;;  %1707 = vmatprep.subr.mxu0 %v61_v15  ;;  %v91_v26 = vld [vmem:[%s3749_s1 + $0x1c8] sm:$0xff]  ;;  %v42_v32 = vld [vmem:[%s3749_s1 + $0x40] sm:$0xff]  ;;  %v57_v34 = vld [vmem:[%s3749_s1 + $0xb8] sm:$0xff] }
   0xb   :  { %1741 = vmatpush3.msra.mxu1 %v78_v16  ;;  %1708 = vmatpush3.msra.mxu0 %v45_v17  ;;  %v75_v31 = vld [vmem:[%s3749_s1 + $0x148] sm:$0xff]  ;;  %v90_v33 = vld [vmem:[%s3749_s1 + $0x1c0] sm:$0xff]  ;;  %v41_v36 = vld [vmem:[%s3749_s1 + $0x38] sm:$0xff] }
   0xc   :  { %1742 = vmatprep.subr.mxu1 %v93_v18  ;;  %1709 = vmatprep.subr.mxu0 %v60_v19  ;;  %v74_v35 = vld [vmem:[%s3749_s1 + $0x140] sm:$0xff]  ;;  %v89_v37 = vld [vmem:[%s3749_s1 + $0x1b8] sm:$0xff]  ;;  %v56_v40 = vld [vmem:[%s3749_s1 + $0xb0] sm:$0xff] }
   0xd   :  { %1743 = vmatpush3.msra.mxu1 %v77_v20  ;;  %1710 = vmatpush3.msra.mxu0 %v44_v21  ;;  %v73_v41 = vld [vmem:[%s3749_s1 + $0x138] sm:$0xff]  ;;  %v40_v42 = vld [vmem:[%s3749_s1 + $0x30] sm:$0xff]  ;;  %v55_v44 = vld [vmem:[%s3749_s1 + $0xa8] sm:$0xff] }
   0xe   :  { %1744 = vmatprep.subr.mxu1 %v92_v22  ;;  %1711 = vmatprep.subr.mxu0 %v59_v23  ;;  %v88_v43 = vld [vmem:[%s3749_s1 + $0x1b0] sm:$0xff]  ;;  %v39_v46 = vld [vmem:[%s3749_s1 + $0x28] sm:$0xff]  ;;  %v54_v49 = vld [vmem:[%s3749_s1 + $0xa0] sm:$0xff] }
   0xf   :  { %1745 = vmatpush3.msra.mxu1 %v76_v24  ;;  %1712 = vmatpush3.msra.mxu0 %v43_v25  ;;  %v72_v45 = vld [vmem:[%s3749_s1 + $0x130] sm:$0xff]  ;;  %v87_v47 = vld [vmem:[%s3749_s1 + $0x1a8] sm:$0xff]  ;;  %v27_v51 = vld [vmem:[%s3748_s0] sm:$0xff] }
  0x10   :  { %1746 = vmatprep.subr.mxu1 %v91_v26  ;;  %1713 = vmatprep.subr.mxu0 %v58_v30  ;;  %v71_v50 = vld [vmem:[%s3749_s1 + $0x128] sm:$0xff]  ;;  %v38_v52 = vld [vmem:[%s3749_s1 + $0x20] sm:$0xff]  ;;  %v53_v54 = vld [vmem:[%s3749_s1 + $0x98] sm:$0xff]  ;;  %v455_v58 = vrot.slane %v27_v51, %v2480_v48  ;;  %v448_v59 = vcombine.high %v27_v51, %v27_v51 }
  0x11   :  { %1747 = vmatpush3.msra.mxu1 %v75_v31  ;;  %1714 = vmatpush3.msra.mxu0 %v42_v32  ;;  %v86_v53 = vld [vmem:[%s3749_s1 + $0x1a0] sm:$0xff]  ;;  %v37_v56 = vld [vmem:[%s3749_s1 + $0x18] sm:$0xff]  ;;  %v52_v60 = vld [vmem:[%s3749_s1 + $0x90] sm:$0xff] }
  0x12   :  { %1748 = vmatprep.subr.mxu1 %v90_v33  ;;  %1715 = vmatprep.subr.mxu0 %v57_v34  ;;  %v70_v55 = vld [vmem:[%s3749_s1 + $0x120] sm:$0xff]  ;;  %v85_v57 = vld [vmem:[%s3749_s1 + $0x198] sm:$0xff]  ;;  %v36_v62 = vld [vmem:[%s3749_s1 + $0x10] sm:$0xff]  ;;  %v463_v4 = vcombine.high %v455_v58, %v455_v58  ;;  %v462_v5 = vrot.slane %v448_v59, %v2480_v48 }
  0x13   :  { %1749 = vmatpush3.msra.mxu1 %v74_v35  ;;  %1716 = vmatpush3.msra.mxu0 %v41_v36  ;;  %v69_v61 = vld [vmem:[%s3749_s1 + $0x118] sm:$0xff]  ;;  %v84_v63 = vld [vmem:[%s3749_s1 + $0x190] sm:$0xff]  ;;  %v51_v0 = vld [vmem:[%s3749_s1 + $0x88] sm:$0xff] }
  0x14   :  { %1750 = vmatprep.subr.mxu1 %v89_v37  ;;  %1717 = vmatprep.subr.mxu0 %v56_v40  ;;  %v68_v1 = vld [vmem:[%s3749_s1 + $0x110] sm:$0xff]  ;;  %v35_v2 = vld [vmem:[%s3749_s1 + $0x8] sm:$0xff]  ;;  %v50_v6 = vld [vmem:[%s3749_s1 + $0x80] sm:$0xff]  ;;  %v464_v12 = vcombine.high %v462_v5, %v462_v5 }
  0x15   :  { %1751 = vmatpush3.msra.mxu1 %v73_v41  ;;  %1718 = vmatpush3.msra.mxu0 %v40_v42  ;;  %v83_v3 = vld [vmem:[%s3749_s1 + $0x188] sm:$0xff]  ;;  %v34_v7 = vld [vmem:[%s3749_s1] sm:$0xff]  ;;  %v129_v10 = vld [vmem:[%s3749_s1 + $0x2f8] sm:$0xff] }
  0x16   :  { %1752 = vmatprep.subr.mxu1 %v88_v43  ;;  %1719 = vmatprep.subr.mxu0 %v55_v44  ;;  %v67_v8 = vld [vmem:[%s3749_s1 + $0x108] sm:$0xff]  ;;  %v82_v9 = vld [vmem:[%s3749_s1 + $0x180] sm:$0xff]  ;;  %v113_v13 = vld [vmem:[%s3749_s1 + $0x278] sm:$0xff] }
  0x17   :  { %1753 = vmatpush3.msra.mxu1 %v72_v45  ;;  %1720 = vmatpush3.msra.mxu0 %v39_v46  ;;  %v66_v11 = vld [vmem:[%s3749_s1 + $0x100] sm:$0xff]  ;;  %v128_v14 = vld [vmem:[%s3749_s1 + $0x2f0] sm:$0xff]  ;;  %v161_v15 = vld [vmem:[%s3749_s1 + $0x3f8] sm:$0xff] }
  0x18   :  { %1754 = vmatprep.subr.mxu1 %v87_v47  ;;  %1721 = vmatprep.subr.mxu0 %v54_v49  ;;  %v112_v16 = vld [vmem:[%s3749_s1 + $0x270] sm:$0xff]  ;;  %v145_v17 = vld [vmem:[%s3749_s1 + $0x378] sm:$0xff]  ;;  %v127_v18 = vld [vmem:[%s3749_s1 + $0x2e8] sm:$0xff] }
  0x19   :  { %1755 = vmatpush3.msra.mxu1 %v71_v50  ;;  %1722 = vmatpush3.msra.mxu0 %v38_v52  ;;  %v160_v19 = vld [vmem:[%s3749_s1 + $0x3f0] sm:$0xff]  ;;  %v111_v20 = vld [vmem:[%s3749_s1 + $0x268] sm:$0xff]  ;;  %v126_v22 = vld [vmem:[%s3749_s1 + $0x2e0] sm:$0xff] }
  0x1a   :  { %1756 = vmatprep.subr.mxu1 %v86_v53  ;;  %1723 = vmatprep.subr.mxu0 %v53_v54  ;;  %v144_v21 = vld [vmem:[%s3749_s1 + $0x370] sm:$0xff]  ;;  %v159_v23 = vld [vmem:[%s3749_s1 + $0x3e8] sm:$0xff]  ;;  %v110_v24 = vld [vmem:[%s3749_s1 + $0x260] sm:$0xff] }
  0x1b   :  { %1757 = vmatpush3.msra.mxu1 %v70_v55  ;;  %1724 = vmatpush3.msra.mxu0 %v37_v56  ;;  %v143_v25 = vld [vmem:[%s3749_s1 + $0x368] sm:$0xff]  ;;  %v125_v26 = vld [vmem:[%s3749_s1 + $0x2d8] sm:$0xff]  ;;  %v158_v27 = vld [vmem:[%s3749_s1 + $0x3e0] sm:$0xff] }
  0x1c   :  { %1758 = vmatprep.subr.mxu1 %v85_v57  ;;  %1725 = vmatprep.subr.mxu0 %v52_v60  ;;  %v109_v28 = vld [vmem:[%s3749_s1 + $0x258] sm:$0xff]  ;;  %v142_v29 = vld [vmem:[%s3749_s1 + $0x360] sm:$0xff]  ;;  %v124_v30 = vld [vmem:[%s3749_s1 + $0x2d0] sm:$0xff] }
  0x1d   :  { %1759 = vmatpush3.msra.mxu1 %v69_v61  ;;  %1726 = vmatpush3.msra.mxu0 %v36_v62  ;;  %v157_v31 = vld [vmem:[%s3749_s1 + $0x3d8] sm:$0xff]  ;;  %v108_v32 = vld [vmem:[%s3749_s1 + $0x250] sm:$0xff]  ;;  %v123_v34 = vld [vmem:[%s3749_s1 + $0x2c8] sm:$0xff] }
  0x1e   :  { %1760 = vmatprep.subr.mxu1 %v84_v63  ;;  %1727 = vmatprep.subr.mxu0 %v51_v0  ;;  %v141_v33 = vld [vmem:[%s3749_s1 + $0x358] sm:$0xff]  ;;  %v156_v35 = vld [vmem:[%s3749_s1 + $0x3d0] sm:$0xff]  ;;  %v107_v36 = vld [vmem:[%s3749_s1 + $0x248] sm:$0xff] }
  0x1f   :  { %1761 = vmatpush3.msra.mxu1 %v68_v1  ;;  %1728 = vmatpush3.msra.mxu0 %v35_v2  ;;  %v140_v37 = vld [vmem:[%s3749_s1 + $0x350] sm:$0xff]  ;;  %v122_v38 = vld [vmem:[%s3749_s1 + $0x2c0] sm:$0xff]  ;;  %v155_v39 = vld [vmem:[%s3749_s1 + $0x3c8] sm:$0xff] }
  0x20   :  { %1762 = vmatprep.subr.mxu1 %v83_v3  ;;  %1729 = vmatprep.subr.mxu0 %v50_v6  ;;  %v106_v40 = vld [vmem:[%s3749_s1 + $0x240] sm:$0xff]  ;;  %v139_v41 = vld [vmem:[%s3749_s1 + $0x348] sm:$0xff]  ;;  %v121_v42 = vld [vmem:[%s3749_s1 + $0x2b8] sm:$0xff] }
  0x21   :  { %646 = vmatprep.mubr.f32.mxu0 %v463_v4  ;;  %1730 = vmatpush3.msra.mxu0 %v34_v7  ;;  %v154_v43 = vld [vmem:[%s3749_s1 + $0x3c0] sm:$0xff]  ;;  %v105_v44 = vld [vmem:[%s3749_s1 + $0x238] sm:$0xff]  ;;  %v120_v46 = vld [vmem:[%s3749_s1 + $0x2b0] sm:$0xff] }
  0x22   :  { %1763 = vmatpush3.msra.mxu1 %v67_v8  ;;  %647 = vmatmul.mubr.f32.vlgmr.msra.gmra.mxu0 %v455_v58  ;;  %v138_v45 = vld [vmem:[%s3749_s1 + $0x340] sm:$0xff]  ;;  %v153_v47 = vld [vmem:[%s3749_s1 + $0x3b8] sm:$0xff]  ;;  %v104_v49 = vld [vmem:[%s3749_s1 + $0x230] sm:$0xff] }
  0x23   :  { %1764 = vmatprep.subr.mxu1 %v82_v9  ;;  %1769 = vmatprep.subr.mxu0 %v129_v10  ;;  %v137_v50 = vld [vmem:[%s3749_s1 + $0x338] sm:$0xff]  ;;  %v119_v51 = vld [vmem:[%s3749_s1 + $0x2a8] sm:$0xff]  ;;  %v152_v52 = vld [vmem:[%s3749_s1 + $0x3b0] sm:$0xff] }
  0x24   :  { %1765 = vmatpush3.msra.mxu1 %v66_v11  ;;  %716 = vmatprep.mubr.f32.mxu1 %v464_v12  ;;  %v103_v53 = vld [vmem:[%s3749_s1 + $0x228] sm:$0xff]  ;;  %v136_v54 = vld [vmem:[%s3749_s1 + $0x330] sm:$0xff]  ;;  %v118_v55 = vld [vmem:[%s3749_s1 + $0x2a0] sm:$0xff] }
  0x25   :  { %1770 = vmatpush3.msra.mxu0 %v113_v13  ;;  %717 = vmatmul.mubr.f32.vlgmr.msra.gmra.mxu1 %v462_v5  ;;  %v151_v56 = vld [vmem:[%s3749_s1 + $0x3a8] sm:$0xff]  ;;  %v102_v57 = vld [vmem:[%s3749_s1 + $0x220] sm:$0xff]  ;;  %v117_v60 = vld [vmem:[%s3749_s1 + $0x298] sm:$0xff] }
  0x26   :  { %1771 = vmatprep.subr.mxu0 %v128_v14  ;;  %1804 = vmatprep.subr.mxu1 %v161_v15  ;;  %v28_v58 = vld [vmem:[%s3748_s0 + $0x8] sm:$0xff]  ;;  %v150_v61 = vld [vmem:[%s3749_s1 + $0x3a0] sm:$0xff]  ;;  %v101_v62 = vld [vmem:[%s3749_s1 + $0x218] sm:$0xff] }
  0x27   :  { %1772 = vmatpush3.msra.mxu0 %v112_v16  ;;  %1805 = vmatpush3.msra.mxu1 %v145_v17  ;;  %v135_v59 = vld [vmem:[%s3749_s1 + $0x328] sm:$0xff]  ;;  %v134_v63 = vld [vmem:[%s3749_s1 + $0x320] sm:$0xff]  ;;  %v116_v0 = vld [vmem:[%s3749_s1 + $0x290] sm:$0xff]  ;;  %v465_v1 = vcombine.high %v28_v58, %v28_v58  ;;  %v472_v4 = vrot.slane %v28_v58, %v2480_v48 }
  0x28   :  { %1773 = vmatprep.subr.mxu0 %v127_v18  ;;  %1806 = vmatprep.subr.mxu1 %v160_v19  ;;  %v149_v2 = vld [vmem:[%s3749_s1 + $0x398] sm:$0xff]  ;;  %v100_v3 = vld [vmem:[%s3749_s1 + $0x210] sm:$0xff]  ;;  %v115_v6 = vld [vmem:[%s3749_s1 + $0x288] sm:$0xff] }
  0x29   :  { %1774 = vmatpush3.msra.mxu0 %v111_v20  ;;  %1807 = vmatpush3.msra.mxu1 %v144_v21  ;;  %v133_v5 = vld [vmem:[%s3749_s1 + $0x318] sm:$0xff]  ;;  %v148_v7 = vld [vmem:[%s3749_s1 + $0x390] sm:$0xff]  ;;  %v99_v8 = vld [vmem:[%s3749_s1 + $0x208] sm:$0xff]  ;;  %v479_v11 = vrot.slane %v465_v1, %v2480_v48  ;;  %v480_v14 = vcombine.high %v472_v4, %v472_v4 }
  0x2a   :  { %1775 = vmatprep.subr.mxu0 %v126_v22  ;;  %1808 = vmatprep.subr.mxu1 %v159_v23  ;;  %v132_v9 = vld [vmem:[%s3749_s1 + $0x310] sm:$0xff]  ;;  %v114_v10 = vld [vmem:[%s3749_s1 + $0x280] sm:$0xff]  ;;  %v147_v12 = vld [vmem:[%s3749_s1 + $0x388] sm:$0xff] }
  0x2b   :  { %1776 = vmatpush3.msra.mxu0 %v110_v24  ;;  %1809 = vmatpush3.msra.mxu1 %v143_v25  ;;  %v98_v13 = vld [vmem:[%s3749_s1 + $0x200] sm:$0xff]  ;;  %v131_v15 = vld [vmem:[%s3749_s1 + $0x308] sm:$0xff]  ;;  %v193_v17 = vld [vmem:[%s3749_s1 + $0x4f8] sm:$0xff]  ;;  %v481_v19 = vcombine.high %v479_v11, %v479_v11 }
  0x2c   :  { %1777 = vmatprep.subr.mxu0 %v125_v26  ;;  %1810 = vmatprep.subr.mxu1 %v158_v27  ;;  %v146_v16 = vld [vmem:[%s3749_s1 + $0x380] sm:$0xff]  ;;  %v177_v20 = vld [vmem:[%s3749_s1 + $0x478] sm:$0xff]  ;;  %v192_v21 = vld [vmem:[%s3749_s1 + $0x4f0] sm:$0xff] }
  0x2d   :  { %1778 = vmatpush3.msra.mxu0 %v109_v28  ;;  %1811 = vmatpush3.msra.mxu1 %v142_v29  ;;  %v130_v18 = vld [vmem:[%s3749_s1 + $0x300] sm:$0xff]  ;;  %v225_v22 = vld [vmem:[%s3749_s1 + $0x5f8] sm:$0xff]  ;;  %v176_v23 = vld [vmem:[%s3749_s1 + $0x470] sm:$0xff] }
  0x2e   :  { %1779 = vmatprep.subr.mxu0 %v124_v30  ;;  %1812 = vmatprep.subr.mxu1 %v157_v31  ;;  %v209_v24 = vld [vmem:[%s3749_s1 + $0x578] sm:$0xff]  ;;  %v191_v25 = vld [vmem:[%s3749_s1 + $0x4e8] sm:$0xff]  ;;  %v224_v26 = vld [vmem:[%s3749_s1 + $0x5f0] sm:$0xff] }
  0x2f   :  { %1780 = vmatpush3.msra.mxu0 %v108_v32  ;;  %1813 = vmatpush3.msra.mxu1 %v141_v33  ;;  %v175_v27 = vld [vmem:[%s3749_s1 + $0x468] sm:$0xff]  ;;  %v208_v28 = vld [vmem:[%s3749_s1 + $0x570] sm:$0xff]  ;;  %v190_v29 = vld [vmem:[%s3749_s1 + $0x4e0] sm:$0xff] }
  0x30   :  { %1781 = vmatprep.subr.mxu0 %v123_v34  ;;  %1814 = vmatprep.subr.mxu1 %v156_v35  ;;  %v223_v30 = vld [vmem:[%s3749_s1 + $0x5e8] sm:$0xff]  ;;  %v174_v31 = vld [vmem:[%s3749_s1 + $0x460] sm:$0xff]  ;;  %v189_v33 = vld [vmem:[%s3749_s1 + $0x4d8] sm:$0xff] }
  0x31   :  { %1782 = vmatpush3.msra.mxu0 %v107_v36  ;;  %1815 = vmatpush3.msra.mxu1 %v140_v37  ;;  %v207_v32 = vld [vmem:[%s3749_s1 + $0x568] sm:$0xff]  ;;  %v222_v34 = vld [vmem:[%s3749_s1 + $0x5e0] sm:$0xff]  ;;  %v173_v35 = vld [vmem:[%s3749_s1 + $0x458] sm:$0xff] }
  0x32   :  { %1783 = vmatprep.subr.mxu0 %v122_v38  ;;  %1816 = vmatprep.subr.mxu1 %v155_v39  ;;  %v206_v36 = vld [vmem:[%s3749_s1 + $0x560] sm:$0xff]  ;;  %v188_v37 = vld [vmem:[%s3749_s1 + $0x4d0] sm:$0xff]  ;;  %v221_v38 = vld [vmem:[%s3749_s1 + $0x5d8] sm:$0xff] }
  0x33   :  { %1784 = vmatpush3.msra.mxu0 %v106_v40  ;;  %1817 = vmatpush3.msra.mxu1 %v139_v41  ;;  %v172_v39 = vld [vmem:[%s3749_s1 + $0x450] sm:$0xff]  ;;  %v205_v40 = vld [vmem:[%s3749_s1 + $0x558] sm:$0xff]  ;;  %v187_v41 = vld [vmem:[%s3749_s1 + $0x4c8] sm:$0xff] }
  0x34   :  { %1785 = vmatprep.subr.mxu0 %v121_v42  ;;  %1818 = vmatprep.subr.mxu1 %v154_v43  ;;  %v220_v42 = vld [vmem:[%s3749_s1 + $0x5d0] sm:$0xff]  ;;  %v171_v43 = vld [vmem:[%s3749_s1 + $0x448] sm:$0xff] }
  0x35   :  { %1786 = vmatpush3.msra.mxu0 %v105_v44  ;;  %1819 = vmatpush3.msra.mxu1 %v138_v45  ;;  %v204_v44 = vld [vmem:[%s3749_s1 + $0x550] sm:$0xff]  ;;  %v186_v45 = vld [vmem:[%s3749_s1 + $0x4c0] sm:$0xff]  ;;  %v183_v58 = vld [vmem:[%s3749_s1 + $0x4a8] sm:$0xff] }
  0x36   :  { %1787 = vmatprep.subr.mxu0 %v120_v46  ;;  %1820 = vmatprep.subr.mxu1 %v153_v47  ;;  %v219_v46 = vld [vmem:[%s3749_s1 + $0x5c8] sm:$0xff]  ;;  %v170_v47 = vld [vmem:[%s3749_s1 + $0x440] sm:$0xff]  ;;  %v29_v1 = vld [vmem:[%s3748_s0 + $0x10] sm:$0xff] }
  0x37   :  { %1788 = vmatpush3.msra.mxu0 %v104_v49  ;;  %1821 = vmatpush3.msra.mxu1 %v137_v50  ;;  %v203_v49 = vld [vmem:[%s3749_s1 + $0x548] sm:$0xff]  ;;  %v185_v50 = vld [vmem:[%s3749_s1 + $0x4b8] sm:$0xff] }
  0x38   :  { %1789 = vmatprep.subr.mxu0 %v119_v51  ;;  %1822 = vmatprep.subr.mxu1 %v152_v52  ;;  %v218_v51 = vld [vmem:[%s3749_s1 + $0x5c0] sm:$0xff]  ;;  %v169_v52 = vld [vmem:[%s3749_s1 + $0x438] sm:$0xff] }
  0x39   :  { %1790 = vmatpush3.msra.mxu0 %v103_v53  ;;  %1823 = vmatpush3.msra.mxu1 %v136_v54  ;;  %v202_v53 = vld [vmem:[%s3749_s1 + $0x540] sm:$0xff]  ;;  %v184_v54 = vld [vmem:[%s3749_s1 + $0x4b0] sm:$0xff] }
  0x3a   :  { %1791 = vmatprep.subr.mxu0 %v118_v55  ;;  %1824 = vmatprep.subr.mxu1 %v151_v56  ;;  %v217_v55 = vld [vmem:[%s3749_s1 + $0x5b8] sm:$0xff]  ;;  %v168_v56 = vld [vmem:[%s3749_s1 + $0x430] sm:$0xff] }
  0x3b   :  { %1792 = vmatpush3.msra.mxu0 %v102_v57  ;;  %1825 = vmatpush3.msra.mxu1 %v135_v59  ;;  %v201_v57 = vld [vmem:[%s3749_s1 + $0x538] sm:$0xff]  ;;  %v216_v59 = vld [vmem:[%s3749_s1 + $0x5b0] sm:$0xff] }
  0x3c   :  { %1793 = vmatprep.subr.mxu0 %v117_v60  ;;  %1826 = vmatprep.subr.mxu1 %v150_v61  ;;  %v167_v60 = vld [vmem:[%s3749_s1 + $0x428] sm:$0xff]  ;;  %v200_v61 = vld [vmem:[%s3749_s1 + $0x530] sm:$0xff] }
  0x3d   :  { %1794 = vmatpush3.msra.mxu0 %v101_v62  ;;  %1827 = vmatpush3.msra.mxu1 %v134_v63  ;;  %v182_v62 = vld [vmem:[%s3749_s1 + $0x4a0] sm:$0xff]  ;;  %v215_v63 = vld [vmem:[%s3749_s1 + $0x5a8] sm:$0xff] }
  0x3e   :  { %1795 = vmatprep.subr.mxu0 %v116_v0  ;;  %1828 = vmatprep.subr.mxu1 %v149_v2  ;;  %v166_v0 = vld [vmem:[%s3749_s1 + $0x420] sm:$0xff]  ;;  %v199_v2 = vld [vmem:[%s3749_s1 + $0x528] sm:$0xff] }
  0x3f   :  { %1796 = vmatpush3.msra.mxu0 %v100_v3  ;;  %1829 = vmatpush3.msra.mxu1 %v133_v5  ;;  %v181_v3 = vld [vmem:[%s3749_s1 + $0x498] sm:$0xff] }
  0x40   :  { %1797 = vmatprep.subr.mxu0 %v115_v6  ;;  %1830 = vmatprep.subr.mxu1 %v148_v7  ;;  %v165_v5 = vld [vmem:[%s3749_s1 + $0x418] sm:$0xff]  ;;  %v198_v6 = vld [vmem:[%s3749_s1 + $0x520] sm:$0xff]  ;;  %v180_v7 = vld [vmem:[%s3749_s1 + $0x490] sm:$0xff] }
  0x41   :  { %1798 = vmatpush3.msra.mxu0 %v99_v8  ;;  %1831 = vmatpush3.msra.mxu1 %v132_v9  ;;  %v482_v8 = vcombine.high %v29_v1, %v29_v1  ;;  %v213_v9 = vld [vmem:[%s3749_s1 + $0x598] sm:$0xff] }
  0x42   :  { %1799 = vmatprep.subr.mxu0 %v114_v10  ;;  %1832 = vmatprep.subr.mxu1 %v147_v12  ;;  %v164_v10 = vld [vmem:[%s3749_s1 + $0x410] sm:$0xff]  ;;  %v197_v12 = vld [vmem:[%s3749_s1 + $0x518] sm:$0xff] }
  0x43   :  { %1800 = vmatpush3.msra.mxu0 %v98_v13  ;;  %786 = vmatprep.mubr.f32.mxu0 %v480_v14  ;;  %v179_v13 = vld [vmem:[%s3749_s1 + $0x488] sm:$0xff]  ;;  %v212_v14 = vld [vmem:[%s3749_s1 + $0x590] sm:$0xff] }
  0x44   :  { %1833 = vmatpush3.msra.mxu1 %v131_v15  ;;  %787 = vmatmul.mubr.f32.vlgmr.msra.gmra.mxu0 %v472_v4  ;;  %v214_v4 = vld [vmem:[%s3749_s1 + $0x5a0] sm:$0xff]  ;;  %v163_v15 = vld [vmem:[%s3749_s1 + $0x408] sm:$0xff] }
  0x45   :  { %1834 = vmatprep.subr.mxu1 %v146_v16  ;;  %1839 = vmatprep.subr.mxu0 %v193_v17  ;;  %v196_v16 = vld [vmem:[%s3749_s1 + $0x510] sm:$0xff]  ;;  %v178_v17 = vld [vmem:[%s3749_s1 + $0x480] sm:$0xff] }
  0x46   :  { %1835 = vmatpush3.msra.mxu1 %v130_v18  ;;  %856 = vmatprep.mubr.f32.mxu1 %v481_v19  ;;  %v496_v18 = vrot.slane %v482_v8, %v2480_v48  ;;  %v211_v19 = vld [vmem:[%s3749_s1 + $0x588] sm:$0xff]  ;;  %v30_v8 = vld [vmem:[%s3748_s0 + $0x18] sm:$0xff] }
  0x47   :  { %1840 = vmatpush3.msra.mxu0 %v177_v20  ;;  %857 = vmatmul.mubr.f32.vlgmr.msra.gmra.mxu1 %v479_v11  ;;  %v489_v11 = vrot.slane %v29_v1, %v2480_v48  ;;  %v162_v20 = vld [vmem:[%s3749_s1 + $0x400] sm:$0xff]  ;;  %v247_v1 = vld [vmem:[%s3749_s1 + $0x6a8] sm:$0xff] }
  0x48   :  { %1841 = vmatprep.subr.mxu0 %v192_v21  ;;  %1874 = vmatprep.subr.mxu1 %v225_v22  ;;  %v195_v22 = vld [vmem:[%s3749_s1 + $0x508] sm:$0xff] }
  0x49   :  { %1842 = vmatpush3.msra.mxu0 %v176_v23  ;;  %1875 = vmatpush3.msra.mxu1 %v209_v24  ;;  %v497_v21 = vcombine.high %v489_v11, %v489_v11  ;;  %v210_v23 = vld [vmem:[%s3749_s1 + $0x580] sm:$0xff]  ;;  %v257_v24 = vld [vmem:[%s3749_s1 + $0x6f8] sm:$0xff] }
  0x4a   :  { %1843 = vmatprep.subr.mxu0 %v191_v25  ;;  %1876 = vmatprep.subr.mxu1 %v224_v26  ;;  %v194_v25 = vld [vmem:[%s3749_s1 + $0x500] sm:$0xff]  ;;  %v498_v26 = vcombine.high %v496_v18, %v496_v18 }
  0x4b   :  { %1844 = vmatpush3.msra.mxu0 %v175_v27  ;;  %1877 = vmatpush3.msra.mxu1 %v208_v28  ;;  %v241_v27 = vld [vmem:[%s3749_s1 + $0x678] sm:$0xff]  ;;  %v256_v28 = vld [vmem:[%s3749_s1 + $0x6f0] sm:$0xff] }
  0x4c   :  { %1845 = vmatprep.subr.mxu0 %v190_v29  ;;  %1878 = vmatprep.subr.mxu1 %v223_v30  ;;  %v289_v29 = vld [vmem:[%s3749_s1 + $0x7f8] sm:$0xff]  ;;  %v240_v30 = vld [vmem:[%s3749_s1 + $0x670] sm:$0xff] }
  0x4d   :  { %1846 = vmatpush3.msra.mxu0 %v174_v31  ;;  %1879 = vmatpush3.msra.mxu1 %v207_v32  ;;  %v273_v31 = vld [vmem:[%s3749_s1 + $0x778] sm:$0xff]  ;;  %v255_v32 = vld [vmem:[%s3749_s1 + $0x6e8] sm:$0xff] }
  0x4e   :  { %1847 = vmatprep.subr.mxu0 %v189_v33  ;;  %1880 = vmatprep.subr.mxu1 %v222_v34  ;;  %v288_v33 = vld [vmem:[%s3749_s1 + $0x7f0] sm:$0xff]  ;;  %v239_v34 = vld [vmem:[%s3749_s1 + $0x668] sm:$0xff] }
  0x4f   :  { %1848 = vmatpush3.msra.mxu0 %v173_v35  ;;  %1881 = vmatpush3.msra.mxu1 %v206_v36  ;;  %v272_v35 = vld [vmem:[%s3749_s1 + $0x770] sm:$0xff]  ;;  %v254_v36 = vld [vmem:[%s3749_s1 + $0x6e0] sm:$0xff] }
  0x50   :  { %1849 = vmatprep.subr.mxu0 %v188_v37  ;;  %1882 = vmatprep.subr.mxu1 %v221_v38  ;;  %v287_v37 = vld [vmem:[%s3749_s1 + $0x7e8] sm:$0xff]  ;;  %v238_v38 = vld [vmem:[%s3749_s1 + $0x660] sm:$0xff] }
  0x51   :  { %1850 = vmatpush3.msra.mxu0 %v172_v39  ;;  %1883 = vmatpush3.msra.mxu1 %v205_v40  ;;  %v271_v39 = vld [vmem:[%s3749_s1 + $0x768] sm:$0xff]  ;;  %v253_v40 = vld [vmem:[%s3749_s1 + $0x6d8] sm:$0xff] }
  0x52   :  { %1851 = vmatprep.subr.mxu0 %v187_v41  ;;  %1884 = vmatprep.subr.mxu1 %v220_v42  ;;  %v286_v41 = vld [vmem:[%s3749_s1 + $0x7e0] sm:$0xff]  ;;  %v237_v42 = vld [vmem:[%s3749_s1 + $0x658] sm:$0xff] }
  0x53   :  { %1852 = vmatpush3.msra.mxu0 %v171_v43  ;;  %1885 = vmatpush3.msra.mxu1 %v204_v44  ;;  %v270_v43 = vld [vmem:[%s3749_s1 + $0x760] sm:$0xff]  ;;  %v252_v44 = vld [vmem:[%s3749_s1 + $0x6d0] sm:$0xff] }
  0x54   :  { %1853 = vmatprep.subr.mxu0 %v186_v45  ;;  %1886 = vmatprep.subr.mxu1 %v219_v46  ;;  %v285_v45 = vld [vmem:[%s3749_s1 + $0x7d8] sm:$0xff]  ;;  %v236_v46 = vld [vmem:[%s3749_s1 + $0x650] sm:$0xff] }
  0x55   :  { %1854 = vmatpush3.msra.mxu0 %v170_v47  ;;  %1887 = vmatpush3.msra.mxu1 %v203_v49  ;;  %v269_v47 = vld [vmem:[%s3749_s1 + $0x758] sm:$0xff]  ;;  %v251_v49 = vld [vmem:[%s3749_s1 + $0x6c8] sm:$0xff] }
  0x56   :  { %1855 = vmatprep.subr.mxu0 %v185_v50  ;;  %1888 = vmatprep.subr.mxu1 %v218_v51  ;;  %v284_v50 = vld [vmem:[%s3749_s1 + $0x7d0] sm:$0xff]  ;;  %v235_v51 = vld [vmem:[%s3749_s1 + $0x648] sm:$0xff] }
  0x57   :  { %1856 = vmatpush3.msra.mxu0 %v169_v52  ;;  %1889 = vmatpush3.msra.mxu1 %v202_v53  ;;  %v268_v52 = vld [vmem:[%s3749_s1 + $0x750] sm:$0xff]  ;;  %v250_v53 = vld [vmem:[%s3749_s1 + $0x6c0] sm:$0xff] }
  0x58   :  { %1857 = vmatprep.subr.mxu0 %v184_v54  ;;  %1890 = vmatprep.subr.mxu1 %v217_v55  ;;  %v283_v54 = vld [vmem:[%s3749_s1 + $0x7c8] sm:$0xff]  ;;  %v234_v55 = vld [vmem:[%s3749_s1 + $0x640] sm:$0xff] }
  0x59   :  { %1858 = vmatpush3.msra.mxu0 %v168_v56  ;;  %1891 = vmatpush3.msra.mxu1 %v201_v57  ;;  %v267_v56 = vld [vmem:[%s3749_s1 + $0x748] sm:$0xff]  ;;  %v249_v57 = vld [vmem:[%s3749_s1 + $0x6b8] sm:$0xff] }
  0x5a   :  { %1859 = vmatprep.subr.mxu0 %v183_v58  ;;  %1892 = vmatprep.subr.mxu1 %v216_v59  ;;  %v282_v58 = vld [vmem:[%s3749_s1 + $0x7c0] sm:$0xff]  ;;  %v233_v59 = vld [vmem:[%s3749_s1 + $0x638] sm:$0xff] }
  0x5b   :  { %1860 = vmatpush3.msra.mxu0 %v167_v60  ;;  %1893 = vmatpush3.msra.mxu1 %v200_v61  ;;  %v266_v60 = vld [vmem:[%s3749_s1 + $0x740] sm:$0xff]  ;;  %v248_v61 = vld [vmem:[%s3749_s1 + $0x6b0] sm:$0xff] }
  0x5c   :  { %1861 = vmatprep.subr.mxu0 %v182_v62  ;;  %1894 = vmatprep.subr.mxu1 %v215_v63  ;;  %v281_v62 = vld [vmem:[%s3749_s1 + $0x7b8] sm:$0xff]  ;;  %v232_v63 = vld [vmem:[%s3749_s1 + $0x630] sm:$0xff] }
  0x5d   :  { %1862 = vmatpush3.msra.mxu0 %v166_v0  ;;  %1895 = vmatpush3.msra.mxu1 %v199_v2  ;;  %v265_v0 = vld [vmem:[%s3749_s1 + $0x738] sm:$0xff]  ;;  %v280_v2 = vld [vmem:[%s3749_s1 + $0x7b0] sm:$0xff] }
  0x5e   :  { %1863 = vmatprep.subr.mxu0 %v181_v3  ;;  %1896 = vmatprep.subr.mxu1 %v214_v4  ;;  %v231_v3 = vld [vmem:[%s3749_s1 + $0x628] sm:$0xff]  ;;  %v264_v4 = vld [vmem:[%s3749_s1 + $0x730] sm:$0xff] }
  0x5f   :  { %1864 = vmatpush3.msra.mxu0 %v165_v5  ;;  %1897 = vmatpush3.msra.mxu1 %v198_v6  ;;  %v246_v5 = vld [vmem:[%s3749_s1 + $0x6a0] sm:$0xff]  ;;  %v279_v6 = vld [vmem:[%s3749_s1 + $0x7a8] sm:$0xff] }
  0x60   :  { %1865 = vmatprep.subr.mxu0 %v180_v7  ;;  %1898 = vmatprep.subr.mxu1 %v213_v9  ;;  %v230_v7 = vld [vmem:[%s3749_s1 + $0x620] sm:$0xff]  ;;  %v263_v9 = vld [vmem:[%s3749_s1 + $0x728] sm:$0xff] }
  0x61   :  { %1866 = vmatpush3.msra.mxu0 %v164_v10  ;;  %1899 = vmatpush3.msra.mxu1 %v197_v12  ;;  %v245_v10 = vld [vmem:[%s3749_s1 + $0x698] sm:$0xff] }
  0x62   :  { %1867 = vmatprep.subr.mxu0 %v179_v13  ;;  %1900 = vmatprep.subr.mxu1 %v212_v14  ;;  %v229_v12 = vld [vmem:[%s3749_s1 + $0x618] sm:$0xff]  ;;  %v262_v13 = vld [vmem:[%s3749_s1 + $0x720] sm:$0xff]  ;;  %v244_v14 = vld [vmem:[%s3749_s1 + $0x690] sm:$0xff] }
  0x63   :  { %1868 = vmatpush3.msra.mxu0 %v163_v15  ;;  %1901 = vmatpush3.msra.mxu1 %v196_v16  ;;  %v499_v15 = vcombine.high %v30_v8, %v30_v8  ;;  %v277_v16 = vld [vmem:[%s3749_s1 + $0x798] sm:$0xff] }
  0x64   :  { %1869 = vmatprep.subr.mxu0 %v178_v17  ;;  %1902 = vmatprep.subr.mxu1 %v211_v19  ;;  %v228_v17 = vld [vmem:[%s3749_s1 + $0x610] sm:$0xff]  ;;  %v261_v19 = vld [vmem:[%s3749_s1 + $0x718] sm:$0xff] }
  0x65   :  { %1870 = vmatpush3.msra.mxu0 %v162_v20  ;;  %926 = vmatprep.mubr.f32.mxu0 %v497_v21  ;;  %v243_v20 = vld [vmem:[%s3749_s1 + $0x688] sm:$0xff]  ;;  %v276_v21 = vld [vmem:[%s3749_s1 + $0x790] sm:$0xff] }
  0x66   :  { %1903 = vmatpush3.msra.mxu1 %v195_v22  ;;  %927 = vmatmul.mubr.f32.vlgmr.msra.gmra.mxu0 %v489_v11  ;;  %v278_v11 = vld [vmem:[%s3749_s1 + $0x7a0] sm:$0xff]  ;;  %v227_v22 = vld [vmem:[%s3749_s1 + $0x608] sm:$0xff] }
  0x67   :  { %1904 = vmatprep.subr.mxu1 %v210_v23  ;;  %1909 = vmatprep.subr.mxu0 %v257_v24  ;;  %v260_v23 = vld [vmem:[%s3749_s1 + $0x710] sm:$0xff]  ;;  %v242_v24 = vld [vmem:[%s3749_s1 + $0x680] sm:$0xff] }
  0x68   :  { %1905 = vmatpush3.msra.mxu1 %v194_v25  ;;  %996 = vmatprep.mubr.f32.mxu1 %v498_v26  ;;  %v513_v25 = vrot.slane %v499_v15, %v2480_v48  ;;  %v275_v26 = vld [vmem:[%s3749_s1 + $0x788] sm:$0xff] }
  0x69   :  { %1910 = vmatpush3.msra.mxu0 %v241_v27  ;;  %997 = vmatmul.mubr.f32.vlgmr.msra.gmra.mxu1 %v496_v18  ;;  %v506_v18 = vrot.slane %v30_v8, %v2480_v48  ;;  %v226_v27 = vld [vmem:[%s3749_s1 + $0x600] sm:$0xff] }
  0x6a   :  { %1911 = vmatprep.subr.mxu0 %v256_v28  ;;  %1944 = vmatprep.subr.mxu1 %v289_v29  ;;  %v259_v29 = vld [vmem:[%s3749_s1 + $0x708] sm:$0xff] }
  0x6b   :  { %1912 = vmatpush3.msra.mxu0 %v240_v30  ;;  %1945 = vmatpush3.msra.mxu1 %v273_v31  ;;  %v514_v28 = vcombine.high %v506_v18, %v506_v18  ;;  %v274_v30 = vld [vmem:[%s3749_s1 + $0x780] sm:$0xff]  ;;  %v321_v31 = vld [vmem:[%s3749_s1 + $0x8f8] sm:$0xff] }
  0x6c   :  { %1913 = vmatprep.subr.mxu0 %v255_v32  ;;  %1946 = vmatprep.subr.mxu1 %v288_v33  ;;  %v258_v32 = vld [vmem:[%s3749_s1 + $0x700] sm:$0xff]  ;;  %v515_v33 = vcombine.high %v513_v25, %v513_v25 }
  0x6d   :  { %1914 = vmatpush3.msra.mxu0 %v239_v34  ;;  %1947 = vmatpush3.msra.mxu1 %v272_v35  ;;  %v305_v34 = vld [vmem:[%s3749_s1 + $0x878] sm:$0xff]  ;;  %v320_v35 = vld [vmem:[%s3749_s1 + $0x8f0] sm:$0xff] }
  0x6e   :  { %1915 = vmatprep.subr.mxu0 %v254_v36  ;;  %1948 = vmatprep.subr.mxu1 %v287_v37  ;;  %v353_v36 = vld [vmem:[%s3749_s1 + $0x9f8] sm:$0xff]  ;;  %v304_v37 = vld [vmem:[%s3749_s1 + $0x870] sm:$0xff] }
  0x6f   :  { %1916 = vmatpush3.msra.mxu0 %v238_v38  ;;  %1949 = vmatpush3.msra.mxu1 %v271_v39 }
  0x70   :  { %1917 = vmatprep.subr.mxu0 %v253_v40  ;;  %1950 = vmatprep.subr.mxu1 %v286_v41 }
  0x71   :  { %1918 = vmatpush3.msra.mxu0 %v237_v42  ;;  %1951 = vmatpush3.msra.mxu1 %v270_v43 }
  0x72   :  { %1919 = vmatprep.subr.mxu0 %v252_v44  ;;  %1952 = vmatprep.subr.mxu1 %v285_v45 }
  0x73   :  { %1920 = vmatpush3.msra.mxu0 %v236_v46  ;;  %1953 = vmatpush3.msra.mxu1 %v269_v47 }
  0x74   :  { %1921 = vmatprep.subr.mxu0 %v251_v49  ;;  %1954 = vmatprep.subr.mxu1 %v284_v50 }
  0x75   :  { %1922 = vmatpush3.msra.mxu0 %v235_v51  ;;  %1955 = vmatpush3.msra.mxu1 %v268_v52 }
  0x76   :  { %1923 = vmatprep.subr.mxu0 %v250_v53  ;;  %1956 = vmatprep.subr.mxu1 %v283_v54 }
  0x77   :  { %1924 = vmatpush3.msra.mxu0 %v234_v55  ;;  %1957 = vmatpush3.msra.mxu1 %v267_v56 }
  0x78   :  { %1925 = vmatprep.subr.mxu0 %v249_v57  ;;  %1958 = vmatprep.subr.mxu1 %v282_v58 }
  0x79   :  { %1926 = vmatpush3.msra.mxu0 %v233_v59  ;;  %1959 = vmatpush3.msra.mxu1 %v266_v60 }
  0x7a   :  { %1927 = vmatprep.subr.mxu0 %v248_v61  ;;  %1960 = vmatprep.subr.mxu1 %v281_v62 }
  0x7b   :  { %1928 = vmatpush3.msra.mxu0 %v232_v63  ;;  %1961 = vmatpush3.msra.mxu1 %v265_v0 }
  0x7c   :  { %1929 = vmatprep.subr.mxu0 %v247_v1  ;;  %1962 = vmatprep.subr.mxu1 %v280_v2 }
  0x7d   :  { %1930 = vmatpush3.msra.mxu0 %v231_v3  ;;  %1963 = vmatpush3.msra.mxu1 %v264_v4 }
  0x7e   :  { %1931 = vmatprep.subr.mxu0 %v246_v5  ;;  %1964 = vmatprep.subr.mxu1 %v279_v6 }
  0x7f   :  { %1932 = vmatpush3.msra.mxu0 %v230_v7  ;;  %1965 = vmatpush3.msra.mxu1 %v263_v9 }
  0x80   :  { %1933 = vmatprep.subr.mxu0 %v245_v10  ;;  %1966 = vmatprep.subr.mxu1 %v278_v11 }
  0x81   :  { %1934 = vmatpush3.msra.mxu0 %v229_v12  ;;  %1967 = vmatpush3.msra.mxu1 %v262_v13 }
  0x82   :  { %1935 = vmatprep.subr.mxu0 %v244_v14  ;;  %1968 = vmatprep.subr.mxu1 %v277_v16 }
  0x83   :  { %1936 = vmatpush3.msra.mxu0 %v228_v17  ;;  %1969 = vmatpush3.msra.mxu1 %v261_v19 }
  0x84   :  { %1937 = vmatprep.subr.mxu0 %v243_v20  ;;  %1970 = vmatprep.subr.mxu1 %v276_v21 }
  0x85   :  { %1938 = vmatpush3.msra.mxu0 %v227_v22  ;;  %1971 = vmatpush3.msra.mxu1 %v260_v23 }
  0x86   :  { %1939 = vmatprep.subr.mxu0 %v242_v24  ;;  %1972 = vmatprep.subr.mxu1 %v275_v26 }
  0x87   :  { %1940 = vmatpush3.msra.mxu0 %v226_v27  ;;  %1066 = vmatprep.mubr.f32.mxu0 %v514_v28 }
  0x88   :  { %1973 = vmatpush3.msra.mxu1 %v259_v29  ;;  %1067 = vmatmul.mubr.f32.vlgmr.msra.gmra.mxu0 %v506_v18 }
  0x89   :  { %1974 = vmatprep.subr.mxu1 %v274_v30  ;;  %1979 = vmatprep.subr.mxu0 %v321_v31 }
  0x8a   :  { %1975 = vmatpush3.msra.mxu1 %v258_v32 }
  0x8b   :  { %12 = vsyncpa [#allocation3], 0  ;;  %1136 = vmatprep.mubr.f32.mxu1 %v515_v33  ;;  %1980 = vmatpush3.msra.mxu0 %v305_v34  ;;  %v337_v38 = vld [vmem:[%s3749_s1 + $0x978] sm:$0xff]  ;;  %v319_v39 = vld [vmem:[%s3749_s1 + $0x8e8] sm:$0xff]  ;;  %vm2309_vm0 = vmmov 0   ;;  %s2310_s25 = smov [#allocation2]  }
  0x8c   :  { %1137 = vmatmul.mubr.f32.vlgmr.msra.gmra.mxu1 %v513_v25  ;;  %1981 = vmatprep.subr.mxu0 %v320_v35  ;;  %v352_v40 = vld [vmem:[%s3749_s1 + $0x9f0] sm:$0xff]  ;;  %v303_v41 = vld [vmem:[%s3749_s1 + $0x868] sm:$0xff]  ;;  %v318_v43 = vld [vmem:[%s3749_s1 + $0x8e0] sm:$0xff]  ;;  %s1687_s26 = sshll.u32 %s2310_s25, 4  ;;  %s1688_s26 = int_to_ptr.vmem [resolvable:$true] %s1687_s26 }
  0x8d   :  { %2014 = vmatprep.subr.mxu1 %v353_v36  ;;  %1982 = vmatpush3.msra.mxu0 %v304_v37  ;;  %v336_v42 = vld [vmem:[%s3749_s1 + $0x970] sm:$0xff]  ;;  %v351_v44 = vld [vmem:[%s3749_s1 + $0x9e8] sm:$0xff]  ;;  %v302_v45 = vld [vmem:[%s3749_s1 + $0x860] sm:$0xff]  ;;  %p2290_p1 = scmp.lt.s32.totalorder %s1688_s26, %s1688_s26 }
  0x8e   :  { %2015 = vmatpush3.msra.mxu1 %v337_v38  ;;  %1983 = vmatprep.subr.mxu0 %v319_v39  ;;  %v335_v46 = vld [vmem:[%s3749_s1 + $0x968] sm:$0xff]  ;;  %v317_v47 = vld [vmem:[%s3749_s1 + $0x8d8] sm:$0xff]  ;;  %v350_v49 = vld [vmem:[%s3749_s1 + $0x9e0] sm:$0xff] }
  0x8f   :  { %2016 = vmatprep.subr.mxu1 %v352_v40  ;;  %1984 = vmatpush3.msra.mxu0 %v303_v41  ;;  %v301_v50 = vld [vmem:[%s3749_s1 + $0x858] sm:$0xff]  ;;  %v334_v51 = vld [vmem:[%s3749_s1 + $0x960] sm:$0xff]  ;;  %v316_v52 = vld [vmem:[%s3749_s1 + $0x8d0] sm:$0xff] }
  0x90   :  { %2017 = vmatpush3.msra.mxu1 %v336_v42  ;;  %1985 = vmatprep.subr.mxu0 %v318_v43  ;;  %v349_v53 = vld [vmem:[%s3749_s1 + $0x9d8] sm:$0xff]  ;;  %v300_v54 = vld [vmem:[%s3749_s1 + $0x850] sm:$0xff]  ;;  %v315_v56 = vld [vmem:[%s3749_s1 + $0x8c8] sm:$0xff] }
  0x91   :  { %2018 = vmatprep.subr.mxu1 %v351_v44  ;;  %1986 = vmatpush3.msra.mxu0 %v302_v45  ;;  %v333_v55 = vld [vmem:[%s3749_s1 + $0x958] sm:$0xff]  ;;  %v348_v57 = vld [vmem:[%s3749_s1 + $0x9d0] sm:$0xff]  ;;  %v299_v58 = vld [vmem:[%s3749_s1 + $0x848] sm:$0xff] }
  0x92   :  { %2019 = vmatpush3.msra.mxu1 %v335_v46  ;;  %1987 = vmatprep.subr.mxu0 %v317_v47  ;;  %v332_v59 = vld [vmem:[%s3749_s1 + $0x950] sm:$0xff]  ;;  %v314_v60 = vld [vmem:[%s3749_s1 + $0x8c0] sm:$0xff]  ;;  %v347_v61 = vld [vmem:[%s3749_s1 + $0x9c8] sm:$0xff] }
  0x93   :  { %2020 = vmatprep.subr.mxu1 %v350_v49  ;;  %1988 = vmatpush3.msra.mxu0 %v301_v50  ;;  %v298_v62 = vld [vmem:[%s3749_s1 + $0x840] sm:$0xff]  ;;  %v331_v63 = vld [vmem:[%s3749_s1 + $0x948] sm:$0xff]  ;;  %v313_v0 = vld [vmem:[%s3749_s1 + $0x8b8] sm:$0xff] }
  0x94   :  { %2021 = vmatpush3.msra.mxu1 %v334_v51  ;;  %1989 = vmatprep.subr.mxu0 %v316_v52  ;;  %v346_v1 = vld [vmem:[%s3749_s1 + $0x9c0] sm:$0xff]  ;;  %v297_v2 = vld [vmem:[%s3749_s1 + $0x838] sm:$0xff]  ;;  %v312_v4 = vld [vmem:[%s3749_s1 + $0x8b0] sm:$0xff] }
  0x95   :  { %2022 = vmatprep.subr.mxu1 %v349_v53  ;;  %1990 = vmatpush3.msra.mxu0 %v300_v54  ;;  %v330_v3 = vld [vmem:[%s3749_s1 + $0x940] sm:$0xff]  ;;  %v345_v5 = vld [vmem:[%s3749_s1 + $0x9b8] sm:$0xff]  ;;  %v296_v6 = vld [vmem:[%s3749_s1 + $0x830] sm:$0xff] }
  0x96   :  { %2023 = vmatpush3.msra.mxu1 %v333_v55  ;;  %1991 = vmatprep.subr.mxu0 %v315_v56  ;;  %v329_v7 = vld [vmem:[%s3749_s1 + $0x938] sm:$0xff]  ;;  %v311_v8 = vld [vmem:[%s3749_s1 + $0x8a8] sm:$0xff]  ;;  %v344_v9 = vld [vmem:[%s3749_s1 + $0x9b0] sm:$0xff] }
  0x97   :  { %2024 = vmatprep.subr.mxu1 %v348_v57  ;;  %1992 = vmatpush3.msra.mxu0 %v299_v58  ;;  %v295_v10 = vld [vmem:[%s3749_s1 + $0x828] sm:$0xff]  ;;  %v328_v11 = vld [vmem:[%s3749_s1 + $0x930] sm:$0xff]  ;;  %v310_v12 = vld [vmem:[%s3749_s1 + $0x8a0] sm:$0xff] }
  0x98   :  { %2025 = vmatpush3.msra.mxu1 %v332_v59  ;;  %1993 = vmatprep.subr.mxu0 %v314_v60  ;;  %v343_v13 = vld [vmem:[%s3749_s1 + $0x9a8] sm:$0xff]  ;;  %v294_v14 = vld [vmem:[%s3749_s1 + $0x820] sm:$0xff]  ;;  %v309_v17 = vld [vmem:[%s3749_s1 + $0x898] sm:$0xff] }
  0x99   :  { %2026 = vmatprep.subr.mxu1 %v347_v61  ;;  %1994 = vmatpush3.msra.mxu0 %v298_v62  ;;  %v31_v15 = vld [vmem:[%s3748_s0 + $0x20] sm:$0xff]  ;;  %v327_v16 = vld [vmem:[%s3749_s1 + $0x928] sm:$0xff]  ;;  %v293_v19 = vld [vmem:[%s3749_s1 + $0x818] sm:$0xff] }
  0x9a   :  { %2027 = vmatpush3.msra.mxu1 %v331_v63  ;;  %1995 = vmatprep.subr.mxu0 %v313_v0  ;;  %v342_v18 = vld [vmem:[%s3749_s1 + $0x9a0] sm:$0xff]  ;;  %v308_v21 = vld [vmem:[%s3749_s1 + $0x890] sm:$0xff]  ;;  %v516_v22 = vcombine.high %v31_v15, %v31_v15  ;;  %v341_v23 = vld [vmem:[%s3749_s1 + $0x998] sm:$0xff]  ;;  %v523_v25 = vrot.slane %v31_v15, %v2480_v48 }
  0x9b   :  { %2028 = vmatprep.subr.mxu1 %v346_v1  ;;  %1996 = vmatpush3.msra.mxu0 %v297_v2  ;;  %v326_v20 = vld [vmem:[%s3749_s1 + $0x920] sm:$0xff]  ;;  %v292_v24 = vld [vmem:[%s3749_s1 + $0x810] sm:$0xff]  ;;  %v325_v26 = vld [vmem:[%s3749_s1 + $0x918] sm:$0xff] }
  0x9c   :  { %2029 = vmatpush3.msra.mxu1 %v330_v3  ;;  %1997 = vmatprep.subr.mxu0 %v312_v4  ;;  %v307_v27 = vld [vmem:[%s3749_s1 + $0x888] sm:$0xff]  ;;  %v340_v28 = vld [vmem:[%s3749_s1 + $0x990] sm:$0xff]  ;;  %v306_v31 = vld [vmem:[%s3749_s1 + $0x880] sm:$0xff]  ;;  %v530_v32 = vrot.slane %v516_v22, %v2480_v48  ;;  %v531_v35 = vcombine.high %v523_v25, %v523_v25 }
  0x9d   :  { %2030 = vmatprep.subr.mxu1 %v345_v5  ;;  %1998 = vmatpush3.msra.mxu0 %v296_v6  ;;  %v291_v29 = vld [vmem:[%s3749_s1 + $0x808] sm:$0xff]  ;;  %v324_v30 = vld [vmem:[%s3749_s1 + $0x910] sm:$0xff]  ;;  %v290_v34 = vld [vmem:[%s3749_s1 + $0x800] sm:$0xff] }
  0x9e   :  { %2031 = vmatpush3.msra.mxu1 %v329_v7  ;;  %1999 = vmatprep.subr.mxu0 %v311_v8  ;;  %v339_v33 = vld [vmem:[%s3749_s1 + $0x988] sm:$0xff]  ;;  %v338_v37 = vld [vmem:[%s3749_s1 + $0x980] sm:$0xff]  ;;  %v385_v38 = vld [vmem:[%s3749_s1 + $0xaf8] sm:$0xff]  ;;  %v532_v40 = vcombine.high %v530_v32, %v530_v32 }
  0x9f   :  { %2032 = vmatprep.subr.mxu1 %v344_v9  ;;  %2000 = vmatpush3.msra.mxu0 %v295_v10  ;;  %v323_v36 = vld [vmem:[%s3749_s1 + $0x908] sm:$0xff]  ;;  %v322_v39 = vld [vmem:[%s3749_s1 + $0x900] sm:$0xff]  ;;  %v369_v41 = vld [vmem:[%s3749_s1 + $0xa78] sm:$0xff] }
  0xa0   :  { %2033 = vmatpush3.msra.mxu1 %v328_v11  ;;  %2001 = vmatprep.subr.mxu0 %v310_v12  ;;  %v384_v42 = vld [vmem:[%s3749_s1 + $0xaf0] sm:$0xff]  ;;  %v417_v43 = vld [vmem:[%s3749_s1 + $0xbf8] sm:$0xff]  ;;  %v383_v46 = vld [vmem:[%s3749_s1 + $0xae8] sm:$0xff] }
  0xa1   :  { %2034 = vmatprep.subr.mxu1 %v343_v13  ;;  %2002 = vmatpush3.msra.mxu0 %v294_v14  ;;  %v368_v44 = vld [vmem:[%s3749_s1 + $0xa70] sm:$0xff]  ;;  %v401_v45 = vld [vmem:[%s3749_s1 + $0xb78] sm:$0xff]  ;;  %v367_v49 = vld [vmem:[%s3749_s1 + $0xa68] sm:$0xff] }
  0xa2   :  { %2035 = vmatpush3.msra.mxu1 %v327_v16  ;;  %2003 = vmatprep.subr.mxu0 %v309_v17  ;;  %v416_v47 = vld [vmem:[%s3749_s1 + $0xbf0] sm:$0xff]  ;;  %v382_v51 = vld [vmem:[%s3749_s1 + $0xae0] sm:$0xff]  ;;  %v415_v52 = vld [vmem:[%s3749_s1 + $0xbe8] sm:$0xff] }
  0xa3   :  { %2036 = vmatprep.subr.mxu1 %v342_v18  ;;  %2004 = vmatpush3.msra.mxu0 %v293_v19  ;;  %v400_v50 = vld [vmem:[%s3749_s1 + $0xb70] sm:$0xff]  ;;  %v366_v53 = vld [vmem:[%s3749_s1 + $0xa60] sm:$0xff]  ;;  %v399_v54 = vld [vmem:[%s3749_s1 + $0xb68] sm:$0xff] }
  0xa4   :  { %2037 = vmatpush3.msra.mxu1 %v326_v20  ;;  %2005 = vmatprep.subr.mxu0 %v308_v21  ;;  %v381_v55 = vld [vmem:[%s3749_s1 + $0xad8] sm:$0xff]  ;;  %v414_v56 = vld [vmem:[%s3749_s1 + $0xbe0] sm:$0xff]  ;;  %v380_v59 = vld [vmem:[%s3749_s1 + $0xad0] sm:$0xff] }
  0xa5   :  { %2038 = vmatprep.subr.mxu1 %v341_v23  ;;  %2006 = vmatpush3.msra.mxu0 %v292_v24  ;;  %v365_v57 = vld [vmem:[%s3749_s1 + $0xa58] sm:$0xff]  ;;  %v398_v58 = vld [vmem:[%s3749_s1 + $0xb60] sm:$0xff]  ;;  %v364_v61 = vld [vmem:[%s3749_s1 + $0xa50] sm:$0xff] }
  0xa6   :  { %2039 = vmatpush3.msra.mxu1 %v325_v26  ;;  %2007 = vmatprep.subr.mxu0 %v307_v27  ;;  %v413_v60 = vld [vmem:[%s3749_s1 + $0xbd8] sm:$0xff]  ;;  %v379_v63 = vld [vmem:[%s3749_s1 + $0xac8] sm:$0xff]  ;;  %v412_v0 = vld [vmem:[%s3749_s1 + $0xbd0] sm:$0xff] }
  0xa7   :  { %2040 = vmatprep.subr.mxu1 %v340_v28  ;;  %2008 = vmatpush3.msra.mxu0 %v291_v29  ;;  %v397_v62 = vld [vmem:[%s3749_s1 + $0xb58] sm:$0xff]  ;;  %v363_v1 = vld [vmem:[%s3749_s1 + $0xa48] sm:$0xff]  ;;  %v396_v2 = vld [vmem:[%s3749_s1 + $0xb50] sm:$0xff] }
  0xa8   :  { %2041 = vmatpush3.msra.mxu1 %v324_v30  ;;  %2009 = vmatprep.subr.mxu0 %v306_v31  ;;  %v378_v3 = vld [vmem:[%s3749_s1 + $0xac0] sm:$0xff]  ;;  %v411_v4 = vld [vmem:[%s3749_s1 + $0xbc8] sm:$0xff]  ;;  %v377_v7 = vld [vmem:[%s3749_s1 + $0xab8] sm:$0xff] }
  0xa9   :  { %2042 = vmatprep.subr.mxu1 %v339_v33  ;;  %2010 = vmatpush3.msra.mxu0 %v290_v34  ;;  %v362_v5 = vld [vmem:[%s3749_s1 + $0xa40] sm:$0xff]  ;;  %v395_v6 = vld [vmem:[%s3749_s1 + $0xb48] sm:$0xff]  ;;  %v361_v9 = vld [vmem:[%s3749_s1 + $0xa38] sm:$0xff] }
  0xaa   :  { %1206 = vmatprep.mubr.f32.mxu0 %v531_v35  ;;  %2043 = vmatpush3.msra.mxu1 %v323_v36  ;;  %v410_v8 = vld [vmem:[%s3749_s1 + $0xbc0] sm:$0xff]  ;;  %v376_v11 = vld [vmem:[%s3749_s1 + $0xab0] sm:$0xff]  ;;  %v409_v12 = vld [vmem:[%s3749_s1 + $0xbb8] sm:$0xff] }
  0xab   :  { %1207 = vmatmul.mubr.f32.vlgmr.msra.gmra.mxu0 %v523_v25  ;;  %2044 = vmatprep.subr.mxu1 %v338_v37  ;;  %v394_v10 = vld [vmem:[%s3749_s1 + $0xb40] sm:$0xff]  ;;  %v360_v13 = vld [vmem:[%s3749_s1 + $0xa30] sm:$0xff]  ;;  %v393_v14 = vld [vmem:[%s3749_s1 + $0xb38] sm:$0xff] }
  0xac   :  { %2049 = vmatprep.subr.mxu0 %v385_v38  ;;  %2045 = vmatpush3.msra.mxu1 %v322_v39  ;;  %v375_v15 = vld [vmem:[%s3749_s1 + $0xaa8] sm:$0xff]  ;;  %v408_v16 = vld [vmem:[%s3749_s1 + $0xbb0] sm:$0xff]  ;;  %v374_v19 = vld [vmem:[%s3749_s1 + $0xaa0] sm:$0xff] }
  0xad   :  { %1276 = vmatprep.mubr.f32.mxu1 %v532_v40  ;;  %2050 = vmatpush3.msra.mxu0 %v369_v41  ;;  %v359_v17 = vld [vmem:[%s3749_s1 + $0xa28] sm:$0xff]  ;;  %v392_v18 = vld [vmem:[%s3749_s1 + $0xb30] sm:$0xff]  ;;  %v358_v21 = vld [vmem:[%s3749_s1 + $0xa20] sm:$0xff] }
  0xae   :  { %1277 = vmatmul.mubr.f32.vlgmr.msra.gmra.mxu1 %v530_v32  ;;  %2051 = vmatprep.subr.mxu0 %v384_v42  ;;  %v407_v20 = vld [vmem:[%s3749_s1 + $0xba8] sm:$0xff]  ;;  %v373_v24 = vld [vmem:[%s3749_s1 + $0xa98] sm:$0xff]  ;;  %v406_v25 = vld [vmem:[%s3749_s1 + $0xba0] sm:$0xff] }
  0xaf   :  { %2084 = vmatprep.subr.mxu1 %v417_v43  ;;  %2052 = vmatpush3.msra.mxu0 %v368_v44  ;;  %v32_v22 = vld [vmem:[%s3748_s0 + $0x28] sm:$0xff]  ;;  %v357_v26 = vld [vmem:[%s3749_s1 + $0xa18] sm:$0xff]  ;;  %v390_v27 = vld [vmem:[%s3749_s1 + $0xb20] sm:$0xff] }
  0xb0   :  { %2085 = vmatpush3.msra.mxu1 %v401_v45  ;;  %2053 = vmatprep.subr.mxu0 %v383_v46  ;;  %v391_v23 = vld [vmem:[%s3749_s1 + $0xb28] sm:$0xff]  ;;  %v372_v28 = vld [vmem:[%s3749_s1 + $0xa90] sm:$0xff]  ;;  %v533_v29 = vcombine.high %v32_v22, %v32_v22  ;;  %v405_v30 = vld [vmem:[%s3749_s1 + $0xb98] sm:$0xff]  ;;  %v540_v32 = vrot.slane %v32_v22, %v2480_v48 }
  0xb1   :  { %2086 = vmatprep.subr.mxu1 %v416_v47  ;;  %2054 = vmatpush3.msra.mxu0 %v367_v49  ;;  %v356_v31 = vld [vmem:[%s3749_s1 + $0xa10] sm:$0xff]  ;;  %v389_v33 = vld [vmem:[%s3749_s1 + $0xb18] sm:$0xff]  ;;  %v371_v34 = vld [vmem:[%s3749_s1 + $0xa88] sm:$0xff]  ;;  %v2308_v47 = vmov 0.0  }
  0xb2   :  { %2087 = vmatpush3.msra.mxu1 %v400_v50  ;;  %2055 = vmatprep.subr.mxu0 %v382_v51  ;;  %v404_v35 = vld [vmem:[%s3749_s1 + $0xb90] sm:$0xff]  ;;  %v355_v36 = vld [vmem:[%s3749_s1 + $0xa08] sm:$0xff]  ;;  %v370_v38 = vld [vmem:[%s3749_s1 + $0xa80] sm:$0xff]  ;;  %v547_v39 = vrot.slane %v533_v29, %v2480_v48  ;;  %v548_v42 = vcombine.high %v540_v32, %v540_v32 }
  0xb3   :  { %2088 = vmatprep.subr.mxu1 %v415_v52  ;;  %2056 = vmatpush3.msra.mxu0 %v366_v53  ;;  %v388_v37 = vld [vmem:[%s3749_s1 + $0xb10] sm:$0xff]  ;;  %v403_v40 = vld [vmem:[%s3749_s1 + $0xb88] sm:$0xff]  ;;  %v354_v41 = vld [vmem:[%s3749_s1 + $0xa00] sm:$0xff] }
  0xb4   :  { %2089 = vmatpush3.msra.mxu1 %v399_v54  ;;  %2057 = vmatprep.subr.mxu0 %v381_v55  ;;  %v387_v43 = vld [vmem:[%s3749_s1 + $0xb08] sm:$0xff]  ;;  %v402_v48 = vld [vmem:[%s3749_s1 + $0xb80] sm:$0xff]  ;;  %v549_v45 = vcombine.high %v547_v39, %v547_v39  ;;  %v433_v46 = vld [vmem:[%s3749_s1 + $0xc78] sm:$0xff] }
  0xb5   :  { %2090 = vmatprep.subr.mxu1 %v414_v56  ;;  %2058 = vmatpush3.msra.mxu0 %v365_v57  ;;  %v386_v44 = vld [vmem:[%s3749_s1 + $0xb00] sm:$0xff]  ;;  %v432_v49 = vld [vmem:[%s3749_s1 + $0xc70] sm:$0xff]  ;;  %v431_v50 = vld [vmem:[%s3749_s1 + $0xc68] sm:$0xff] }
  0xb6   :  { %2091 = vmatpush3.msra.mxu1 %v398_v58  ;;  %2059 = vmatprep.subr.mxu0 %v380_v59  ;;  %v430_v51 = vld [vmem:[%s3749_s1 + $0xc60] sm:$0xff]  ;;  %v429_v52 = vld [vmem:[%s3749_s1 + $0xc58] sm:$0xff]  ;;  %v428_v53 = vld [vmem:[%s3749_s1 + $0xc50] sm:$0xff] }
  0xb7   :  { %2092 = vmatprep.subr.mxu1 %v413_v60  ;;  %2060 = vmatpush3.msra.mxu0 %v364_v61  ;;  %v427_v54 = vld [vmem:[%s3749_s1 + $0xc48] sm:$0xff]  ;;  %v426_v55 = vld [vmem:[%s3749_s1 + $0xc40] sm:$0xff]  ;;  %v425_v56 = vld [vmem:[%s3749_s1 + $0xc38] sm:$0xff] }
  0xb8   :  { %2093 = vmatpush3.msra.mxu1 %v397_v62  ;;  %2061 = vmatprep.subr.mxu0 %v379_v63  ;;  %v424_v57 = vld [vmem:[%s3749_s1 + $0xc30] sm:$0xff]  ;;  %v423_v58 = vld [vmem:[%s3749_s1 + $0xc28] sm:$0xff]  ;;  %v422_v59 = vld [vmem:[%s3749_s1 + $0xc20] sm:$0xff] }
  0xb9   :  { %2094 = vmatprep.subr.mxu1 %v412_v0  ;;  %2062 = vmatpush3.msra.mxu0 %v363_v1  ;;  %v421_v60 = vld [vmem:[%s3749_s1 + $0xc18] sm:$0xff]  ;;  %v420_v61 = vld [vmem:[%s3749_s1 + $0xc10] sm:$0xff]  ;;  %v419_v62 = vld [vmem:[%s3749_s1 + $0xc08] sm:$0xff] }
  0xba   :  { %2095 = vmatpush3.msra.mxu1 %v396_v2  ;;  %2063 = vmatprep.subr.mxu0 %v378_v3  ;;  %v418_v63 = vld [vmem:[%s3749_s1 + $0xc00] sm:$0xff]  ;;  %v1696_v0 = vld.sshfl [vmem:[%s3748_s0 + $0x30] sm:$0x3 pattern:$0x76325410]  ;;  %v1508_v1 = vld [vmem:[%s3751_s3 + $0x78] sm:$0xff] }
  0xbb   :  { %2096 = vmatprep.subr.mxu1 %v411_v4  ;;  %2064 = vmatpush3.msra.mxu0 %v362_v5  ;;  %v1507_v2 = vld [vmem:[%s3751_s3 + $0x70] sm:$0xff]  ;;  %v1506_v3 = vld [vmem:[%s3751_s3 + $0x68] sm:$0xff]  ;;  %v1505_v4 = vld [vmem:[%s3751_s3 + $0x60] sm:$0xff] }
  0xbc   :  { %2097 = vmatpush3.msra.mxu1 %v395_v6  ;;  %2065 = vmatprep.subr.mxu0 %v377_v7  ;;  %v1504_v5 = vld [vmem:[%s3751_s3 + $0x58] sm:$0xff]  ;;  %v1503_v6 = vld [vmem:[%s3751_s3 + $0x50] sm:$0xff]  ;;  %v1502_v7 = vld [vmem:[%s3751_s3 + $0x48] sm:$0xff] }
  0xbd   :  { %2098 = vmatprep.subr.mxu1 %v410_v8  ;;  %2066 = vmatpush3.msra.mxu0 %v361_v9  ;;  %v1501_v8 = vld [vmem:[%s3751_s3 + $0x40] sm:$0xff]  ;;  %v1500_v9 = vld [vmem:[%s3751_s3 + $0x38] sm:$0xff]  ;;  %v1597_v22 = vld [vmem:[%s3753_s5 + $0x50] sm:$0xff] }
  0xbe   :  { %2099 = vmatpush3.msra.mxu1 %v394_v10  ;;  %2067 = vmatprep.subr.mxu0 %v376_v11  ;;  %v1499_v10 = vld [vmem:[%s3751_s3 + $0x30] sm:$0xff]  ;;  %v1498_v11 = vld [vmem:[%s3751_s3 + $0x28] sm:$0xff]  ;;  %v1590_v29 = vld [vmem:[%s3753_s5 + $0x18] sm:$0xff] }
  0xbf   :  { %2100 = vmatprep.subr.mxu1 %v409_v12  ;;  %2068 = vmatpush3.msra.mxu0 %v360_v13  ;;  %v1497_v12 = vld [vmem:[%s3751_s3 + $0x20] sm:$0xff]  ;;  %v1496_v13 = vld [vmem:[%s3751_s3 + $0x18] sm:$0xff] }
  0xc0   :  { %2101 = vmatpush3.msra.mxu1 %v393_v14  ;;  %2069 = vmatprep.subr.mxu0 %v375_v15  ;;  %v1495_v14 = vld [vmem:[%s3751_s3 + $0x10] sm:$0xff]  ;;  %v1494_v15 = vld [vmem:[%s3751_s3 + $0x8] sm:$0xff] }
  0xc1   :  { %2102 = vmatprep.subr.mxu1 %v408_v16  ;;  %2070 = vmatpush3.msra.mxu0 %v359_v17  ;;  %v1493_v16 = vld [vmem:[%s3751_s3] sm:$0xff]  ;;  %v1602_v17 = vld [vmem:[%s3753_s5 + $0x78] sm:$0xff] }
  0xc2   :  { %2103 = vmatpush3.msra.mxu1 %v392_v18  ;;  %2071 = vmatprep.subr.mxu0 %v374_v19  ;;  %v1601_v18 = vld [vmem:[%s3753_s5 + $0x70] sm:$0xff]  ;;  %v1600_v19 = vld [vmem:[%s3753_s5 + $0x68] sm:$0xff] }
  0xc3   :  { %2104 = vmatprep.subr.mxu1 %v407_v20  ;;  %2072 = vmatpush3.msra.mxu0 %v358_v21  ;;  %v1599_v20 = vld [vmem:[%s3753_s5 + $0x60] sm:$0xff]  ;;  %v1598_v21 = vld [vmem:[%s3753_s5 + $0x58] sm:$0xff] }
  0xc4   :  { %2105 = vmatpush3.msra.mxu1 %v391_v23  ;;  %2073 = vmatprep.subr.mxu0 %v373_v24  ;;  %v1596_v23 = vld [vmem:[%s3753_s5 + $0x48] sm:$0xff]  ;;  %v1595_v24 = vld [vmem:[%s3753_s5 + $0x40] sm:$0xff] }
  0xc5   :  { %2106 = vmatprep.subr.mxu1 %v406_v25  ;;  %2074 = vmatpush3.msra.mxu0 %v357_v26  ;;  %v1594_v25 = vld [vmem:[%s3753_s5 + $0x38] sm:$0xff]  ;;  %v1593_v26 = vld [vmem:[%s3753_s5 + $0x30] sm:$0xff] }
  0xc6   :  { %2107 = vmatpush3.msra.mxu1 %v390_v27  ;;  %2075 = vmatprep.subr.mxu0 %v372_v28  ;;  %v1592_v27 = vld [vmem:[%s3753_s5 + $0x28] sm:$0xff]  ;;  %v1591_v28 = vld [vmem:[%s3753_s5 + $0x20] sm:$0xff] }
  0xc7   :  { %2108 = vmatprep.subr.mxu1 %v405_v30  ;;  %2076 = vmatpush3.msra.mxu0 %v356_v31 }
  0xc8   :  { %2109 = vmatpush3.msra.mxu1 %v389_v33  ;;  %2077 = vmatprep.subr.mxu0 %v371_v34 }
  0xc9   :  { %2110 = vmatprep.subr.mxu1 %v404_v35  ;;  %2078 = vmatpush3.msra.mxu0 %v355_v36  ;;  %v1695_v35 = vld [vmem:[%s3750_s2] ss:$0 sm:$0xff] }
  0xca   :  { %2111 = vmatpush3.msra.mxu1 %v388_v37  ;;  %2079 = vmatprep.subr.mxu0 %v370_v38 }
  0xcb   :  { %2112 = vmatprep.subr.mxu1 %v403_v40  ;;  %2080 = vmatpush3.msra.mxu0 %v354_v41 }
  0xcc   :  { %1346 = vmatprep.mubr.f32.mxu0 %v548_v42  ;;  %2113 = vmatpush3.msra.mxu1 %v387_v43 }
  0xcd   :  { %1347 = vmatmul.mubr.f32.vlgmr.msra.gmra.mxu0 %v540_v32  ;;  %2114 = vmatprep.subr.mxu1 %v402_v48 }
  0xce   :  { %2170 = vmatprep.subr.mxu0 %v2308_v47  ;;  %2115 = vmatpush3.msra.mxu1 %v386_v44 }
  0xcf   :  { %1416 = vmatprep.mubr.f32.mxu1 %v549_v45  ;;  %2171 = vmatpush3.msra.mxu0 %v433_v46 }
  0xd0   :  { %1417 = vmatmul.mubr.f32.vlgmr.msra.gmra.mxu1 %v547_v39  ;;  %2172 = vmatprep.subr.mxu0 %v2308_v47 }
  0xd1   :  { %2173 = vmatpush3.msra.mxu0 %v432_v49  ;;  %2202 = vmatprep.mubr.msk.f32.mxu0 %vm2309_vm0, %v2308_v47 }
  0xd2   :  { %2174 = vmatprep.subr.mxu0 %v2308_v47  ;;  %2205 = vmatprep.subr.mxu1 %v2308_v47 }
  0xd3   :  { %2175 = vmatpush3.msra.mxu0 %v431_v50  ;;  %2237 = vmatprep.mubr.msk.f32.mxu1 %vm2309_vm0, %v2308_v47 }
  0xd4   :  { %2176 = vmatprep.subr.mxu0 %v2308_v47  ;;  %2206 = vmatpush3.msra.mxu1 %v1508_v1 }
  0xd5   :  { %2177 = vmatpush3.msra.mxu0 %v430_v51  ;;  %2207 = vmatprep.subr.mxu1 %v2308_v47 }
  0xd6   :  { %2178 = vmatprep.subr.mxu0 %v2308_v47  ;;  %2208 = vmatpush3.msra.mxu1 %v1507_v2 }
  0xd7   :  { %2179 = vmatpush3.msra.mxu0 %v429_v52  ;;  %2209 = vmatprep.subr.mxu1 %v2308_v47 }
  0xd8   :  { %2180 = vmatprep.subr.mxu0 %v2308_v47  ;;  %2210 = vmatpush3.msra.mxu1 %v1506_v3 }
  0xd9   :  { %2181 = vmatpush3.msra.mxu0 %v428_v53  ;;  %2211 = vmatprep.subr.mxu1 %v2308_v47 }
  0xda   :  { %2182 = vmatprep.subr.mxu0 %v2308_v47  ;;  %2212 = vmatpush3.msra.mxu1 %v1505_v4 }
  0xdb   :  { %2183 = vmatpush3.msra.mxu0 %v427_v54  ;;  %2213 = vmatprep.subr.mxu1 %v2308_v47 }
  0xdc   :  { %2184 = vmatprep.subr.mxu0 %v2308_v47  ;;  %2214 = vmatpush3.msra.mxu1 %v1504_v5 }
  0xdd   :  { %2185 = vmatpush3.msra.mxu0 %v426_v55  ;;  %2215 = vmatprep.subr.mxu1 %v2308_v47 }
  0xde   :  { %2186 = vmatprep.subr.mxu0 %v2308_v47  ;;  %2216 = vmatpush3.msra.mxu1 %v1503_v6 }
  0xdf   :  { %2187 = vmatpush3.msra.mxu0 %v425_v56  ;;  %2217 = vmatprep.subr.mxu1 %v2308_v47 }
  0xe0   :  { %2188 = vmatprep.subr.mxu0 %v2308_v47  ;;  %2218 = vmatpush3.msra.mxu1 %v1502_v7 }
  0xe1   :  { %2189 = vmatpush3.msra.mxu0 %v424_v57  ;;  %2219 = vmatprep.subr.mxu1 %v2308_v47 }
  0xe2   :  { %2190 = vmatprep.subr.mxu0 %v2308_v47  ;;  %2220 = vmatpush3.msra.mxu1 %v1501_v8  ;;  %v1731_v30 = vpop.f32.mrf.mxu0 }
  0xe3   :  { %2191 = vmatpush3.msra.mxu0 %v423_v58  ;;  %2221 = vmatprep.subr.mxu1 %v2308_v47 }
  0xe4   :  { %2192 = vmatprep.subr.mxu0 %v2308_v47  ;;  %2222 = vmatpush3.msra.mxu1 %v1500_v9  ;;  %v1732_v31 = vpop.f32.mrf.mxu0 }
  0xe5   :  { %2193 = vmatpush3.msra.mxu0 %v422_v59  ;;  %2223 = vmatprep.subr.mxu1 %v2308_v47  ;;  %v1766_v32 = vpop.f32.mrf.mxu1  ;;  %v1733_v34 = vadd.f32 %v1732_v31, %v1731_v30 }
  0xe6   :  { %2194 = vmatprep.subr.mxu0 %v2308_v47  ;;  %2224 = vmatpush3.msra.mxu1 %v1499_v10 }
  0xe7   :  { %2195 = vmatpush3.msra.mxu0 %v421_v60  ;;  %2225 = vmatprep.subr.mxu1 %v2308_v47  ;;  %v1767_v36 = vpop.f32.mrf.mxu1  ;;  %v649_v39 = vadd.f32 %v1733_v34, %v1695_v35 }
  0xe8   :  { %2196 = vmatprep.subr.mxu0 %v2308_v47  ;;  %2226 = vmatpush3.msra.mxu1 %v1498_v11  ;;  %v1768_v40 = vadd.f32 %v1767_v36, %v1766_v32 }
  0xe9   :  { %2197 = vmatpush3.msra.mxu0 %v420_v61  ;;  %2227 = vmatprep.subr.mxu1 %v2308_v47 }
  0xea   :  { %2198 = vmatprep.subr.mxu0 %v2308_v47  ;;  %2228 = vmatpush3.msra.mxu1 %v1497_v12  ;;  %v719_v48 = vadd.f32 %v1768_v40, %v649_v39 }
  0xeb   :  { %2199 = vmatpush3.msra.mxu0 %v419_v62  ;;  %2229 = vmatprep.subr.mxu1 %v2308_v47 }
  0xec   :  { %2200 = vmatprep.subr.mxu0 %v2308_v47  ;;  %2230 = vmatpush3.msra.mxu1 %v1496_v13 }
  0xed   :  { %2201 = vmatpush3.msra.mxu0 %v418_v63  ;;  %2231 = vmatprep.subr.mxu1 %v2308_v47 }
  0xee   :  { %2203 = vmatmul.mubr.f32.vlgmr.msra.gmra.mxu0 %v1696_v0  ;;  %2240 = vmatprep.subr.mxu0 %v2308_v47 }
  0xef   :  { %2272 = vmatprep.mubr.msk.f32.mxu0 %vm2309_vm0, %v2308_v47  ;;  %2232 = vmatpush3.msra.mxu1 %v1495_v14 }
  0xf0   :  { %2233 = vmatprep.subr.mxu1 %v2308_v47  ;;  %2241 = vmatpush3.msra.mxu0 %v1602_v17 }
  0xf1   :  { %2234 = vmatpush3.msra.mxu1 %v1494_v15  ;;  %2242 = vmatprep.subr.mxu0 %v2308_v47 }
  0xf2   :  { %2235 = vmatprep.subr.mxu1 %v2308_v47  ;;  %2243 = vmatpush3.msra.mxu0 %v1601_v18 }
  0xf3   :  { %2236 = vmatpush3.msra.mxu1 %v1493_v16  ;;  %2244 = vmatprep.subr.mxu0 %v2308_v47 }
  0xf4   :  { %2245 = vmatpush3.msra.mxu0 %v1600_v19 }
  0xf5   :  { %2246 = vmatprep.subr.mxu0 %v2308_v47 }
  0xf6   :  { %2247 = vmatpush3.msra.mxu0 %v1599_v20  ;;  %v1589_v20 = vld [vmem:[%s3753_s5 + $0x10] sm:$0xff] }
  0xf7   :  { %2248 = vmatprep.subr.mxu0 %v2308_v47 }
  0xf8   :  { %2249 = vmatpush3.msra.mxu0 %v1598_v21  ;;  %v1588_v21 = vld [vmem:[%s3753_s5 + $0x8] sm:$0xff] }
  0xf9   :  { %2250 = vmatprep.subr.mxu0 %v2308_v47 }
  0xfa   :  { %2251 = vmatpush3.msra.mxu0 %v1597_v22  ;;  %v1587_v22 = vld [vmem:[%s3753_s5] sm:$0xff]  ;;  %s2285_s5 = scalar_lea.vmem %s1688_s26, 32 }
  0xfb   :  { %2252 = vmatprep.subr.mxu0 %v2308_v47  ;;  %p2286_p0 = scmp.ne.s32.totalorder %s1688_s26, %s2285_s5  ;;  %p2291_p2 = scmp.lt.s32.totalorder %s2285_s5, %s2285_s5 }
  0xfc   :  { %2253 = vmatpush3.msra.mxu0 %v1596_v23  ;;  %v1697_v23 = vld [vmem:[%s3752_s4] ss:$0 sm:$0xff] }
  0xfd   :  { %2254 = vmatprep.subr.mxu0 %v2308_v47  ;;  %p2292_p3 = por %p2291_p2, %p2290_p1 }
  0xfe   :  { %2255 = vmatpush3.msra.mxu0 %v1595_v24 }
  0xff   :  { %2256 = vmatprep.subr.mxu0 %v2308_v47  ;;  %p2293_p4 = pnand %p2292_p3, %p2286_p0 }
 0x100   :  { %2257 = vmatpush3.msra.mxu0 %v1594_v25 }
 0x101   :  { %2258 = vmatprep.subr.mxu0 %v2308_v47 }
 0x102   :  { %2259 = vmatpush3.msra.mxu0 %v1593_v26 }
 0x103   :  { %2260 = vmatprep.subr.mxu0 %v2308_v47 }
 0x104   :  { %2261 = vmatpush3.msra.mxu0 %v1592_v27  ;;  %v1801_v33 = vpop.f32.mrf.mxu0 }
 0x105   :  { %2262 = vmatprep.subr.mxu0 %v2308_v47 }
 0x106   :  { %2263 = vmatpush3.msra.mxu0 %v1591_v28  ;;  %v1802_v37 = vpop.f32.mrf.mxu0  ;;  %v1698_v28 = vld [vmem:[%s3754_s6] ss:$0 sm:$0xff] }
 0x107   :  { %2264 = vmatprep.subr.mxu0 %v2308_v47  ;;  %v1836_v38 = vpop.f32.mrf.mxu1  ;;  %v1803_v42 = vadd.f32 %v1802_v37, %v1801_v33 }
 0x108   :  { %2265 = vmatpush3.msra.mxu0 %v1590_v29 }
 0x109   :  { %2266 = vmatprep.subr.mxu0 %v2308_v47  ;;  %v1837_v43 = vpop.f32.mrf.mxu1  ;;  %v789_v46 = vadd.f32 %v1803_v42, %v719_v48 }
 0x10a   :  { %v1838_v49 = vadd.f32 %v1837_v43, %v1836_v38  ;;  %2267 = vmatpush3.msra.mxu0 %v1589_v20 }
 0x10b   :  { %2268 = vmatprep.subr.mxu0 %v2308_v47 }
 0x10c   :  { %v859_v53 = vadd.f32 %v1838_v49, %v789_v46  ;;  %2269 = vmatpush3.msra.mxu0 %v1588_v21 }
 0x10d   :  { %2270 = vmatprep.subr.mxu0 %v2308_v47 }
 0x10e   :  { %2271 = vmatpush3.msra.mxu0 %v1587_v22 }
 0x126   :  { %v1871_v41 = vpop.f32.mrf.mxu0 }
 0x128   :  { %v1872_v44 = vpop.f32.mrf.mxu0 }
 0x129   :  { %v1906_v45 = vpop.f32.mrf.mxu1  ;;  %v1873_v51 = vadd.f32 %v1872_v44, %v1871_v41 }
 0x12b   :  { %v1907_v52 = vpop.f32.mrf.mxu1  ;;  %v929_v56 = vadd.f32 %v1873_v51, %v859_v53 }
 0x12c   :  { %v1908_v57 = vadd.f32 %v1907_v52, %v1906_v45 }
 0x12e   :  { %v999_v61 = vadd.f32 %v1908_v57, %v929_v56 }
 0x148   :  { %v1941_v50 = vpop.f32.mrf.mxu0 }
 0x14a   :  { %v1942_v54 = vpop.f32.mrf.mxu0 }
 0x14b   :  { %v1943_v59 = vadd.f32 %v1942_v54, %v1941_v50 }
 0x14c   :  { %v1976_v55 = vpop.f32.mrf.mxu1 }
 0x14d   :  { %v1069_v0 = vadd.f32 %v1943_v59, %v999_v61 }
 0x14e   :  { %v1977_v60 = vpop.f32.mrf.mxu1 }
 0x14f   :  { %v1978_v1 = vadd.f32 %v1977_v60, %v1976_v55 }
 0x151   :  { %v1139_v5 = vadd.f32 %v1978_v1, %v1069_v0 }
 0x16b   :  { %v2011_v58 = vpop.f32.mrf.mxu0 }
 0x16d   :  { %v2012_v62 = vpop.f32.mrf.mxu0 }
 0x16e   :  { %v2046_v63 = vpop.f32.mrf.mxu1  ;;  %v2013_v3 = vadd.f32 %v2012_v62, %v2011_v58 }
 0x170   :  { %v2047_v4 = vpop.f32.mrf.mxu1  ;;  %v1209_v8 = vadd.f32 %v2013_v3, %v1139_v5 }
 0x171   :  { %v2048_v9 = vadd.f32 %v2047_v4, %v2046_v63 }
 0x173   :  { %v1279_v12 = vadd.f32 %v2048_v9, %v1209_v8 }
 0x18d   :  { %v2081_v2 = vpop.f32.mrf.mxu0 }
 0x18f   :  { %v2082_v6 = vpop.f32.mrf.mxu0 }
 0x190   :  { %v2116_v7 = vpop.f32.mrf.mxu1  ;;  %v2083_v10 = vadd.f32 %v2082_v6, %v2081_v2 }
 0x192   :  { %v2117_v11 = vpop.f32.mrf.mxu1  ;;  %v1349_v13 = vadd.f32 %v2083_v10, %v1279_v12 }
 0x193   :  { %v2118_v14 = vadd.f32 %v2117_v11, %v2116_v7 }
 0x195   :  { %v1419_v15 = vadd.f32 %v2118_v14, %v1349_v13 }
 0x1ae   :  { %v1488_v16 = vpop.f32.mrf.mxu0 }
 0x1af   :  { %v1489_v17 = vadd.f32 %v1488_v16, %v1419_v15 }
 0x1b0   :  { %v2204_v18 = vpop.f32.mrf.mxu0 }
 0x1b1   :  { %v1492_v19 = vmax.f32 %v1489_v17, 0.0 }
 0x1b3   :  { %2238 = vmatmul.mubr.f32.vlgmr.msra.gmra.mxu1 %v1492_v19 }
 0x273   :  { %v1582_v24 = vpop.f32.mrf.mxu1 }
 0x274   :  { %v1583_v25 = vadd.f32 %v1697_v23, %v1582_v24 }
 0x275   :  { %v2239_v26 = vpop.f32.mrf.mxu1 }
 0x276   :  { %v1586_v27 = vmax.f32 %v1583_v25, 0.0 }
 0x278   :  { %2273 = vmatmul.mubr.f32.vlgmr.msra.gmra.mxu0 %v1586_v27 }
 0x338   :  { %v1676_v47 = vpop.f32.mrf.mxu0 }
 0x339   :  { %v1677_v29 = vadd.f32 %v1698_v28, %v1676_v47 }
 0x33a   :  { %v2274_v30 = vpop.f32.mrf.mxu0 }
 0x33b   :  { %1680 = vst [vmem:[#allocation2] sm:$0x3] %v1677_v29 }
 0x33c   :  { %2296 = shalt.err (!%p2293_p4)
}
 0x33d   :  { %1690 = dma.vmem_to_hbm [thread:$0]  %s1688_s26, 32, %s3755_s7, [#allocation3]  }
 0x33e   :  { %2305 = dma.done.wait [#allocation3], 32  }
 0x33f   :  { %2306 = vsyncadd [#allocation3], 4294967264 }
 0x340   :  { %1694 = vsyncpa [#allocation3], 1 }

</bundles_post_ra>
